<compile_context>
chip_gen: v6e
topology: v6e:2x2x1
jax: 0.10.0
libtpu: 0.0.40
codegen_flags: <defaults>
</compile_context>

<pallas_src>
import jax
import jax.numpy as jnp
from jax import lax
from jax.experimental import pallas as pl
from jax.experimental.pallas import tpu as pltpu

KSIZE = 3  # conv kernel size (fixed in the module)


def _make_kernel(depth: int, halo: int):
    def kernel(xh_ref, ch_ref, x_ref, c_ref,
               wexp_ref, wconv_ref, wpre_ref, wcol_ref,
               o_ref, cwin_ref, h3_ref):
        C, t_blk = c_ref.shape
        W = halo + t_blk                     # full window incl. recompute halo

        # Stage the conditioning window (halo ++ current) into VMEM scratch once;
        # it is re-read per layer so no (C, W) live range spans the depth loop.
        cwin_ref[:, :halo] = ch_ref[...]
        cwin_ref[:, halo:] = c_ref[...]

        # x window (1, W): halo ++ current (tiny, one row).
        x_win = jnp.concatenate([xh_ref[...], x_ref[...]], axis=1)

        # expand: Linear(1, C, bias=False) + tanh  ->  h[c, t] = tanh(w_exp[c] * x[t])
        h = jnp.tanh(wexp_ref[...] * x_win)                      # (C, W) f32

        # lane-index row, hoisted; broadcasts over sublanes in the tap mask.
        t_idx = lax.broadcasted_iota(jnp.int32, (1, W), 1)

        # dilated causal conv stack; the 3 taps fused into one (C,3C)@(3C,W) matmul
        # fed from a persistent bf16 staging scratch.
        for k in range(depth):
            d = 1 << k
            h_prev = h
            for j in range(KSIZE):
                s = (KSIZE - 1 - j) * d      # causal shift (always < halo <= W)
                if s == 0:
                    tap = h
                else:
                    # shifted[c, t] = h[c, t - s] for t >= s, else 0 (left zero-pad)
                    tap = jnp.where(t_idx >= s, pltpu.roll(h, s, axis=1), 0.0)
                h3_ref[j * C:(j + 1) * C, :] = tap.astype(jnp.bfloat16)
            acc = jnp.dot(wconv_ref[k], h3_ref[...],
                          preferred_element_type=jnp.float32)    # (C, W) f32
            h = jnp.tanh(acc) + h_prev + cwin_ref[...]           # residual + cond (f32)

        # Drop the recomputed halo prefix; only the last T_blk columns are stored.
        h_out = h[:, halo:].astype(jnp.bfloat16)                 # (C, T_blk)

        # pre_collapse: Linear(C, C//4) + tanh; the module's 0.1 scale is folded
        # into wpre in the wrapper.
        h2 = jnp.tanh(jnp.dot(wpre_ref[...], h_out,
                              preferred_element_type=jnp.float32))  # (C4, T_blk) f32

        # collapse: Linear(C//4, 1) + tanh as a VPU multiply + sublane reduce
        # (M=1, K=C/4 matmul would be <1% MXU fill).
        y = jnp.tanh(jnp.sum(wcol_ref[...] * h2, axis=0, keepdims=True))  # (1, T_blk)

        o_ref[...] = (y + x_ref[...]).astype(o_ref.dtype)

    return kernel


def simple_filter(x, c, w_expand, w_convs, w_pre, w_col, *, t_blk=2048):
    """x: (B, 1, T), c: (B, C, T) in PyTorch NCL layout. Returns (B, 1, T)."""
    B, _, T = x.shape
    C = w_expand.shape[0]
    C4 = C // 4
    depth = w_convs.shape[0]

    # Causal receptive field of the dilated conv stack, rounded up to 128 lanes.
    rf = (KSIZE - 1) * ((1 << depth) - 1)
    halo = max(128, pl.cdiv(rf, 128) * 128)

    t_blk = min(t_blk, T)
    # T_blk multiple of 256 keeps the MXU N dimension fully filled and the
    # output row lane-dense; T must tile evenly.
    # TODO(synk): pad T up to a multiple of t_blk (and slice the output) for
    # arbitrary sequence lengths.
    assert t_blk % 128 == 0 and T % t_blk == 0, (T, t_blk)
    assert halo <= t_blk, (halo, t_blk)
    n_t = T // t_blk
    W = halo + t_blk

    # Prebuilt halo companions: the halo window preceding each T tile
    # (zeros before t=0, matching the causal left zero-padding).
    c_pad = jnp.pad(c, ((0, 0), (0, 0), (halo, 0)))
    x_pad = jnp.pad(x, ((0, 0), (0, 0), (halo, 0)))
    c_halo = c_pad[:, :, :n_t * t_blk].reshape(B, C, n_t, t_blk)[:, :, :, :halo]
    c_halo = jnp.transpose(c_halo, (0, 2, 1, 3))                 # (B, nT, C, halo)
    x_halo = x_pad[:, :, :n_t * t_blk].reshape(B, 1, n_t, t_blk)[:, :, :, :halo]
    x_halo = jnp.transpose(x_halo, (0, 2, 1, 3))                 # (B, nT, 1, halo)

    # Parameter packing (tiny, one-time).  Conv weights (depth, C_out, C_in, K)
    # -> (depth, C_out, K*C_in) so each layer is one (C, 3C) matmul; matmul
    # weights pre-cast to bf16 (f32 accumulation inside the kernel).
    w3 = jnp.transpose(w_convs, (0, 1, 3, 2)).reshape(depth, C, KSIZE * C)
    w3 = w3.astype(jnp.bfloat16)                                 # (depth, C, 3C)
    w_exp = w_expand.astype(jnp.float32)                         # (C, 1)
    w_pre_b = (0.1 * w_pre).astype(jnp.bfloat16)                 # (C4, C), 0.1 folded in
    w_col_c = jnp.reshape(w_col, (C4, 1)).astype(jnp.float32)    # (C4, 1) column form

    # VMEM budget: double-buffered input/output blocks + scratch + temp headroom.
    vmem_est = (
        2 * C * (t_blk + halo) * 4              # c current + halo blocks
        + 2 * 2 * (t_blk + halo) * 4            # x / out rows
        + 2 * (depth * C * KSIZE * C + C4 * C) * 2 + 2 * (C + C4) * 4  # weights
        + C * W * 4 + KSIZE * C * W * 2         # scratch: c window + 3C tap buffer
        + 8 * C * W * 4                         # h / h_prev / tap / acc temporaries
    )
    vmem_limit = int(min(48 * 2 ** 20, max(32 * 2 ** 20, 2 * vmem_est)))

    kernel = _make_kernel(depth, halo)

    return pl.pallas_call(
        kernel,
        out_shape=jax.ShapeDtypeStruct((B, 1, T), x.dtype),
        grid_spec=pltpu.PrefetchScalarGridSpec(
            num_scalar_prefetch=0,
            grid=(B, n_t),
            in_specs=[
                pl.BlockSpec((None, None, 1, halo), lambda b, t: (b, t, 0, 0)),   # x halo
                pl.BlockSpec((None, None, C, halo), lambda b, t: (b, t, 0, 0)),   # c halo
                pl.BlockSpec((None, 1, t_blk), lambda b, t: (b, 0, t)),           # x tile
                pl.BlockSpec((None, C, t_blk), lambda b, t: (b, 0, t)),           # c tile
                pl.BlockSpec((C, 1), lambda b, t: (0, 0)),                        # expand w
                pl.BlockSpec((depth, C, KSIZE * C), lambda b, t: (0, 0, 0)),      # fused conv w
                pl.BlockSpec((C4, C), lambda b, t: (0, 0)),                       # pre_collapse w
                pl.BlockSpec((C4, 1), lambda b, t: (0, 0)),                       # collapse w
            ],
            out_specs=pl.BlockSpec((None, 1, t_blk), lambda b, t: (b, 0, t)),
            scratch_shapes=[
                pltpu.VMEM((C, W), jnp.float32),                 # conditioning window
                pltpu.VMEM((KSIZE * C, W), jnp.bfloat16),        # 3-tap staging buffer
            ],
        ),
        compiler_params=pltpu.CompilerParams(
            dimension_semantics=("parallel", "parallel"),
            vmem_limit_bytes=vmem_limit,
        ),
    )(x_halo, c_halo, x, c, w_exp, w3, w_pre_b, w_col_c)


def reference(x, c, w_expand, w_convs, w_pre, w_col):
    """Pure-JAX f32 mirror of the PyTorch forward (NCL layout), HIGHEST precision."""
    depth = w_convs.shape[0]
    x_input = x
    h = jnp.tanh(jnp.einsum("but,cu->bct", x, w_expand,
                            precision=lax.Precision.HIGHEST))
    for k in range(depth):
        d = 1 << k
        pad = (KSIZE - 1) * d
        h_prev = h
        hp = jnp.pad(h, ((0, 0), (0, 0), (pad, 0)))
        y = lax.conv_general_dilated(
            hp, w_convs[k], window_strides=(1,), padding="VALID",
            rhs_dilation=(d,), dimension_numbers=("NCH", "OIH", "NCH"),
            precision=lax.Precision.HIGHEST,
        )
        h = jnp.tanh(y) + h_prev + c
    h = h * 0.1
    ht = jnp.transpose(h, (0, 2, 1))
    ht = jnp.tanh(jnp.einsum("btc,dc->btd", ht, w_pre, precision=lax.Precision.HIGHEST))
    ht = jnp.tanh(jnp.einsum("btd,od->bto", ht, w_col, precision=lax.Precision.HIGHEST))
    return jnp.transpose(ht, (0, 2, 1)) + x_input


if __name__ == "__main__":
    B, C, T, DEPTH = 2, 64, 1024, 4      # small shapes; C divisible by 4
    T_BLK = 512                          # 2 T-tiles: exercises both the zero-halo
                                         # (t=0) and the real-halo (t=1) paths

    key = jax.random.PRNGKey(0)
    k1, k2, k3, k4, k5, k6 = jax.random.split(key, 6)

    x = jax.random.normal(k1, (B, 1, T), jnp.float32)
    c = 0.1 * jax.random.normal(k2, (B, C, T), jnp.float32)

    # deterministic synthetic parameters (shapes follow the module's __init__)
    w_expand = jax.random.normal(k3, (C, 1), jnp.float32)                        # Linear(1, C)
    w_convs = jax.random.normal(k4, (DEPTH, C, C, KSIZE), jnp.float32) / jnp.sqrt(C * KSIZE)
    w_pre = jax.random.normal(k5, (C // 4, C), jnp.float32) / jnp.sqrt(C)        # Linear(C, C//4)
    w_col = jax.random.normal(k6, (1, C // 4), jnp.float32) / jnp.sqrt(C // 4)   # Linear(C//4, 1)

    out = simple_filter(x, c, w_expand, w_convs, w_pre, w_col, t_blk=T_BLK)
    out = jax.block_until_ready(out)

    ref = reference(x, c, w_expand, w_convs, w_pre, w_col)
    assert out.shape == (B, 1, T), out.shape
    # bf16 matmul operands / f32 accumulation vs. the f32-HIGHEST reference:
    # tolerance loosened accordingly (deliberate precision/perf tradeoff).
    err = float(jnp.max(jnp.abs(out - ref)))
    assert jnp.allclose(out, ref, atol=5e-3, rtol=5e-3), err

    print("KERNEL_OK")
</pallas_src>

<mosaic_0001>
module attributes {stable_mosaic.version = 11 : i64} {
  func.func @kernel(%arg0: i32, %arg1: i32, %arg2: memref<1x1x1x128xf32, #tpu.memory_space<vmem>>, %arg3: memref<1x1x64x128xf32, #tpu.memory_space<vmem>>, %arg4: memref<1x1x512xf32, #tpu.memory_space<vmem>>, %arg5: memref<1x64x512xf32, #tpu.memory_space<vmem>>, %arg6: memref<64x1xf32, #tpu.memory_space<vmem>>, %arg7: memref<4x64x192xbf16, #tpu.memory_space<vmem>>, %arg8: memref<16x64xbf16, #tpu.memory_space<vmem>>, %arg9: memref<16x1xf32, #tpu.memory_space<vmem>>, %arg10: memref<1x1x512xf32, #tpu.memory_space<vmem>>, %arg11: memref<64x640xf32, #tpu.memory_space<vmem>>, %arg12: memref<192x640xbf16, #tpu.memory_space<vmem>>) attributes {dimension_semantics = [#tpu.dimension_semantics<parallel>, #tpu.dimension_semantics<parallel>], iteration_bounds = array<i64: 2, 2>, scalar_prefetch = 0 : i64, scratch_operands = 2 : i64, tpu.core_type = #tpu.core_type<tc>, window_params = [{transform_indices = @transform_0, window_bounds = array<i64: 1, 1, 1, 128>}, {transform_indices = @transform_1, window_bounds = array<i64: 1, 1, 64, 128>}, {transform_indices = @transform_2, window_bounds = array<i64: 1, 1, 512>}, {transform_indices = @transform_3, window_bounds = array<i64: 1, 64, 512>}, {pipeline_mode = #tpu.pipeline_mode<synchronous>, transform_indices = @transform_4, window_bounds = array<i64: 64, 1>}, {pipeline_mode = #tpu.pipeline_mode<synchronous>, transform_indices = @transform_5, window_bounds = array<i64: 4, 64, 192>}, {pipeline_mode = #tpu.pipeline_mode<synchronous>, transform_indices = @transform_6, window_bounds = array<i64: 16, 64>}, {pipeline_mode = #tpu.pipeline_mode<synchronous>, transform_indices = @transform_7, window_bounds = array<i64: 16, 1>}, {transform_indices = @transform_8, window_bounds = array<i64: 1, 1, 512>}]} {
    %c0 = arith.constant 0 : index
    %c0_0 = arith.constant 0 : index
    %c0_1 = arith.constant 0 : index
    %c0_2 = arith.constant 0 : index
    %0 = vector.load %arg3[%c0, %c0_0, %c0_1, %c0_2] : memref<1x1x64x128xf32, #tpu.memory_space<vmem>>, vector<1x1x64x128xf32>
    %1 = vector.shape_cast %0 : vector<1x1x64x128xf32> to vector<64x128xf32>
    %c0_3 = arith.constant 0 : index
    %c0_4 = arith.constant 0 : index
    %2 = vector.load %arg11[%c0_3, %c0_4] : memref<64x640xf32, #tpu.memory_space<vmem>>, vector<64x128xf32>
    tpu.vector_store %arg11[%c0_3, %c0_4], %1 {strides = array<i32>} : memref<64x640xf32, #tpu.memory_space<vmem>>, vector<64x128xf32>,
    %c0_5 = arith.constant 0 : index
    %c0_6 = arith.constant 0 : index
    %c0_7 = arith.constant 0 : index
    %3 = vector.load %arg5[%c0_5, %c0_6, %c0_7] : memref<1x64x512xf32, #tpu.memory_space<vmem>>, vector<1x64x512xf32>
    %4 = vector.shape_cast %3 : vector<1x64x512xf32> to vector<64x512xf32>
    %c0_8 = arith.constant 0 : index
    %c128 = arith.constant 128 : index
    %5 = vector.load %arg11[%c0_8, %c128] : memref<64x640xf32, #tpu.memory_space<vmem>>, vector<64x512xf32>
    tpu.vector_store %arg11[%c0_8, %c128], %4 {strides = array<i32>} : memref<64x640xf32, #tpu.memory_space<vmem>>, vector<64x512xf32>,
    %c0_9 = arith.constant 0 : index
    %c0_10 = arith.constant 0 : index
    %c0_11 = arith.constant 0 : index
    %c0_12 = arith.constant 0 : index
    %6 = vector.load %arg2[%c0_9, %c0_10, %c0_11, %c0_12] : memref<1x1x1x128xf32, #tpu.memory_space<vmem>>, vector<1x1x1x128xf32>
    %7 = vector.shape_cast %6 : vector<1x1x1x128xf32> to vector<1x128xf32>
    %c0_13 = arith.constant 0 : index
    %c0_14 = arith.constant 0 : index
    %c0_15 = arith.constant 0 : index
    %8 = vector.load %arg4[%c0_13, %c0_14, %c0_15] : memref<1x1x512xf32, #tpu.memory_space<vmem>>, vector<1x1x512xf32>
    %9 = vector.shape_cast %8 : vector<1x1x512xf32> to vector<1x512xf32>
    %10 = tpu.concatenate %7, %9 in 1 : vector<1x128xf32>, vector<1x512xf32> -> vector<1x640xf32>
    %c0_16 = arith.constant 0 : index
    %c0_17 = arith.constant 0 : index
    %11 = vector.load %arg6[%c0_16, %c0_17] : memref<64x1xf32, #tpu.memory_space<vmem>>, vector<64x1xf32>
    %12 = vector.broadcast %11 : vector<64x1xf32> to vector<64x640xf32>
    %13 = vector.broadcast %10 : vector<1x640xf32> to vector<64x640xf32>
    %14 = arith.mulf %12, %13 : vector<64x640xf32>
    %15 = math.tanh %14 : vector<64x640xf32>
    %16 = tpu.iota {dimensions = array<i32: 1>} : vector<1x640xi32>
    %c2_i32 = arith.constant 2 : i32
    %17 = vector.broadcast %c2_i32 : i32 to vector<1x640xi32>
    %18 = arith.cmpi sge, %16, %17 : vector<1x640xi32>
    %c2_i32_18 = arith.constant 2 : i32
    %19 = tpu.dynamic_rotate %15 by %c2_i32_18 dim 1 : vector<64x640xf32>, i32 -> vector<64x640xf32>
    %cst = arith.constant 0.000000e+00 : f32
    %20 = vector.shape_cast %18 : vector<1x640xi1> to vector<1x640xi1>
    %21 = vector.broadcast %20 : vector<1x640xi1> to vector<64x640xi1>
    %22 = vector.broadcast %cst : f32 to vector<64x640xf32>
    %23 = arith.select %21, %19, %22 : vector<64x640xi1>, vector<64x640xf32>
    %24 = arith.truncf %23 : vector<64x640xf32> to vector<64x640xbf16>
    %c0_19 = arith.constant 0 : index
    %c0_20 = arith.constant 0 : index
    %25 = vector.load %arg12[%c0_19, %c0_20] : memref<192x640xbf16, #tpu.memory_space<vmem>>, vector<64x640xbf16>
    tpu.vector_store %arg12[%c0_19, %c0_20], %24 {strides = array<i32>} : memref<192x640xbf16, #tpu.memory_space<vmem>>, vector<64x640xbf16>,
    %c1_i32 = arith.constant 1 : i32
    %26 = vector.broadcast %c1_i32 : i32 to vector<1x640xi32>
    %27 = arith.cmpi sge, %16, %26 : vector<1x640xi32>
    %c1_i32_21 = arith.constant 1 : i32
    %28 = tpu.dynamic_rotate %15 by %c1_i32_21 dim 1 : vector<64x640xf32>, i32 -> vector<64x640xf32>
    %cst_22 = arith.constant 0.000000e+00 : f32
    %29 = vector.shape_cast %27 : vector<1x640xi1> to vector<1x640xi1>
    %30 = vector.broadcast %29 : vector<1x640xi1> to vector<64x640xi1>
    %31 = vector.broadcast %cst_22 : f32 to vector<64x640xf32>
    %32 = arith.select %30, %28, %31 : vector<64x640xi1>, vector<64x640xf32>
    %33 = arith.truncf %32 : vector<64x640xf32> to vector<64x640xbf16>
    %c64 = arith.constant 64 : index
    %c0_23 = arith.constant 0 : index
    %34 = vector.load %arg12[%c64, %c0_23] : memref<192x640xbf16, #tpu.memory_space<vmem>>, vector<64x640xbf16>
    tpu.vector_store %arg12[%c64, %c0_23], %33 {strides = array<i32>} : memref<192x640xbf16, #tpu.memory_space<vmem>>, vector<64x640xbf16>,
    %35 = arith.truncf %15 : vector<64x640xf32> to vector<64x640xbf16>
    %c128_24 = arith.constant 128 : index
    %c0_25 = arith.constant 0 : index
    %36 = vector.load %arg12[%c128_24, %c0_25] : memref<192x640xbf16, #tpu.memory_space<vmem>>, vector<64x640xbf16>
    tpu.vector_store %arg12[%c128_24, %c0_25], %35 {strides = array<i32>} : memref<192x640xbf16, #tpu.memory_space<vmem>>, vector<64x640xbf16>,
    %c0_26 = arith.constant 0 : index
    %c0_27 = arith.constant 0 : index
    %c0_28 = arith.constant 0 : index
    %37 = vector.load %arg7[%c0_26, %c0_27, %c0_28] : memref<4x64x192xbf16, #tpu.memory_space<vmem>>, vector<1x64x192xbf16>
    %38 = vector.shape_cast %37 : vector<1x64x192xbf16> to vector<64x192xbf16>
    %c0_29 = arith.constant 0 : index
    %c0_30 = arith.constant 0 : index
    %39 = vector.load %arg12[%c0_29, %c0_30] : memref<192x640xbf16, #tpu.memory_space<vmem>>, vector<192x640xbf16>
    %cst_31 = arith.constant dense<0.000000e+00> : vector<64x640xf32>
    %40 = tpu.matmul %38, %39, %cst_31 {dimension_numbers = #tpu.dot_dimension_numbers<[1], [0], [0], [1], [0, 0, 1, 1], [], []>} : vector<64x192xbf16>, vector<192x640xbf16>, vector<64x640xf32> -> vector<64x640xf32>
    %41 = math.tanh %40 : vector<64x640xf32>
    %42 = arith.addf %41, %15 : vector<64x640xf32>
    %c0_32 = arith.constant 0 : index
    %c0_33 = arith.constant 0 : index
    %43 = vector.load %arg11[%c0_32, %c0_33] : memref<64x640xf32, #tpu.memory_space<vmem>>, vector<64x640xf32>
    %44 = arith.addf %42, %43 : vector<64x640xf32>
    %c4_i32 = arith.constant 4 : i32
    %45 = vector.broadcast %c4_i32 : i32 to vector<1x640xi32>
    %46 = arith.cmpi sge, %16, %45 : vector<1x640xi32>
    %c4_i32_34 = arith.constant 4 : i32
    %47 = tpu.dynamic_rotate %44 by %c4_i32_34 dim 1 : vector<64x640xf32>, i32 -> vector<64x640xf32>
    %cst_35 = arith.constant 0.000000e+00 : f32
    %48 = vector.shape_cast %46 : vector<1x640xi1> to vector<1x640xi1>
    %49 = vector.broadcast %48 : vector<1x640xi1> to vector<64x640xi1>
    %50 = vector.broadcast %cst_35 : f32 to vector<64x640xf32>
    %51 = arith.select %49, %47, %50 : vector<64x640xi1>, vector<64x640xf32>
    %52 = arith.truncf %51 : vector<64x640xf32> to vector<64x640xbf16>
    %c0_36 = arith.constant 0 : index
    %c0_37 = arith.constant 0 : index
    %53 = vector.load %arg12[%c0_36, %c0_37] : memref<192x640xbf16, #tpu.memory_space<vmem>>, vector<64x640xbf16>
    tpu.vector_store %arg12[%c0_36, %c0_37], %52 {strides = array<i32>} : memref<192x640xbf16, #tpu.memory_space<vmem>>, vector<64x640xbf16>,
    %c2_i32_38 = arith.constant 2 : i32
    %54 = vector.broadcast %c2_i32_38 : i32 to vector<1x640xi32>
    %55 = arith.cmpi sge, %16, %54 : vector<1x640xi32>
    %c2_i32_39 = arith.constant 2 : i32
    %56 = tpu.dynamic_rotate %44 by %c2_i32_39 dim 1 : vector<64x640xf32>, i32 -> vector<64x640xf32>
    %cst_40 = arith.constant 0.000000e+00 : f32
    %57 = vector.shape_cast %55 : vector<1x640xi1> to vector<1x640xi1>
    %58 = vector.broadcast %57 : vector<1x640xi1> to vector<64x640xi1>
    %59 = vector.broadcast %cst_40 : f32 to vector<64x640xf32>
    %60 = arith.select %58, %56, %59 : vector<64x640xi1>, vector<64x640xf32>
    %61 = arith.truncf %60 : vector<64x640xf32> to vector<64x640xbf16>
    %c64_41 = arith.constant 64 : index
    %c0_42 = arith.constant 0 : index
    %62 = vector.load %arg12[%c64_41, %c0_42] : memref<192x640xbf16, #tpu.memory_space<vmem>>, vector<64x640xbf16>
    tpu.vector_store %arg12[%c64_41, %c0_42], %61 {strides = array<i32>} : memref<192x640xbf16, #tpu.memory_space<vmem>>, vector<64x640xbf16>,
    %63 = arith.truncf %44 : vector<64x640xf32> to vector<64x640xbf16>
    %c128_43 = arith.constant 128 : index
    %c0_44 = arith.constant 0 : index
    %64 = vector.load %arg12[%c128_43, %c0_44] : memref<192x640xbf16, #tpu.memory_space<vmem>>, vector<64x640xbf16>
    tpu.vector_store %arg12[%c128_43, %c0_44], %63 {strides = array<i32>} : memref<192x640xbf16, #tpu.memory_space<vmem>>, vector<64x640xbf16>,
    %c1 = arith.constant 1 : index
    %c0_45 = arith.constant 0 : index
    %c0_46 = arith.constant 0 : index
    %65 = vector.load %arg7[%c1, %c0_45, %c0_46] : memref<4x64x192xbf16, #tpu.memory_space<vmem>>, vector<1x64x192xbf16>
    %66 = vector.shape_cast %65 : vector<1x64x192xbf16> to vector<64x192xbf16>
    %c0_47 = arith.constant 0 : index
    %c0_48 = arith.constant 0 : index
    %67 = vector.load %arg12[%c0_47, %c0_48] : memref<192x640xbf16, #tpu.memory_space<vmem>>, vector<192x640xbf16>
    %cst_49 = arith.constant dense<0.000000e+00> : vector<64x640xf32>
    %68 = tpu.matmul %66, %67, %cst_49 {dimension_numbers = #tpu.dot_dimension_numbers<[1], [0], [0], [1], [0, 0, 1, 1], [], []>} : vector<64x192xbf16>, vector<192x640xbf16>, vector<64x640xf32> -> vector<64x640xf32>
    %69 = math.tanh %68 : vector<64x640xf32>
    %70 = arith.addf %69, %44 : vector<64x640xf32>
    %c0_50 = arith.constant 0 : index
    %c0_51 = arith.constant 0 : index
    %71 = vector.load %arg11[%c0_50, %c0_51] : memref<64x640xf32, #tpu.memory_space<vmem>>, vector<64x640xf32>
    %72 = arith.addf %70, %71 : vector<64x640xf32>
    %c8_i32 = arith.constant 8 : i32
    %73 = vector.broadcast %c8_i32 : i32 to vector<1x640xi32>
    %74 = arith.cmpi sge, %16, %73 : vector<1x640xi32>
    %c8_i32_52 = arith.constant 8 : i32
    %75 = tpu.dynamic_rotate %72 by %c8_i32_52 dim 1 : vector<64x640xf32>, i32 -> vector<64x640xf32>
    %cst_53 = arith.constant 0.000000e+00 : f32
    %76 = vector.shape_cast %74 : vector<1x640xi1> to vector<1x640xi1>
    %77 = vector.broadcast %76 : vector<1x640xi1> to vector<64x640xi1>
    %78 = vector.broadcast %cst_53 : f32 to vector<64x640xf32>
    %79 = arith.select %77, %75, %78 : vector<64x640xi1>, vector<64x640xf32>
    %80 = arith.truncf %79 : vector<64x640xf32> to vector<64x640xbf16>
    %c0_54 = arith.constant 0 : index
    %c0_55 = arith.constant 0 : index
    %81 = vector.load %arg12[%c0_54, %c0_55] : memref<192x640xbf16, #tpu.memory_space<vmem>>, vector<64x640xbf16>
    tpu.vector_store %arg12[%c0_54, %c0_55], %80 {strides = array<i32>} : memref<192x640xbf16, #tpu.memory_space<vmem>>, vector<64x640xbf16>,
    %c4_i32_56 = arith.constant 4 : i32
    %82 = vector.broadcast %c4_i32_56 : i32 to vector<1x640xi32>
    %83 = arith.cmpi sge, %16, %82 : vector<1x640xi32>
    %c4_i32_57 = arith.constant 4 : i32
    %84 = tpu.dynamic_rotate %72 by %c4_i32_57 dim 1 : vector<64x640xf32>, i32 -> vector<64x640xf32>
    %cst_58 = arith.constant 0.000000e+00 : f32
    %85 = vector.shape_cast %83 : vector<1x640xi1> to vector<1x640xi1>
    %86 = vector.broadcast %85 : vector<1x640xi1> to vector<64x640xi1>
    %87 = vector.broadcast %cst_58 : f32 to vector<64x640xf32>
    %88 = arith.select %86, %84, %87 : vector<64x640xi1>, vector<64x640xf32>
    %89 = arith.truncf %88 : vector<64x640xf32> to vector<64x640xbf16>
    %c64_59 = arith.constant 64 : index
    %c0_60 = arith.constant 0 : index
    %90 = vector.load %arg12[%c64_59, %c0_60] : memref<192x640xbf16, #tpu.memory_space<vmem>>, vector<64x640xbf16>
    tpu.vector_store %arg12[%c64_59, %c0_60], %89 {strides = array<i32>} : memref<192x640xbf16, #tpu.memory_space<vmem>>, vector<64x640xbf16>,
    %91 = arith.truncf %72 : vector<64x640xf32> to vector<64x640xbf16>
    %c128_61 = arith.constant 128 : index
    %c0_62 = arith.constant 0 : index
    %92 = vector.load %arg12[%c128_61, %c0_62] : memref<192x640xbf16, #tpu.memory_space<vmem>>, vector<64x640xbf16>
    tpu.vector_store %arg12[%c128_61, %c0_62], %91 {strides = array<i32>} : memref<192x640xbf16, #tpu.memory_space<vmem>>, vector<64x640xbf16>,
    %c2 = arith.constant 2 : index
    %c0_63 = arith.constant 0 : index
    %c0_64 = arith.constant 0 : index
    %93 = vector.load %arg7[%c2, %c0_63, %c0_64] : memref<4x64x192xbf16, #tpu.memory_space<vmem>>, vector<1x64x192xbf16>
    %94 = vector.shape_cast %93 : vector<1x64x192xbf16> to vector<64x192xbf16>
    %c0_65 = arith.constant 0 : index
    %c0_66 = arith.constant 0 : index
    %95 = vector.load %arg12[%c0_65, %c0_66] : memref<192x640xbf16, #tpu.memory_space<vmem>>, vector<192x640xbf16>
    %cst_67 = arith.constant dense<0.000000e+00> : vector<64x640xf32>
    %96 = tpu.matmul %94, %95, %cst_67 {dimension_numbers = #tpu.dot_dimension_numbers<[1], [0], [0], [1], [0, 0, 1, 1], [], []>} : vector<64x192xbf16>, vector<192x640xbf16>, vector<64x640xf32> -> vector<64x640xf32>
    %97 = math.tanh %96 : vector<64x640xf32>
    %98 = arith.addf %97, %72 : vector<64x640xf32>
    %c0_68 = arith.constant 0 : index
    %c0_69 = arith.constant 0 : index
    %99 = vector.load %arg11[%c0_68, %c0_69] : memref<64x640xf32, #tpu.memory_space<vmem>>, vector<64x640xf32>
    %100 = arith.addf %98, %99 : vector<64x640xf32>
    %c16_i32 = arith.constant 16 : i32
    %101 = vector.broadcast %c16_i32 : i32 to vector<1x640xi32>
    %102 = arith.cmpi sge, %16, %101 : vector<1x640xi32>
    %c16_i32_70 = arith.constant 16 : i32
    %103 = tpu.dynamic_rotate %100 by %c16_i32_70 dim 1 : vector<64x640xf32>, i32 -> vector<64x640xf32>
    %cst_71 = arith.constant 0.000000e+00 : f32
    %104 = vector.shape_cast %102 : vector<1x640xi1> to vector<1x640xi1>
    %105 = vector.broadcast %104 : vector<1x640xi1> to vector<64x640xi1>
    %106 = vector.broadcast %cst_71 : f32 to vector<64x640xf32>
    %107 = arith.select %105, %103, %106 : vector<64x640xi1>, vector<64x640xf32>
    %108 = arith.truncf %107 : vector<64x640xf32> to vector<64x640xbf16>
    %c0_72 = arith.constant 0 : index
    %c0_73 = arith.constant 0 : index
    %109 = vector.load %arg12[%c0_72, %c0_73] : memref<192x640xbf16, #tpu.memory_space<vmem>>, vector<64x640xbf16>
    tpu.vector_store %arg12[%c0_72, %c0_73], %108 {strides = array<i32>} : memref<192x640xbf16, #tpu.memory_space<vmem>>, vector<64x640xbf16>,
    %c8_i32_74 = arith.constant 8 : i32
    %110 = vector.broadcast %c8_i32_74 : i32 to vector<1x640xi32>
    %111 = arith.cmpi sge, %16, %110 : vector<1x640xi32>
    %c8_i32_75 = arith.constant 8 : i32
    %112 = tpu.dynamic_rotate %100 by %c8_i32_75 dim 1 : vector<64x640xf32>, i32 -> vector<64x640xf32>
    %cst_76 = arith.constant 0.000000e+00 : f32
    %113 = vector.shape_cast %111 : vector<1x640xi1> to vector<1x640xi1>
    %114 = vector.broadcast %113 : vector<1x640xi1> to vector<64x640xi1>
    %115 = vector.broadcast %cst_76 : f32 to vector<64x640xf32>
    %116 = arith.select %114, %112, %115 : vector<64x640xi1>, vector<64x640xf32>
    %117 = arith.truncf %116 : vector<64x640xf32> to vector<64x640xbf16>
    %c64_77 = arith.constant 64 : index
    %c0_78 = arith.constant 0 : index
    %118 = vector.load %arg12[%c64_77, %c0_78] : memref<192x640xbf16, #tpu.memory_space<vmem>>, vector<64x640xbf16>
    tpu.vector_store %arg12[%c64_77, %c0_78], %117 {strides = array<i32>} : memref<192x640xbf16, #tpu.memory_space<vmem>>, vector<64x640xbf16>,
    %119 = arith.truncf %100 : vector<64x640xf32> to vector<64x640xbf16>
    %c128_79 = arith.constant 128 : index
    %c0_80 = arith.constant 0 : index
    %120 = vector.load %arg12[%c128_79, %c0_80] : memref<192x640xbf16, #tpu.memory_space<vmem>>, vector<64x640xbf16>
    tpu.vector_store %arg12[%c128_79, %c0_80], %119 {strides = array<i32>} : memref<192x640xbf16, #tpu.memory_space<vmem>>, vector<64x640xbf16>,
    %c3 = arith.constant 3 : index
    %c0_81 = arith.constant 0 : index
    %c0_82 = arith.constant 0 : index
    %121 = vector.load %arg7[%c3, %c0_81, %c0_82] : memref<4x64x192xbf16, #tpu.memory_space<vmem>>, vector<1x64x192xbf16>
    %122 = vector.shape_cast %121 : vector<1x64x192xbf16> to vector<64x192xbf16>
    %c0_83 = arith.constant 0 : index
    %c0_84 = arith.constant 0 : index
    %123 = vector.load %arg12[%c0_83, %c0_84] : memref<192x640xbf16, #tpu.memory_space<vmem>>, vector<192x640xbf16>
    %cst_85 = arith.constant dense<0.000000e+00> : vector<64x640xf32>
    %124 = tpu.matmul %122, %123, %cst_85 {dimension_numbers = #tpu.dot_dimension_numbers<[1], [0], [0], [1], [0, 0, 1, 1], [], []>} : vector<64x192xbf16>, vector<192x640xbf16>, vector<64x640xf32> -> vector<64x640xf32>
    %125 = math.tanh %124 : vector<64x640xf32>
    %126 = arith.addf %125, %100 : vector<64x640xf32>
    %c0_86 = arith.constant 0 : index
    %c0_87 = arith.constant 0 : index
    %127 = vector.load %arg11[%c0_86, %c0_87] : memref<64x640xf32, #tpu.memory_space<vmem>>, vector<64x640xf32>
    %128 = arith.addf %126, %127 : vector<64x640xf32>
    %129 = vector.extract_strided_slice %128 {offsets = [0, 128], sizes = [64, 512], strides = [1, 1]} : vector<64x640xf32> to vector<64x512xf32>
    %130 = arith.truncf %129 : vector<64x512xf32> to vector<64x512xbf16>
    %c0_88 = arith.constant 0 : index
    %c0_89 = arith.constant 0 : index
    %131 = vector.load %arg8[%c0_88, %c0_89] : memref<16x64xbf16, #tpu.memory_space<vmem>>, vector<16x64xbf16>
    %cst_90 = arith.constant dense<0.000000e+00> : vector<16x512xf32>
    %132 = tpu.matmul %131, %130, %cst_90 {dimension_numbers = #tpu.dot_dimension_numbers<[1], [0], [0], [1], [0, 0, 1, 1], [], []>} : vector<16x64xbf16>, vector<64x512xbf16>, vector<16x512xf32> -> vector<16x512xf32>
    %133 = math.tanh %132 : vector<16x512xf32>
    %c0_91 = arith.constant 0 : index
    %c0_92 = arith.constant 0 : index
    %134 = vector.load %arg9[%c0_91, %c0_92] : memref<16x1xf32, #tpu.memory_space<vmem>>, vector<16x1xf32>
    %135 = vector.broadcast %134 : vector<16x1xf32> to vector<16x512xf32>
    %136 = arith.mulf %135, %133 : vector<16x512xf32>
    %cst_93 = arith.constant dense<0.000000e+00> : vector<512xf32>
    %137 = vector.multi_reduction <add>, %136, %cst_93 [0] : vector<16x512xf32> to vector<512xf32>
    %138 = vector.shape_cast %137 : vector<512xf32> to vector<1x512xf32>
    %139 = math.tanh %138 : vector<1x512xf32>
    %c0_94 = arith.constant 0 : index
    %c0_95 = arith.constant 0 : index
    %c0_96 = arith.constant 0 : index
    %140 = vector.load %arg4[%c0_94, %c0_95, %c0_96] : memref<1x1x512xf32, #tpu.memory_space<vmem>>, vector<1x1x512xf32>
    %141 = vector.shape_cast %140 : vector<1x1x512xf32> to vector<1x512xf32>
    %142 = arith.addf %139, %141 : vector<1x512xf32>
    %c0_97 = arith.constant 0 : index
    %c0_98 = arith.constant 0 : index
    %c0_99 = arith.constant 0 : index
    %143 = vector.load %arg10[%c0_97, %c0_98, %c0_99] : memref<1x1x512xf32, #tpu.memory_space<vmem>>, vector<1x1x512xf32>
    %144 = vector.shape_cast %143 : vector<1x1x512xf32> to vector<1x512xf32>
    %145 = vector.shape_cast %142 : vector<1x512xf32> to vector<1x1x512xf32>
    tpu.vector_store %arg10[%c0_97, %c0_98, %c0_99], %145 {strides = array<i32>} : memref<1x1x512xf32, #tpu.memory_space<vmem>>, vector<1x1x512xf32>,
    return
  }
  func.func @transform_0(%arg0: i32, %arg1: i32) -> (i32, i32, i32, i32) {
    %c0_i32 = arith.constant 0 : i32
    %c0_i32_0 = arith.constant 0 : i32
    %c0_i32_1 = arith.constant 0 : i32
    return %arg0, %arg1, %c0_i32, %c0_i32_0 : i32, i32, i32, i32
  }
  func.func @transform_1(%arg0: i32, %arg1: i32) -> (i32, i32, i32, i32) {
    %c0_i32 = arith.constant 0 : i32
    %c0_i32_0 = arith.constant 0 : i32
    %c0_i32_1 = arith.constant 0 : i32
    return %arg0, %arg1, %c0_i32, %c0_i32_0 : i32, i32, i32, i32
  }
  func.func @transform_2(%arg0: i32, %arg1: i32) -> (i32, i32, i32) {
    %c0_i32 = arith.constant 0 : i32
    %c0_i32_0 = arith.constant 0 : i32
    return %arg0, %c0_i32, %arg1 : i32, i32, i32
  }
  func.func @transform_3(%arg0: i32, %arg1: i32) -> (i32, i32, i32) {
    %c0_i32 = arith.constant 0 : i32
    %c0_i32_0 = arith.constant 0 : i32
    return %arg0, %c0_i32, %arg1 : i32, i32, i32
  }
  func.func @transform_4(%arg0: i32, %arg1: i32) -> (i32, i32) {
    %c0_i32 = arith.constant 0 : i32
    %c0_i32_0 = arith.constant 0 : i32
    %c0_i32_1 = arith.constant 0 : i32
    return %c0_i32, %c0_i32_0 : i32, i32
  }
  func.func @transform_5(%arg0: i32, %arg1: i32) -> (i32, i32, i32) {
    %c0_i32 = arith.constant 0 : i32
    %c0_i32_0 = arith.constant 0 : i32
    %c0_i32_1 = arith.constant 0 : i32
    %c0_i32_2 = arith.constant 0 : i32
    return %c0_i32, %c0_i32_0, %c0_i32_1 : i32, i32, i32
  }
  func.func @transform_6(%arg0: i32, %arg1: i32) -> (i32, i32) {
    %c0_i32 = arith.constant 0 : i32
    %c0_i32_0 = arith.constant 0 : i32
    %c0_i32_1 = arith.constant 0 : i32
    return %c0_i32, %c0_i32_0 : i32, i32
  }
  func.func @transform_7(%arg0: i32, %arg1: i32) -> (i32, i32) {
    %c0_i32 = arith.constant 0 : i32
    %c0_i32_0 = arith.constant 0 : i32
    %c0_i32_1 = arith.constant 0 : i32
    return %c0_i32, %c0_i32_0 : i32, i32
  }
  func.func @transform_8(%arg0: i32, %arg1: i32) -> (i32, i32, i32) {
    %c0_i32 = arith.constant 0 : i32
    %c0_i32_0 = arith.constant 0 : i32
    return %arg0, %c0_i32, %arg1 : i32, i32, i32
  }
}

</mosaic_0001>

<bundles_post_ra>
// kernel: tpu_custom_call.1
= control target key start
LH: loop header
LB: loop body
LE: loop exit
PB: predicated region body
PF: predicated region fallthrough
CT: control target
= control target key end

     0   :  { %s14314_s0 = inlined_call_operand.vmem [shape: f32[2,2,1,128], index: 0, kind: input, shape index: {}]   ;;  %s14315_s1 = inlined_call_operand.hbm [shape: f32[2,2,64,128], index: 1, kind: input, shape index: {}]   ;;  %s14316_s2 = inlined_call_operand.vmem [shape: f32[2,1,1024], index: 2, kind: input, shape index: {}]   ;;  %s14317_s3 = inlined_call_operand.hbm [shape: f32[2,64,1024], index: 3, kind: input, shape index: {}]   ;;  %s14318_s4 = inlined_call_operand.vmem [shape: f32[64,1], index: 4, kind: input, shape index: {}]   ;;  %s14319_s5 = inlined_call_operand.hbm [shape: bf16[4,64,192], index: 5, kind: input, shape index: {}]   ;;  %s14320_s6 = inlined_call_operand.vmem [shape: bf16[16,64], index: 6, kind: input, shape index: {}]   ;;  %s14321_s7 = inlined_call_operand.vmem [shape: f32[16,1], index: 7, kind: input, shape index: {}]   ;;  %s14322_s8 = inlined_call_operand.hbm [shape: f32[2,1,1024], index: 8, kind: output, shape index: {}]  }
   0x1   :  { %14546 = sst [smem:[#allocation44_spill]] %s14314_s0 }
   0x2   :  { %14547 = sst [smem:[#allocation45_spill]] %s14315_s1 }
   0x3   :  { %14548 = sst [smem:[#allocation46_spill]] %s14316_s2 }
   0x4   :  { %14549 = sst [smem:[#allocation47_spill]] %s14319_s5 }
   0x5   :  { %14550 = sst [smem:[#allocation48_spill]] %s14320_s6 }
   0x6   :  { %14551 = sst [smem:[#allocation49_spill]] %s14321_s7 }
   0x7   :  { %14552 = sst [smem:[#allocation50_spill]] %s14322_s8 }
   0x8   :  { %13 = vsyncpa [#allocation5], 0 }
   0x9   :  { %15 = vsyncpa [#allocation5 + $0x1], 0 }
   0xa   :  { %16 = vsyncpa [#allocation8], 0 }
   0xb   :  { %18 = vsyncpa [#allocation8 + $0x1], 0 }
   0xc   :  { %19 = vsyncpa [#allocation6], 0 }
   0xd   :  { %21 = vsyncpa [#allocation6 + $0x1], 0  ;;  %s10522_s27 = smov 0   ;;  %s10524_s28 = smov 0  }
   0xe   :  { %s10526_s29 = smov 0   ;;  %s10528_s30 = smov 0  }
   0xf   :  { %s10530_s9 = smov 0   ;;  %s10532_s10 = smov 0  }
  0x10   :  { %s10534_s11 = smov 0   ;;  %s10536_s12 = smov 0  }
  0x11 LB: > { %14553 = sst [smem:[#allocation15_spill]] %s10431_s27  ;;  %s10563_s13 = sadd.s32 4294967295, %s10459_s12   ;;  %s10459_s12 = sphi %s10536_s12, %s27_s12   ;;  %s10455_s11 = sphi %s10534_s11, %s14942_s11   ;;  %s10451_s10 = sphi %s10532_s10, %s14941_s10   ;;  %s10447_s9 = sphi %s10530_s9, %s14940_s9   ;;  %s10443_s30 = sphi %s10528_s30, %s14939_s30   ;;  %s10439_s29 = sphi %s10526_s29, %s14938_s29   ;;  %s10435_s28 = sphi %s10524_s28, %s14937_s28   ;;  %s10431_s27 = sphi %s10522_s27, %s14936_s27  }
  0x12   : > { %s7515_s14 = sadd.s32 4294967294, %s10459_s12   ;;  %p89_p0 = scmp.ne.s32.totalorder %s10435_s28, %s10431_s27 }
  0x13   : > { %p90_p1 = scmp.eq.s32.totalorder %s10563_s13, 0  ;;  %p261_p3 = scmp.eq.s32.totalorder %s7515_s14, 3 }
  0x14   : > { %p7516_p5 = scmp.ge.s32.totalorder %s10459_s12, 1  ;;  %p268_p7 = scmp.lt.s32.totalorder %s10459_s12, 5 }
  0x15   : > { %p10572_p4 = por %p90_p1, %p89_p0  ;;  %p10577_p6 = por %p261_p3, %p89_p0 }
  0x16   : > { %p10582_p8 = pnand %p7516_p5, %p268_p7  ;;  %s10461_s18 = smov [#allocation9]  }
  0x17   : > { %s14555_s16 = scalar_select %p10577_p6, 1, 0 }
  0x18   : > { %s283_s19 = sshll.u32 %s10461_s18, 4  ;;  %p8451_p9 = pneg %p10582_p8  ;;  %s284_s19 = int_to_ptr.vmem [resolvable:$true] %s283_s19 }
  0x19   : > { %14556 = sst [smem:[#allocation16_spill]] %s14555_s16  ;;  %s10284_s20 = scalar_lea.vmem %s284_s19, 4096 }
  0x1a   : > { %p8452_p10 = pnand %p8451_p9, %p90_p1  ;;  %p10285_p12 = scmp.ne.s32.totalorder %s284_s19, %s10284_s20 }
  0x1b   : > { %p10292_p3 = scmp.lt.s32.totalorder %s284_s19, %s284_s19  ;;  %p10293_p2 = scmp.lt.s32.totalorder %s10284_s20, %s10284_s20 }
  0x1c   : > { %p10275_p11 = pneg %p8452_p10 }
  0x1d   : > { %p10294_p6 = por %p10293_p2, %p10292_p3 }
  0x1e   : > { %p10287_p13 = pnand %p10285_p12, %p10275_p11 }
  0x20   : > { %p10288_p0 = pneg %p10287_p13 }
  0x22   : > { %p10295_p5 = pnand %p10294_p6, %p10288_p0 }
  0x24   : > { %10298 = shalt.err (!%p10295_p5)
}
  0x25   : > { %s14323_s21 = smov 128   ;;  %s14324_s22 = smov 8  }
  0x26   : > { %s14558_s5 = sld [smem:[#allocation47_spill]]  ;;  %s36_s25 = sadd.s32 1, %s10451_s10 }
  0x27   : > { %p37_p2 = scmp.ge.s32.totalorder %s36_s25, 2  ;;  %s39_s26 = sadd.s32 1, %s10455_s11 }
  0x28   : > { %s76_s14 = sadd.s32 1, %s10439_s29  ;;  %p83_p6 = scmp.ne.s32.totalorder %s10439_s29, %s10435_s28 }
  0x29   : > { %s14944_s25 = smov (%p37_p2, %s36_s25), 0  ;;  %s14946_s26 = smov (!%p37_p2, %s39_s26), %s10455_s11 }
  0x2a   : > { %14559 = sst [smem:[#allocation17_spill]] %s14944_s25  ;;  %s72_s18 = ssub.s32 %s10451_s10, %s14944_s25 }
  0x2b   : > { %p84_p7 = scmp.eq.s32.totalorder %s10459_s12, 0  ;;  %p41_p9 = scmp.ge.s32.totalorder %s14946_s26, 2 }
  0x2c   : > { %8454 = dma.hbm_to_vmem [thread:$0]  (!%p8452_p10), %s14558_s5, 4096, %s284_s19, [#allocation8], %s14323_s21, %s14323_s21, %s14324_s22  }
  0x2d   : > { %p14560_p11 = scmp.eq.s32.totalorder %s10563_s13, 3  ;;  %p10613_p10 = por %p84_p7, %p83_p6 }
  0x2e   : > { %p8467_p13 = scmp.lt.s32.totalorder %s10459_s12, 4  ;;  %s14948_s26 = smov (%p41_p9, %s14946_s26), 0 }
  0x2f   : > { %p10609_p12 = por %p14560_p11, %p83_p6  ;;  %14564 = sst [smem:[#allocation19_spill]] %s14948_s26 }
  0x30   : > { %s10621_s23 = sand.u32 1, %s10439_s29   ;;  %s7520_s24 = sshll.u32 %s10451_s10, 3 }
  0x31   : > { %s14561_s20 = scalar_select %p10609_p12, 1, 0 }
  0x32   : > { %s71_s21 = ssub.s32 %s10455_s11, %s14948_s26  ;;  %s7519_s5 = sshll.u32 %s10621_s23, 6 }
  0x33   : > { %14562 = sst [smem:[#allocation18_spill]] %s14561_s20  ;;  %s73_s22 = sor.u32 %s72_s18, %s71_s21 }
  0x34   : > { %p74_p0 = scmp.eq.s32.totalorder %s73_s22, 0  ;;  %s7521_s25 = sshll.u32 %s10455_s11, 4 }
  0x35   : > { %s317_s16 = scalar_lea.vmem [#allocation4], %s7519_s5  ;;  %s323_s20 = sadd.s32 %s7521_s25, %s7520_s24 }
  0x36   : > { %s326_s27 = sshll.u32 %s317_s16, 4  ;;  %s7522_s6 = sshll.u32 %s323_s20, 7  ;;  %s327_s27 = int_to_ptr.vmem [resolvable:$true] %s326_s27 }
  0x37   : > { %s10629_s8 = scalar_select %p74_p0, %s10439_s29, %s76_s14  }
  0x38   : > { %p10635_p3 = pnand %p8467_p13, %p10613_p10  ;;  %s14567_s1 = sld [smem:[#allocation45_spill]] }
  0x39   : > { %14565 = sst [smem:[#allocation20_spill]] %s10629_s8  ;;  %s7523_s22 = sshll.u32 %s10621_s23, 8 }
  0x3a   : > { %s314_s5 = scalar_lea.sflag [#allocation5], %s10621_s23  ;;  %p10301_p5 = pneg %p10635_p3 }
  0x3b   : > { %s10312_s16 = scalar_lea.vmem %s327_s27, 1024  ;;  %s10464_s25 = smov [#allocation4]  }
  0x3c   : > { %p10313_p2 = scmp.ne.s32.totalorder %s327_s27, %s10312_s16  ;;  %s10317_s14 = sshll.u32 %s10464_s25, 4  ;;  %s10318_s14 = int_to_ptr.vmem [resolvable:$false] %s10317_s14 }
  0x3d   : > { %s10319_s18 = scalar_lea.vmem %s10318_s14, 2048  ;;  %p10320_p9 = scmp.lt.s32.totalorder %s327_s27, %s10318_s14 }
  0x3e   : > { %s325_s21 = scalar_lea.hbm %s14567_s1, %s7522_s6  ;;  %p10315_p6 = pnand %p10313_p2, %p10301_p5 }
  0x3f   : > { %p10321_p11 = scmp.lt.s32.totalorder %s10319_s18, %s10312_s16 }
  0x40   : > { %p10316_p7 = pneg %p10315_p6 }
  0x41   : > { %p10322_p10 = por %p10321_p11, %p10320_p9 }
  0x43   : > { %p10323_p13 = pnand %p10322_p10, %p10316_p7 }
  0x45   : > { %10326 = shalt.err (!%p10323_p13)
}
  0x46   : > { %s14568_s0 = smov 8   ;;  %s14569_s2 = smov 128  }
  0x47   : > { %8458 = dma.hbm_to_vmem [thread:$0]  (!%p10635_p3), %s325_s21, 1024, %s327_s27, %s314_s5, %s14569_s2, %s14569_s2, %s14568_s0  }
  0x48   : > { %s352_s6 = scalar_lea.vmem [#allocation7], %s7523_s22  ;;  %s348_s19 = sand.u32 1, %s10459_s12  }
  0x49   : > { %s361_s20 = sshll.u32 %s352_s6, 4  ;;  %s7524_s23 = sshll.u32 %s10451_s10, 2  ;;  %s362_s20 = int_to_ptr.vmem [resolvable:$true] %s361_s20 }
  0x4a   : > { %s7525_s24 = sshll.u32 %s10455_s11, 6  ;;  %s349_s26 = scalar_lea.sflag [#allocation8], %s348_s19 }
  0x4b   : > { %s358_s16 = sadd.s32 %s7525_s24, %s7524_s23  ;;  %s10340_s8 = scalar_lea.vmem %s362_s20, 4096 }
  0x4c   : > { %s7526_s25 = sshll.u32 %s358_s16, 7  ;;  %p10341_p0 = scmp.ne.s32.totalorder %s362_s20, %s10340_s8 }
  0x4d   : > { %s360_s1 = scalar_lea.hbm %s14317_s3, %s7526_s25  ;;  %s10465_s27 = smov [#allocation7]  }
  0x4e   : > { %p10343_p2 = pnand %p10341_p0, %p10301_p5  ;;  %s10345_s21 = sshll.u32 %s10465_s27, 4  ;;  %s10346_s21 = int_to_ptr.vmem [resolvable:$false] %s10345_s21 }
  0x4f   : > { %s10347_s22 = scalar_lea.vmem %s10346_s21, 8192  ;;  %p10348_p7 = scmp.lt.s32.totalorder %s362_s20, %s10346_s21 }
  0x50   : > { %p10344_p6 = pneg %p10343_p2  ;;  %p10349_p9 = scmp.lt.s32.totalorder %s10347_s22, %s10340_s8 }
  0x52   : > { %p10350_p11 = por %p10349_p9, %p10348_p7 }
  0x54   : > { %p10351_p10 = pnand %p10350_p11, %p10344_p6 }
  0x56   : > { %10354 = shalt.err (!%p10351_p10)
}
  0x57   : > { %s10466_s5 = smov 1024   ;;  %s10467_s0 = smov 512  }
  0x58   : > { %s10468_s2 = smov 32   ;;  %373 = sbr.rel (%p10582_p8) target bundleno = 2406 (0x966), region = 52 }
  0x59   : > { %8461 = dma.hbm_to_vmem [thread:$0]  (!%p10635_p3), %s360_s1, 4096, %s362_s20, %s349_s26, %s10466_s5, %s10467_s0, %s10468_s2  }
  0x5d   : > { %s10668_s6 = sand.u32 1, %s10435_s28  }
  0x5e   : > { %s7528_s19 = sshll.u32 %s10668_s6, 6  ;;  %s376_s8 = scalar_lea.sflag [#allocation5], %s10668_s6 }
  0x5f   : > { %s10672_s23 = scalar_lea.vmem [#allocation4], %s7528_s19 }
  0x60   : > { %10414 = dma.done.wait (%p10572_p4), %s376_s8, 1024  }
  0x61   : > { %10416 = vsyncadd (%p10572_p4), %s376_s8, 4294966272  ;;  %s384_s1 = sand.u32 1, %s10563_s13   ;;  %s7529_s7 = sshll.u32 %s10668_s6, 8 }
  0x62   : > { %s385_s17 = scalar_lea.sflag [#allocation8], %s384_s1  ;;  %s10680_s26 = scalar_lea.vmem [#allocation7], %s7529_s7 }
  0x63   : > { %10418 = dma.done.wait (%p10572_p4), %s385_s17, 4096  }
  0x64   : > { %10420 = vsyncadd (%p10572_p4), %s385_s17, 4294963200 }
  0x65   : > { %10422 = dma.done.wait (%p90_p1), [#allocation8], 4096  }
  0x66   : > { %10424 = vsyncadd (%p90_p1), [#allocation8], 4294963200  ;;  %v14339_v0 = vmov 0   ;;  %v573_v1 = vld [vmem:[%s14318_s4 + $0x30] sm:$0xff]  ;;  %v571_v2 = vld [vmem:[%s14318_s4 + $0x20] sm:$0xff]  ;;  %p445_p1 = scmp.lt.s32.totalorder %s10447_s9, 1  ;;  %v14333_v9 = vlaneseq }
  0x67   : > { %8548 = vset.pattern.permute.xlu1 %v14339_v0  ;;  %8547 = vset.pattern.permute.xlu0 %v14339_v0  ;;  %v574_v3 = vld [vmem:[%s14318_s4 + $0x38] sm:$0xff]  ;;  %v572_v4 = vld [vmem:[%s14318_s4 + $0x28] sm:$0xff]  ;;  %v569_v6 = vld [vmem:[%s14318_s4 + $0x10] sm:$0xff]  ;;  %s10718_s1 = sshll.u32 %s10443_s30, 2  ;;  %s14571_s15 = sld [smem:[#allocation46_spill]]  ;;  %vm1957_vm0 = vcmask 523264  }
  0x68   : > { %607 = vperm.xlu0 %8547, %v573_v1   ;;  %597 = vperm.xlu1 %8548, %v571_v2   ;;  %v570_v5 = vld [vmem:[%s14318_s4 + $0x18] sm:$0xff]  ;;  %v568_v7 = vld [vmem:[%s14318_s4 + $0x8] sm:$0xff]  ;;  %v567_v8 = vld [vmem:[%s14318_s4] sm:$0xff]  ;;  %p455_p4 = scmp.lt.s32.totalorder %s10718_s1, 7  ;;  %v10724_v10 = vshrl.u32 %v14333_v9, 7  ;;  %p447_p8 = scmp.lt.s32.totalorder %s10443_s30, 1 }
  0x69   : > { %s446_s7 = scalar_select %p445_p1, %s10447_s9, 1 }
  0x6a   : > { %s456_s17 = scalar_select %p455_p4, %s10718_s1, 7  ;;  %14570 = vst [vmem:[#allocation21_spill] sm:$0xff] %v10724_v10  ;;  %v14334_v11 = vsub.s32 3, %v10724_v10  ;;  %v10741_v14 = vsub.s32 0, %v10724_v10 }
  0x6b   : > { %s7534_s20 = sshll.u32 %s446_s7, 3  ;;  %s14950_s30 = smov (!%p447_p8, %s10443_s30), 1 }
  0x6c   : > { %612 = vperm.xlu0 %8547, %v574_v3   ;;  %602 = vperm.xlu1 %8548, %v572_v4   ;;  %s458_s24 = sadd.s32 %s7534_s20, %s456_s17  ;;  %s7532_s14 = sshll.u32 %s446_s7, 1  ;;  %14572 = vst [vmem:[#allocation22_spill] sm:$0xff] %v10741_v14 }
  0x6d   : > { %s10729_s13 = scalar_lea.vmem %s14571_s15, %s458_s24  ;;  %s450_s18 = sadd.s32 %s7532_s14, %s14950_s30 }
  0x6e   : > { %v10734_v12 = vld [vmem:[%s10729_s13] sm:$0xf]  ;;  %s14573_s22 = sld [smem:[#allocation44_spill]]  ;;  %s10470_s30 = smov 1  }
  0x6f   : > { %v562_v13 = vrot.slane %v10734_v12, %v14334_v11  ;;  %v550_v19 = vrot.slane %v10734_v12, %v10741_v14  ;;  %s10471_s0 = smov 2   ;;  %s10472_s2 = smov 4  }
  0x70   : > { %592 = vperm.xlu1 %8548, %v570_v5   ;;  %587 = vperm.xlu0 %8547, %v569_v6   ;;  %s10473_s19 = smov 8   ;;  %s14865_s17 = sld [smem:[#allocation49_spill]] }
  0x71   : > { %v10744_v15 = vrot.slane %v562_v13, %v10741_v14  ;;  %v10764_v23 = vrot.slane %v550_v19, %v10741_v14  ;;  %s14913_s15 = sld [smem:[#allocation48_spill]] }
  0x74   : > { %582 = vperm.xlu1 %8548, %v568_v7   ;;  %577 = vperm.xlu0 %8547, %v567_v8   ;;  %s451_s5 = scalar_lea.vmem %s14573_s22, %s450_s18 }
  0x75   : > { %v10753_v18 = vld [vmem:[%s451_s5] ss:$0 sm:$0xff] }
  0xe3   : > { %v10746_v16 = vpop.permute.xlu0 %607  ;;  %v10757_v20 = vpop.permute.xlu1 %597 }
  0xe4   : > { %v669_v17 = vmul.f32 %v10744_v15, %v10746_v16  ;;  %v665_v22 = vmul.f32 %v10753_v18, %v10746_v16  ;;  %v659_v24 = vmul.f32 %v10744_v15, %v10757_v20  ;;  %v666_v27 = vmul.f32 %v10764_v23, %v10746_v16 }
  0xe5   : > { %v655_v30 = vmul.f32 %v10753_v18, %v10757_v20  ;;  %v656_v32 = vmul.f32 %v10764_v23, %v10757_v20 }
  0xe6   : > { %9503 = vtanh.f32 %v669_v17 }
  0xe7   : > { %v10759_v21 = vpop.permute.xlu0 %612  ;;  %9505 = vtanh.f32 %v665_v22  ;;  %v10774_v28 = vpop.permute.xlu1 %602 }
  0xe8   : > { %v670_v25 = vmul.f32 %v10753_v18, %v10759_v21  ;;  %v671_v26 = vmul.f32 %v10764_v23, %v10759_v21  ;;  %9507 = vtanh.f32 %v659_v24  ;;  %v674_v29 = vmul.f32 %v10744_v15, %v10759_v21 }
  0xe9   : > { %v660_v31 = vmul.f32 %v10753_v18, %v10774_v28  ;;  %v664_v33 = vmul.f32 %v10744_v15, %v10774_v28  ;;  %v661_v34 = vmul.f32 %v10764_v23, %v10774_v28 }
  0xea   : > { %9509 = vtanh.f32 %v670_v25 }
  0xeb   : > { %9511 = vtanh.f32 %v671_v26  ;;  %v10788_v35 = vpop.permute.xlu1 %592  ;;  %v10792_v37 = vpop.permute.xlu0 %587 }
  0xec   : > { %9513 = vtanh.f32 %v666_v27  ;;  %v650_v39 = vmul.f32 %v10753_v18, %v10788_v35  ;;  %v654_v40 = vmul.f32 %v10744_v15, %v10788_v35  ;;  %v645_v42 = vmul.f32 %v10753_v18, %v10792_v37 }
  0xed   : > { %9515 = vtanh.f32 %v674_v29  ;;  %v651_v44 = vmul.f32 %v10764_v23, %v10788_v35  ;;  %v646_v46 = vmul.f32 %v10764_v23, %v10792_v37  ;;  %v649_v50 = vmul.f32 %v10744_v15, %v10792_v37 }
  0xee   : > { %9517 = vtanh.f32 %v655_v30 }
  0xef   : > { %9519 = vtanh.f32 %v660_v31  ;;  %v10824_v52 = vpop.permute.xlu1 %582  ;;  %v10832_v55 = vpop.permute.xlu0 %577  ;;  %v14335_v31 = vsub.s32 2, %v10724_v10 }
  0xf0   : > { %9521 = vtanh.f32 %v656_v32  ;;  %v640_v59 = vmul.f32 %v10753_v18, %v10824_v52  ;;  %v644_v60 = vmul.f32 %v10744_v15, %v10824_v52  ;;  %v635_v62 = vmul.f32 %v10753_v18, %v10832_v55 }
  0xf1   : > { %9523 = vtanh.f32 %v664_v33  ;;  %v641_v1 = vmul.f32 %v10764_v23, %v10824_v52  ;;  %v636_v4 = vmul.f32 %v10764_v23, %v10832_v55  ;;  %v639_v7 = vmul.f32 %v10744_v15, %v10832_v55 }
  0xf2   : > { %9525 = vtanh.f32 %v661_v34 }
  0xf3   : > { %v10790_v36 = vpop.eup %9503  ;;  %9527 = vtanh.f32 %v650_v39 }
  0xf4   : > { %14574 = vst [vmem:[#allocation23_spill] sm:$0xff] %v10790_v36  ;;  %v8221_v38 = vpack.c.bf16 %v10790_v36, %v10790_v36  ;;  %v10800_v41 = vpop.eup %9505  ;;  %9529 = vtanh.f32 %v654_v40 }
  0xf5   : > { %v10804_v43 = vpop.eup %9507  ;;  %9531 = vtanh.f32 %v645_v42  ;;  %v558_v42 = vrot.slane %v10734_v12, %v14335_v31 }
  0xf6   : > { %1525 = vst [vmem:[#allocation3 + $0x1c8] sm:$0xf] %v8221_v38  ;;  %14575 = vst [vmem:[#allocation24_spill] sm:$0xff] %v10804_v43  ;;  %v8215_v47 = vpack.c.bf16 %v10804_v43, %v10804_v43  ;;  %9533 = vtanh.f32 %v651_v44 }
  0xf7   : > { %v10808_v45 = vpop.eup %9509  ;;  %9535 = vtanh.f32 %v646_v46 }
  0xf8   : > { %14576 = vst [vmem:[#allocation25_spill] sm:$0xff] %v10808_v45  ;;  %v10816_v48 = vpack.i.bf16 %v10808_v45, %v10800_v41  ;;  %v10818_v49 = vpop.eup %9511  ;;  %1519 = vst [vmem:[#allocation3 + $0x1a0] sm:$0xf] %v8215_v47  ;;  %9537 = vtanh.f32 %v649_v50 }
  0xf9   : > { %14577 = vst [vmem:[#allocation26_spill] sm:$0xff] %v10818_v49  ;;  %v10822_v51 = vpop.eup %9513  ;;  %9539 = vtanh.f32 %v640_v59  ;;  %v630_v59 = vrot.slane %v558_v42, %v10741_v14 }
  0xfa   : > { %14578 = vst [vmem:[#allocation27_spill] sm:$0xff] %v10822_v51  ;;  %8550 = vrot.lane.b32.xlu0 %v10816_v48, %s10470_s30  ;;  %v10828_v53 = vpop.eup %9515  ;;  %v10840_v57 = vpack.i.bf16 %v10818_v49, %v10822_v51  ;;  %9541 = vtanh.f32 %v644_v60 }
  0xfb   : > { %14579 = vst [vmem:[#allocation28_spill] sm:$0xff] %v10828_v53  ;;  %v10830_v54 = vpop.eup %9517  ;;  %v10836_v56 = vpack.i.bf16 %v10828_v53, %v10790_v36  ;;  %v8224_v6 = vpack.c.bf16 %v10828_v53, %v10828_v53  ;;  %9543 = vtanh.f32 %v635_v62  ;;  %v668_v60 = vmul.f32 %v630_v59, %v10746_v16 }
  0xfc   : > { %v10842_v58 = vpop.eup %9519  ;;  %9545 = vtanh.f32 %v641_v1  ;;  %v658_v62 = vmul.f32 %v630_v59, %v10757_v20  ;;  %v673_v1 = vmul.f32 %v630_v59, %v10759_v21 }
  0xfd   : > { %8555 = vrot.lane.b32.xlu1 %v10836_v56, %s10470_s30  ;;  %v10852_v61 = vpop.eup %9521  ;;  %v10862_v2 = vpack.i.bf16 %v10842_v58, %v10830_v54  ;;  %1528 = vst [vmem:[#allocation3 + $0x1dc] sm:$0xf] %v8224_v6  ;;  %9547 = vtanh.f32 %v636_v4  ;;  %v663_v4 = vmul.f32 %v630_v59, %v10774_v28  ;;  %v14336_v6 = vsub.s32 1, %v10724_v10 }
  0xfe   : > { %8560 = vrot.lane.b32.xlu0 %v10840_v57, %s10470_s30  ;;  %v10856_v63 = vpop.eup %9523  ;;  %9549 = vtanh.f32 %v639_v7  ;;  %v653_v7 = vmul.f32 %v630_v59, %v10788_v35 }
  0xff   : > { %14580 = vst [vmem:[#allocation29_spill] sm:$0xff] %v10856_v63  ;;  %v10864_v3 = vpop.eup %9525  ;;  %v10870_v5 = vpack.i.bf16 %v10856_v63, %v10804_v43  ;;  %v8218_v8 = vpack.c.bf16 %v10856_v63, %v10856_v63  ;;  %9551 = vtanh.f32 %v668_v60 }
 0x100   : > { %v10882_v13 = vpop.eup %9527  ;;  %v8574_v17 = vpack.i.bf16 %v10864_v3, %v10852_v61  ;;  %9553 = vtanh.f32 %v658_v62 }
 0x101   : > { %8565 = vrot.lane.b32.xlu1 %v10862_v2, %s10470_s30  ;;  %v10886_v18 = vpop.eup %9529  ;;  %1522 = vst [vmem:[#allocation3 + $0x1b4] sm:$0xf] %v8218_v8  ;;  %v648_v8 = vmul.f32 %v630_v59, %v10792_v37  ;;  %9555 = vtanh.f32 %v673_v1 }
 0x102   : > { %8570 = vrot.lane.b32.xlu0 %v10870_v5, %s10470_s30  ;;  %14581 = vst [vmem:[#allocation30_spill] sm:$0xff] %v10886_v18  ;;  %v10888_v19 = vpop.eup %9531  ;;  %v8212_v15 = vpack.c.bf16 %v10886_v18, %v10886_v18  ;;  %9557 = vtanh.f32 %v663_v4 }
 0x103   : > { %v10893_v22 = vpop.eup %9533  ;;  %v8579_v23 = vpack.i.bf16 %v10882_v13, %v10888_v19  ;;  %9559 = vtanh.f32 %v653_v7 }
 0x104   : > { %v10897_v24 = vpop.eup %9535  ;;  %1516 = vst [vmem:[#allocation3 + $0x18c] sm:$0xf] %v8212_v15  ;;  %v554_v15 = vrot.slane %v10734_v12, %v14336_v6  ;;  %9561 = vtanh.f32 %v648_v8 }
 0x105   : > { %8575 = vrot.lane.b32.xlu1 %v8574_v17, %s10470_s30  ;;  %v10900_v25 = vpop.eup %9537  ;;  %v8589_v27 = vpack.i.bf16 %v10893_v22, %v10897_v24 }
 0x106   : > { %8580 = vrot.lane.b32.xlu0 %v8579_v23, %s10470_s30  ;;  %14582 = vst [vmem:[#allocation31_spill] sm:$0xff] %v10900_v25  ;;  %v8584_v26 = vpack.i.bf16 %v10886_v18, %v10900_v25  ;;  %v8209_v29 = vpack.c.bf16 %v10900_v25, %v10900_v25  ;;  %v10910_v30 = vpop.eup %9539 }
 0x107   : > { %14583 = vst [vmem:[#allocation32_spill] sm:$0xff] %v10910_v30  ;;  %v10913_v32 = vpop.eup %9541 }
 0x108   : > { %1513 = vst [vmem:[#allocation3 + $0x178] sm:$0xf] %v8209_v29  ;;  %14584 = vst [vmem:[#allocation33_spill] sm:$0xff] %v10913_v32  ;;  %v10915_v33 = vpop.eup %9543  ;;  %v8206_v34 = vpack.c.bf16 %v10913_v32, %v10913_v32 }
 0x109   : > { %8585 = vrot.lane.b32.xlu1 %v8584_v26, %s10470_s30  ;;  %14585 = vst [vmem:[#allocation34_spill] sm:$0xff] %v10915_v33  ;;  %v10919_v38 = vpop.eup %9545  ;;  %v8594_v39 = vpack.i.bf16 %v10910_v30, %v10915_v33 }
 0x10a   : > { %8590 = vrot.lane.b32.xlu0 %v8589_v27, %s10470_s30  ;;  %14586 = vst [vmem:[#allocation35_spill] sm:$0xff] %v10919_v38  ;;  %v10923_v40 = vpop.eup %9547  ;;  %1510 = vst [vmem:[#allocation3 + $0x164] sm:$0xf] %v8206_v34 }
 0x10b   : > { %14587 = vst [vmem:[#allocation36_spill] sm:$0xff] %v10923_v40  ;;  %v10929_v44 = vpop.eup %9549  ;;  %v8604_v47 = vpack.i.bf16 %v10919_v38, %v10923_v40 }
 0x10c   : > { %14588 = vst [vmem:[#allocation37_spill] sm:$0xff] %v10929_v44  ;;  %v8599_v46 = vpack.i.bf16 %v10913_v32, %v10929_v44  ;;  %v8203_v50 = vpack.c.bf16 %v10929_v44, %v10929_v44  ;;  %v10967_v29 = vpop.eup %9551 }
 0x10d   : > { %8595 = vrot.lane.b32.xlu1 %v8594_v39, %s10470_s30 }
 0x10e   : > { %8600 = vrot.lane.b32.xlu0 %v8599_v46, %s10470_s30  ;;  %1507 = vst [vmem:[#allocation3 + $0x150] sm:$0xf] %v8203_v50 }
 0x111   : > { %8605 = vrot.lane.b32.xlu1 %v8604_v47, %s10470_s30 }
 0x112   : > { %8610 = vrot.lane.b32.xlu0 %v10816_v48, %s10471_s0  ;;  %v643_v48 = vmul.f32 %v630_v59, %v10824_v52 }
 0x114   : > { %9563 = vtanh.f32 %v643_v48 }
 0x115   : > { %8615 = vrot.lane.b32.xlu1 %v10836_v56, %s10471_s0  ;;  %v638_v56 = vmul.f32 %v630_v59, %v10832_v55 }
 0x116   : > { %8620 = vrot.lane.b32.xlu0 %v10840_v57, %s10471_s0  ;;  %v626_v57 = vrot.slane %v554_v15, %v10741_v14 }
 0x117   : > { %9565 = vtanh.f32 %v638_v56 }
 0x118   : > { %v657_v12 = vmul.f32 %v626_v57, %v10757_v20  ;;  %v647_v20 = vmul.f32 %v626_v57, %v10792_v37 }
 0x119   : > { %8625 = vrot.lane.b32.xlu1 %v10862_v2, %s10471_s0  ;;  %v667_v2 = vmul.f32 %v626_v57, %v10746_v16  ;;  %v652_v16 = vmul.f32 %v626_v57, %v10788_v35 }
 0x11a   : > { %8630 = vrot.lane.b32.xlu0 %v10870_v5, %s10471_s0  ;;  %v10972_v5 = vpop.eup %9553 }
 0x11b   : > { %v10975_v34 = vpop.eup %9555  ;;  %9567 = vtanh.f32 %v667_v2  ;;  %v11049_v2 = vand.u32 127, %v14333_v9 }
 0x11c   : > { %v10978_v42 = vpop.eup %9557  ;;  %9569 = vtanh.f32 %v657_v12  ;;  %v8669_v35 = vpack.i.bf16 %v10975_v34, %v10967_v29 }
 0x11d   : > { %8635 = vrot.lane.b32.xlu1 %v8574_v17, %s10471_s0  ;;  %v672_v17 = vmul.f32 %v626_v57, %v10759_v21  ;;  %v642_v21 = vmul.f32 %v626_v57, %v10824_v52  ;;  %v8674_v37 = vpack.i.bf16 %v10978_v42, %v10972_v5  ;;  %vm1134_vm1 = vcmp.lt.s32.totalorder %v11049_v2, 1 }
 0x11e   : > { %8640 = vrot.lane.b32.xlu0 %v8579_v23, %s10471_s0  ;;  %v662_v23 = vmul.f32 %v626_v57, %v10774_v28  ;;  %vm1049_vm2 = vcmp.ge.s32.totalorder %v11049_v2, 1  ;;  %vm806_vm4 = vcmp.lt.s32.totalorder %v11049_v2, 2  ;;  %vm721_vm5 = vcmp.ge.s32.totalorder %v11049_v2, 2 }
 0x11f   : > { %9571 = vtanh.f32 %v672_v17  ;;  %vm11096_vm3 = vmpackc.low %vm1049_vm2, %vm1049_vm2  ;;  %vm2426_vm7 = vcmp.lt.s32.totalorder %v11049_v2, 4  ;;  %vm2341_vm8 = vcmp.ge.s32.totalorder %v11049_v2, 4  ;;  %vm4030_vm10 = vcmp.lt.s32.totalorder %v11049_v2, 8 }
 0x120   : > { %9573 = vtanh.f32 %v662_v23  ;;  %vm11219_vm6 = vmpackc.low %vm721_vm5, %vm721_vm5  ;;  %vm3945_vm11 = vcmp.ge.s32.totalorder %v11049_v2, 8  ;;  %vm5634_vm13 = vcmp.lt.s32.totalorder %v11049_v2, 16  ;;  %vm5549_vm14 = vcmp.ge.s32.totalorder %v11049_v2, 16 }
 0x121   : > { %8645 = vrot.lane.b32.xlu1 %v8584_v26, %s10471_s0  ;;  %v10981_v26 = vpop.eup %9559  ;;  %9575 = vtanh.f32 %v652_v16  ;;  %vm12168_vm9 = vmpackc.low %vm2341_vm8, %vm2341_vm8 }
 0x122   : > { %8650 = vrot.lane.b32.xlu0 %v8589_v27, %s10471_s0  ;;  %v10986_v27 = vpop.eup %9561  ;;  %9577 = vtanh.f32 %v647_v20  ;;  %vm13030_vm12 = vmpackc.low %vm3945_vm11, %vm3945_vm11 }
 0x123   : > { %v10989_v28 = vpop.eup %9563  ;;  %9579 = vtanh.f32 %v642_v21  ;;  %v8679_v52 = vpack.i.bf16 %v10981_v26, %v10986_v27  ;;  %vm13874_vm15 = vmpackc.low %vm5549_vm14, %vm5549_vm14 }
 0x124   : > { %14589 = vst [vmem:[#allocation38_spill] sm:$0xff] %v10989_v28  ;;  %v10996_v50 = vpop.eup %9565 }
 0x125   : > { %8655 = vrot.lane.b32.xlu1 %v8594_v39, %s10471_s0  ;;  %v637_v39 = vmul.f32 %v626_v57, %v10832_v55  ;;  %14590 = vst [vmem:[#allocation39_spill] sm:$0xff] %v10996_v50  ;;  %v8684_v55 = vpack.i.bf16 %v10989_v28, %v10996_v50  ;;  %v11038_v57 = vld [vmem:[#allocation9 + $0x4] ss:$8 sps:$4 sm:$0xff]  }
 0x126   : > { %8660 = vrot.lane.b32.xlu0 %v8599_v46, %s10471_s0  ;;  %7676 = vmatprep.mubr.msk.bf16.mxu0 %vm1957_vm0, %v11038_v57 }
 0x127   : > { %9581 = vtanh.f32 %v637_v39  ;;  %7680 = vmatprep.mubr.msk.bf16.mxu1 %vm1957_vm0, %v11038_v57 }
 0x128   : > { %v11006_v46 = vpop.eup %9567 }
 0x129   : > { %8665 = vrot.lane.b32.xlu1 %v8604_v47, %s10471_s0  ;;  %v11010_v47 = vpop.eup %9569 }
 0x12a   : > { %8670 = vrot.lane.b32.xlu0 %v8669_v35, %s10470_s30 }
 0x12c   : > { %v11012_v59 = vpop.eup %9571 }
 0x12d   : > { %8675 = vrot.lane.b32.xlu1 %v8674_v37, %s10470_s30  ;;  %v11014_v60 = vpop.eup %9573  ;;  %v8709_v7 = vpack.i.bf16 %v11012_v59, %v11006_v46 }
 0x12e   : > { %8680 = vrot.lane.b32.xlu0 %v8679_v52, %s10470_s30  ;;  %v11016_v62 = vpop.eup %9575  ;;  %v8714_v8 = vpack.i.bf16 %v11014_v60, %v11010_v47 }
 0x12f   : > { %14591 = vst [vmem:[#allocation40_spill] sm:$0xff] %v11016_v62  ;;  %v11020_v1 = vpop.eup %9577 }
 0x130   : > { %v11022_v4 = vpop.eup %9579  ;;  %v8719_v56 = vpack.i.bf16 %v11016_v62, %v11020_v1 }
 0x131   : > { %8685 = vrot.lane.b32.xlu1 %v8684_v55, %s10470_s30  ;;  %14592 = vst [vmem:[#allocation41_spill] sm:$0xff] %v11022_v4 }
 0x132   : > { %8690 = vrot.lane.b32.xlu0 %v8669_v35, %s10471_s0 }
 0x134   : > { %v11028_v48 = vpop.eup %9581 }
 0x135   : > { %8695 = vrot.lane.b32.xlu1 %v8674_v37, %s10471_s0  ;;  %14593 = vst [vmem:[#allocation42_spill] sm:$0xff] %v11028_v48  ;;  %v8724_v15 = vpack.i.bf16 %v11022_v4, %v11028_v48 }
 0x136   : > { %8700 = vrot.lane.b32.xlu0 %v8679_v52, %s10471_s0 }
 0x139   : > { %8705 = vrot.lane.b32.xlu1 %v8684_v55, %s10471_s0 }
 0x13a   : > { %8710 = vrot.lane.b32.xlu0 %v8709_v7, %s10470_s30 }
 0x13d   : > { %8715 = vrot.lane.b32.xlu1 %v8714_v8, %s10470_s30 }
 0x13e   : > { %8720 = vrot.lane.b32.xlu0 %v8719_v56, %s10470_s30 }
 0x141   : > { %8725 = vrot.lane.b32.xlu1 %v8724_v15, %s10470_s30  ;;  %s14928_s30 = sld [smem:[#allocation50_spill]] }
 0x142   : > { %8730 = vrot.lane.b32.xlu0 %v8709_v7, %s10471_s0 }
 0x145   : > { %8735 = vrot.lane.b32.xlu1 %v8714_v8, %s10471_s0 }
 0x146   : > { %8740 = vrot.lane.b32.xlu0 %v8719_v56, %s10471_s0 }
 0x149   : > { %8745 = vrot.lane.b32.xlu1 %v8724_v15, %s10471_s0 }
 0x16c   : > { %v8551_v12 = vpop.permute.xlu0 %8550 }
 0x16d   : > { %v8553_v17 = vunpack.i.h.bf16 %v8551_v12  ;;  %v8552_v23 = vunpack.i.l.bf16 %v8551_v12 }
 0x16f   : > { %v11052_v16 = vpop.permute.xlu1 %8555 }
 0x170   : > { %v11055_v20 = vpop.permute.xlu0 %8560  ;;  %v14344_v21 = vunpack.i.h.bf16 %v11052_v16  ;;  %v14343_v39 = vunpack.i.l.bf16 %v11052_v16  ;;  %v14600_v28 = vunpack.i.l.bf16 %v11052_v16 }
 0x171   : > { %v14338_v35 = vunpack.i.h.bf16 %v11055_v20  ;;  %v14337_v37 = vunpack.i.l.bf16 %v11055_v20 }
 0x172   : > { %v1174_v52 = vsel %vm1134_vm1, %v14344_v21, %v8553_v17  ;;  %v1173_v55 = vsel %vm1134_vm1, %v14343_v39, %v8552_v23 }
 0x173   : > { %v1165_v7 = vsel %vm1134_vm1, %v8552_v23, %v14337_v37  ;;  %v1166_v8 = vsel %vm1134_vm1, %v8553_v17, %v14338_v35  ;;  %v8566_v56 = vpop.permute.xlu1 %8565 }
 0x174   : > { %v11077_v15 = vpop.permute.xlu0 %8570  ;;  %v8568_v12 = vunpack.i.h.bf16 %v8566_v56  ;;  %v8567_v9 = vunpack.i.l.bf16 %v8566_v56  ;;  %v10023_v6 = vpack.c.bf16 %v1166_v8, %v1165_v7  ;;  %v10026_v8 = vpack.c.bf16 %v1174_v52, %v1173_v55 }
 0x175   : > { %v14342_v11 = vunpack.i.h.bf16 %v11077_v15  ;;  %v14341_v31 = vunpack.i.l.bf16 %v11077_v15  ;;  %v14602_v50 = vunpack.i.h.bf16 %v11077_v15  ;;  %v14604_v62 = vunpack.i.l.bf16 %v11077_v15 }
 0x176   : > { %1970 = vmatprep.subr.bf16.mxu0 %v10023_v6 }
 0x177   : > { %v1171_v23 = vsel %vm1134_vm1, %v14341_v31, %v8567_v9  ;;  %v1172_v17 = vsel %vm1134_vm1, %v14342_v11, %v8568_v12  ;;  %v11089_v37 = vpop.permute.xlu1 %8575  ;;  %10027 = vmatpush1.bf16.msk.msra.mxu0 %vm11096_vm3, %v10026_v8 }
 0x178   : > { %v14349_v35 = vunpack.i.h.bf16 %v11089_v37  ;;  %v14348_v56 = vunpack.i.l.bf16 %v11089_v37  ;;  %v8581_v31 = vpop.permute.xlu0 %8580 }
 0x179   : > { %v8583_v11 = vunpack.i.h.bf16 %v8581_v31  ;;  %v8582_v39 = vunpack.i.l.bf16 %v8581_v31 }
 0x17a   : > { %v1163_v0 = vsel %vm1134_vm1, %v8567_v9, %v14348_v56  ;;  %v1164_v6 = vsel %vm1134_vm1, %v8568_v12, %v14349_v35  ;;  %v10031_v56 = vpack.c.bf16 %v1172_v17, %v1171_v23 }
 0x17b   : > { %v10028_v21 = vpack.c.bf16 %v1164_v6, %v1163_v0  ;;  %v11110_v14 = vpop.permute.xlu1 %8585 }
 0x17c   : > { %v11112_v52 = vpop.permute.xlu0 %8590  ;;  %v14350_v55 = vunpack.i.h.bf16 %v11110_v14  ;;  %v14351_v8 = vunpack.i.l.bf16 %v11110_v14 }
 0x17d   : > { %v14354_v10 = vunpack.i.h.bf16 %v11112_v52  ;;  %v14352_v9 = vunpack.i.l.bf16 %v11112_v52  ;;  %1972 = vmatprep.subr.bf16.mxu0 %v10028_v21 }
 0x17e   : > { %10032 = vmatpush1.bf16.msk.msra.mxu0 %vm11096_vm3, %v10031_v56  ;;  %v1170_v0 = vsel %vm1134_vm1, %v14350_v55, %v8583_v11  ;;  %v1169_v31 = vsel %vm1134_vm1, %v14351_v8, %v8582_v39 }
 0x17f   : > { %v1161_v12 = vsel %vm1134_vm1, %v8582_v39, %v14352_v9  ;;  %v1162_v21 = vsel %vm1134_vm1, %v8583_v11, %v14354_v10  ;;  %v8596_v23 = vpop.permute.xlu1 %8595  ;;  %v10036_v8 = vpack.c.bf16 %v1170_v0, %v1169_v31 }
 0x180   : > { %v10033_v17 = vpack.c.bf16 %v1162_v21, %v1161_v12  ;;  %v8598_v56 = vunpack.i.h.bf16 %v8596_v23  ;;  %v8597_v6 = vunpack.i.l.bf16 %v8596_v23  ;;  %v11136_v35 = vpop.permute.xlu0 %8600 }
 0x181   : > { %v14356_v39 = vunpack.i.h.bf16 %v11136_v35  ;;  %v14355_v9 = vunpack.i.l.bf16 %v11136_v35 }
 0x182   : > { %1974 = vmatprep.subr.bf16.mxu0 %v10033_v17 }
 0x183   : > { %v11138_v55 = vpop.permute.xlu1 %8605  ;;  %10037 = vmatpush1.bf16.msk.msra.mxu0 %vm11096_vm3, %v10036_v8  ;;  %v1167_v12 = vsel %vm1134_vm1, %v14355_v9, %v8597_v6  ;;  %v1168_v0 = vsel %vm1134_vm1, %v14356_v39, %v8598_v56 }
 0x184   : > { %v14358_v53 = vunpack.i.h.bf16 %v11138_v55  ;;  %v14359_v11 = vunpack.i.l.bf16 %v11138_v55  ;;  %v8611_v21 = vpop.permute.xlu0 %8610 }
 0x185   : > { %v8613_v17 = vunpack.i.h.bf16 %v8611_v21  ;;  %v8612_v10 = vunpack.i.l.bf16 %v8611_v21 }
 0x186   : > { %v1159_v8 = vsel %vm1134_vm1, %v8597_v6, %v14359_v11  ;;  %v1160_v31 = vsel %vm1134_vm1, %v8598_v56, %v14358_v53 }
 0x187   : > { %v11163_v23 = vpop.permute.xlu1 %8615  ;;  %v10038_v36 = vpack.c.bf16 %v1160_v31, %v1159_v8  ;;  %v10041_v8 = vpack.c.bf16 %v1168_v0, %v1167_v12 }
 0x188   : > { %v14361_v9 = vunpack.i.h.bf16 %v11163_v23  ;;  %v14362_v39 = vunpack.i.l.bf16 %v11163_v23  ;;  %v11176_v53 = vpop.permute.xlu0 %8620 }
 0x189   : > { %v14366_v11 = vunpack.i.h.bf16 %v11176_v53  ;;  %v14367_v63 = vunpack.i.l.bf16 %v11176_v53  ;;  %1976 = vmatprep.subr.bf16.mxu0 %v10038_v36 }
 0x18a   : > { %v846_v6 = vsel %vm806_vm4, %v14361_v9, %v8613_v17  ;;  %v845_v56 = vsel %vm806_vm4, %v14362_v39, %v8612_v10  ;;  %10042 = vmatpush1.bf16.msk.msra.mxu0 %vm11096_vm3, %v10041_v8 }
 0x18b   : > { %v8626_v21 = vpop.permute.xlu1 %8625  ;;  %v837_v31 = vsel %vm806_vm4, %v8612_v10, %v14367_v63  ;;  %v838_v9 = vsel %vm806_vm4, %v8613_v17, %v14366_v11  ;;  %v10046_v32 = vpack.c.bf16 %v846_v6, %v845_v56 }
 0x18c   : > { %v8628_v39 = vunpack.i.h.bf16 %v8626_v21  ;;  %v8627_v43 = vunpack.i.l.bf16 %v8626_v21  ;;  %v11190_v18 = vpop.permute.xlu0 %8630  ;;  %v10043_v10 = vpack.c.bf16 %v838_v9, %v837_v31 }
 0x18d   : > { %v14369_v36 = vunpack.i.h.bf16 %v11190_v18  ;;  %v14368_v7 = vunpack.i.l.bf16 %v11190_v18 }
 0x18e   : > { %1978 = vmatprep.subr.bf16.mxu0 %v10043_v10 }
 0x18f   : > { %v11192_v25 = vpop.permute.xlu1 %8635  ;;  %v843_v17 = vsel %vm806_vm4, %v14368_v7, %v8627_v43  ;;  %v844_v21 = vsel %vm806_vm4, %v14369_v36, %v8628_v39  ;;  %v14596_v36 = vmov 0  ;;  %10047 = vmatpush1.bf16.msk.msra.mxu0 %vm11219_vm6, %v10046_v32 }
 0x190   : > { %v14371_v12 = vunpack.i.h.bf16 %v11192_v25  ;;  %v14372_v0 = vunpack.i.l.bf16 %v11192_v25  ;;  %v8641_v31 = vpop.permute.xlu0 %8640  ;;  %v14597_v36 = vsel %vm11219_vm6, 4294967295, %v14596_v36  ;;  %v10051_v44 = vpack.c.bf16 %v844_v21, %v843_v17 }
 0x191   : > { %v8643_v63 = vunpack.i.h.bf16 %v8641_v31  ;;  %v8642_v7 = vunpack.i.l.bf16 %v8641_v31  ;;  %14598 = vst [vmem:[#allocation43_spill] sm:$0xff] %v14597_v36 }
 0x192   : > { %v835_v8 = vsel %vm806_vm4, %v8627_v43, %v14372_v0  ;;  %v836_v9 = vsel %vm806_vm4, %v8628_v39, %v14371_v12 }
 0x193   : > { %v11214_v11 = vpop.permute.xlu1 %8645  ;;  %v10048_v12 = vpack.c.bf16 %v836_v9, %v835_v8 }
 0x194   : > { %v14374_v43 = vunpack.i.h.bf16 %v11214_v11  ;;  %v14375_v39 = vunpack.i.l.bf16 %v11214_v11  ;;  %v11235_v0 = vpop.permute.xlu0 %8650 }
 0x195   : > { %v14380_v32 = vunpack.i.h.bf16 %v11235_v0  ;;  %v14381_v56 = vunpack.i.l.bf16 %v11235_v0  ;;  %1980 = vmatprep.subr.bf16.mxu0 %v10048_v12 }
 0x196   : > { %v842_v10 = vsel %vm806_vm4, %v14374_v43, %v8643_v63  ;;  %v841_v31 = vsel %vm806_vm4, %v14375_v39, %v8642_v7  ;;  %10052 = vmatpush1.bf16.msk.msra.mxu0 %vm11219_vm6, %v10051_v44 }
 0x197   : > { %v8656_v6 = vpop.permute.xlu1 %8655  ;;  %v833_v8 = vsel %vm806_vm4, %v8642_v7, %v14381_v56  ;;  %v834_v9 = vsel %vm806_vm4, %v8643_v63, %v14380_v32 }
 0x198   : > { %v8658_v43 = vunpack.i.h.bf16 %v8656_v6  ;;  %v8657_v39 = vunpack.i.l.bf16 %v8656_v6  ;;  %v11249_v4 = vpop.permute.xlu0 %8660  ;;  %v10053_v7 = vpack.c.bf16 %v834_v9, %v833_v8 }
 0x199   : > { %v14385_v12 = vunpack.i.h.bf16 %v11249_v4  ;;  %v14382_v44 = vunpack.i.l.bf16 %v11249_v4 }
 0x19a   : > { %1982 = vmatprep.subr.bf16.mxu0 %v10053_v7 }
 0x19b   : > { %v11251_v48 = vpop.permute.xlu1 %8665  ;;  %v839_v63 = vsel %vm806_vm4, %v14382_v44, %v8657_v39  ;;  %v840_v6 = vsel %vm806_vm4, %v14385_v12, %v8658_v43  ;;  %v10056_v12 = vpack.c.bf16 %v842_v10, %v841_v31 }
 0x19c   : > { %v14387_v17 = vunpack.i.h.bf16 %v11251_v48  ;;  %v14386_v21 = vunpack.i.l.bf16 %v11251_v48  ;;  %v11273_v9 = vpop.permute.xlu0 %8670  ;;  %v10062_v15 = vpack.c.bf16 %v840_v6, %v839_v63  ;;  %v10064_v63 = vpack.c.bf16 %v10808_v45, %v10800_v41 }
 0x19d   : > { %v14394_v44 = vunpack.i.h.bf16 %v11273_v9  ;;  %10057 = vmatpush1.bf16.msk.msra.mxu0 %vm11219_vm6, %v10056_v12  ;;  %v14601_v10 = vunpack.i.l.bf16 %v11273_v9  ;;  %v10065_v6 = vpack.c.bf16 %v10864_v3, %v10852_v61 }
 0x19e   : > { %v831_v32 = vsel %vm806_vm4, %v8657_v39, %v14386_v21  ;;  %v832_v8 = vsel %vm806_vm4, %v8658_v43, %v14387_v17  ;;  %v10058_v43 = vpack.c.bf16 %v10818_v49, %v10822_v51  ;;  %v14599_v17 = vunpack.i.h.bf16 %v11052_v16 }
 0x19f   : > { %v11275_v56 = vpop.permute.xlu1 %8675  ;;  %v1141_v31 = vsel %vm1134_vm1, %v14601_v10, %v14600_v28  ;;  %v10059_v12 = vpack.c.bf16 %v832_v8, %v831_v32 }
 0x1a0   : > { %v1142_v7 = vsel %vm1134_vm1, %v14394_v44, %v14599_v17  ;;  %v8197_v21 = vpack.c.bf16 %v1141_v31, %v1141_v31  ;;  %v14603_v49 = vunpack.i.h.bf16 %v11275_v56  ;;  %v14605_v17 = vunpack.i.l.bf16 %v11275_v56  ;;  %v11309_v44 = vpop.permute.xlu0 %8680 }
 0x1a1   : > { %v8200_v39 = vpack.c.bf16 %v1142_v7, %v1142_v7  ;;  %v14405_v7 = vunpack.i.h.bf16 %v11309_v44  ;;  %v14406_v10 = vunpack.i.l.bf16 %v11309_v44  ;;  %1984 = vmatprep.subr.bf16.mxu0 %v10059_v12 }
 0x1a2   : > { %v1140_v51 = vsel %vm1134_vm1, %v14603_v49, %v14602_v50  ;;  %v1139_v16 = vsel %vm1134_vm1, %v14605_v17, %v14604_v62  ;;  %1373 = vst [vmem:[#allocation3 + $0x128] sm:$0xf] %v8197_v21  ;;  %10063 = vmatpush1.bf16.msk.msra.mxu0 %vm11219_vm6, %v10062_v15  ;;  %v14608_v17 = vunpack.i.h.bf16 %v11136_v35 }
 0x1a3   : > { %v11311_v28 = vpop.permute.xlu1 %8685  ;;  %v8194_v32 = vpack.c.bf16 %v1140_v51, %v1140_v51  ;;  %v8191_v8 = vpack.c.bf16 %v1139_v16, %v1139_v16  ;;  %1376 = vst [vmem:[#allocation3 + $0x13c] sm:$0xf] %v8200_v39  ;;  %v14606_v51 = vunpack.i.h.bf16 %v11110_v14  ;;  %v14607_v39 = vunpack.i.l.bf16 %v11110_v14  ;;  %1994 = vmatprep.subr.bf16.mxu0 %v10058_v43 }
 0x1a4   : > { %v14395_v49 = vunpack.i.h.bf16 %v11311_v28  ;;  %v14396_v50 = vunpack.i.l.bf16 %v11311_v28  ;;  %v14609_v16 = vunpack.i.l.bf16 %v11136_v35 }
 0x1a5   : > { %1370 = vst [vmem:[#allocation3 + $0x114] sm:$0xf] %v8194_v32  ;;  %1367 = vst [vmem:[#allocation3 + $0x100] sm:$0xf] %v8191_v8  ;;  %v1138_v62 = vsel %vm1134_vm1, %v14405_v7, %v14606_v51  ;;  %v1137_v21 = vsel %vm1134_vm1, %v14406_v10, %v14607_v39  ;;  %v11347_v32 = vpop.permute.xlu0 %8690  ;;  %v14620_v7 = vunpack.i.l.bf16 %v11273_v9  ;;  %v14622_v10 = vunpack.i.l.bf16 %v11055_v20 }
 0x1a6   : > { %v8188_v31 = vpack.c.bf16 %v1138_v62, %v1138_v62  ;;  %v8185_v12 = vpack.c.bf16 %v1137_v21, %v1137_v21  ;;  %v1136_v14 = vsel %vm1134_vm1, %v14395_v49, %v14608_v17  ;;  %v1135_v43 = vsel %vm1134_vm1, %v14396_v50, %v14609_v16  ;;  %1995 = vmatpush2.bf16.msra.mxu0 %v10064_v63 }
 0x1a7   : > { %v11349_v8 = vpop.permute.xlu1 %8695  ;;  %v8182_v15 = vpack.c.bf16 %v1136_v14, %v1136_v14  ;;  %v8179_v51 = vpack.c.bf16 %v1135_v43, %v1135_v43  ;;  %v14397_v62 = vunpack.i.h.bf16 %v11347_v32  ;;  %v14404_v39 = vunpack.i.l.bf16 %v11347_v32  ;;  %1996 = vmatprep.subr.bf16.mxu0 %v10065_v6 }
 0x1a8   : > { %1364 = vst [vmem:[#allocation3 + $0xec] sm:$0xf] %v8188_v31  ;;  %1361 = vst [vmem:[#allocation3 + $0xd8] sm:$0xf] %v8185_v12  ;;  %v14400_v21 = vunpack.i.h.bf16 %v11349_v8  ;;  %v14403_v35 = vunpack.i.l.bf16 %v11349_v8  ;;  %v10066_v17 = vpack.c.bf16 %v10842_v58, %v10830_v54  ;;  %v10067_v16 = vpack.c.bf16 %v10893_v22, %v10897_v24 }
 0x1a9   : > { %1358 = vst [vmem:[#allocation3 + $0xc4] sm:$0xf] %v8182_v15  ;;  %1355 = vst [vmem:[#allocation3 + $0xb0] sm:$0xf] %v8179_v51  ;;  %v14610_v14 = vunpack.i.l.bf16 %v11163_v23  ;;  %v14611_v12 = vunpack.i.h.bf16 %v11163_v23  ;;  %v14612_v15 = vunpack.i.h.bf16 %v11190_v18  ;;  %v14613_v50 = vunpack.i.l.bf16 %v11190_v18 }
 0x1aa   : > { %1997 = vmatpush2.bf16.msra.mxu0 %v10066_v17  ;;  %v10068_v17 = vpack.c.bf16 %v10882_v13, %v10888_v19 }
 0x1ab   : > { %v813_v31 = vsel %vm806_vm4, %v14404_v39, %v14610_v14  ;;  %v814_v63 = vsel %vm806_vm4, %v14397_v62, %v14611_v12  ;;  %v812_v51 = vsel %vm806_vm4, %v14400_v21, %v14612_v15  ;;  %v811_v23 = vsel %vm806_vm4, %v14403_v35, %v14613_v50  ;;  %v11383_v14 = vpop.permute.xlu0 %8700  ;;  %v11385_v12 = vpop.permute.xlu1 %8705  ;;  %1998 = vmatprep.subr.bf16.mxu0 %v10067_v16  ;;  %v11421_v35 = vld [vmem:[#allocation9] ss:$8 sps:$4 sm:$0xff]  }
 0x1ac   : > { %v8173_v43 = vpack.c.bf16 %v813_v31, %v813_v31  ;;  %v8176_v49 = vpack.c.bf16 %v814_v63, %v814_v63  ;;  %v8170_v6 = vpack.c.bf16 %v812_v51, %v812_v51  ;;  %v8167_v31 = vpack.c.bf16 %v811_v23, %v811_v23 }
 0x1ad   : > { %v14398_v63 = vunpack.i.h.bf16 %v11383_v14  ;;  %v14399_v62 = vunpack.i.l.bf16 %v11383_v14  ;;  %v14401_v15 = vunpack.i.h.bf16 %v11385_v12  ;;  %v14402_v18 = vunpack.i.l.bf16 %v11385_v12 }
 0x1ae   : > { %1045 = vst [vmem:[#allocation3 + $0x88] sm:$0xf] %v8173_v43  ;;  %1048 = vst [vmem:[#allocation3 + $0x9c] sm:$0xf] %v8176_v49  ;;  %v14614_v50 = vunpack.i.l.bf16 %v11214_v11  ;;  %v14615_v23 = vunpack.i.h.bf16 %v11214_v11  ;;  %v14617_v11 = vunpack.i.l.bf16 %v11249_v4  ;;  %1999 = vmatpush2.bf16.msra.mxu0 %v10068_v17  ;;  %v14618_v17 = vmov 0  }
 0x1af   : > { %1042 = vst [vmem:[#allocation3 + $0x74] sm:$0xf] %v8170_v6  ;;  %1039 = vst [vmem:[#allocation3 + $0x60] sm:$0xf] %v8167_v31  ;;  %v14616_v31 = vunpack.i.h.bf16 %v11249_v4  ;;  %v8711_v16 = vpop.permute.xlu0 %8710 }
 0x1b0   : > { %v809_v51 = vsel %vm806_vm4, %v14399_v62, %v14614_v50  ;;  %v810_v49 = vsel %vm806_vm4, %v14398_v63, %v14615_v23  ;;  %v807_v23 = vsel %vm806_vm4, %v14402_v18, %v14617_v11  ;;  %v8716_v63 = vpop.permute.xlu1 %8715 }
 0x1b1   : > { %v8161_v43 = vpack.c.bf16 %v809_v51, %v809_v51  ;;  %v8164_v6 = vpack.c.bf16 %v810_v49, %v810_v49  ;;  %v808_v50 = vsel %vm806_vm4, %v14401_v15, %v14616_v31  ;;  %v8155_v21 = vpack.c.bf16 %v807_v23, %v807_v23  ;;  %v11423_v23 = vld [vmem:[#allocation9 + $0x14] ss:$8 sps:$4 sm:$0xff]  }
 0x1b2   : > { %v8158_v62 = vpack.c.bf16 %v808_v50, %v808_v50  ;;  %v10069_v51 = vpack.c.bf16 %v10919_v38, %v10923_v40  ;;  %v8713_v49 = vunpack.i.h.bf16 %v8711_v16  ;;  %v10070_v31 = vpack.c.bf16 %v10910_v30, %v10915_v33 }
 0x1b3   : > { %1033 = vst [vmem:[#allocation3 + $0x38] sm:$0xf] %v8161_v43  ;;  %1036 = vst [vmem:[#allocation3 + $0x4c] sm:$0xf] %v8164_v6  ;;  %v8721_v4 = vpop.permute.xlu0 %8720  ;;  %v8712_v15 = vunpack.i.l.bf16 %v8711_v16  ;;  %v8718_v11 = vunpack.i.h.bf16 %v8716_v63  ;;  %v8717_v50 = vunpack.i.l.bf16 %v8716_v63  ;;  %v9352_v16 = vld [vmem:[#allocation3 + $0x128] ss:$20 sps:$4 sm:$0xff]   ;;  %v14624_v40 = vunpack.i.l.bf16 %v11275_v56 }
 0x1b4   : > { %1030 = vst [vmem:[#allocation3 + $0x24] sm:$0xf] %v8158_v62  ;;  %1027 = vst [vmem:[#allocation3 + $0x10] sm:$0xf] %v8155_v21  ;;  %2000 = vmatprep.subr.bf16.mxu0 %v10069_v51  ;;  %v8726_v18 = vpop.permute.xlu1 %8725  ;;  %v8723_v43 = vunpack.i.h.bf16 %v8721_v4  ;;  %v8722_v6 = vunpack.i.l.bf16 %v8721_v4  ;;  %v14619_v62 = vunpack.i.h.bf16 %v11055_v20 }
 0x1b5   : > { %2001 = vmatpush2.bf16.msra.mxu0 %v10070_v31  ;;  %v8728_v51 = vunpack.i.h.bf16 %v8726_v18  ;;  %v8727_v39 = vunpack.i.l.bf16 %v8726_v18  ;;  %v1149_v63 = vsel %vm1134_vm1, %v8712_v15, %v14620_v7  ;;  %v14621_v31 = vunpack.i.h.bf16 %v11273_v9 }
 0x1b6   : > { %2116 = vmatprep.subr.bf16.mxu0 %v14618_v17  ;;  %v1158_v21 = vsel %vm1134_vm1, %v14619_v62, %v8713_v49  ;;  %v1157_v36 = vsel %vm1134_vm1, %v14622_v10, %v8712_v15  ;;  %v14623_v62 = vunpack.i.h.bf16 %v11089_v37  ;;  %v1147_v9 = vsel %vm1134_vm1, %v8717_v50, %v14624_v40 }
 0x1b7   : > { %v1150_v4 = vsel %vm1134_vm1, %v8713_v49, %v14621_v31  ;;  %v14625_v7 = vunpack.i.h.bf16 %v11275_v56  ;;  %v14626_v49 = vunpack.i.l.bf16 %v11089_v37  ;;  %v14627_v15 = vunpack.i.l.bf16 %v11309_v44 }
 0x1b8   : > { %v1156_v18 = vsel %vm1134_vm1, %v14623_v62, %v8718_v11  ;;  %2003 = vmatmul.mubr.bf16.vlgmr.msra.gmra.mxu0 %v11421_v35  ;;  %v14628_v40 = vunpack.i.h.bf16 %v11309_v44  ;;  %v14631_v62 = vunpack.i.l.bf16 %v11311_v28  ;;  %v8736_v45 = vpop.permute.xlu1 %8735 }
 0x1b9   : > { %v1148_v20 = vsel %vm1134_vm1, %v8718_v11, %v14625_v7  ;;  %v1155_v10 = vsel %vm1134_vm1, %v14626_v49, %v8717_v50  ;;  %2117 = vmatpush1.bf16.msra.mxu0 %v9352_v16  ;;  %7677 = vmatprep.mubr.msk.bf16.mxu0 %vm1957_vm0, %v11423_v23  ;;  %v1145_v31 = vsel %vm1134_vm1, %v8722_v6, %v14627_v15  ;;  %v14629_v11 = vunpack.i.l.bf16 %v11112_v52 }
 0x1ba   : > { %v1146_v56 = vsel %vm1134_vm1, %v8723_v43, %v14628_v40  ;;  %v14630_v50 = vunpack.i.h.bf16 %v11112_v52  ;;  %2118 = vmatprep.subr.bf16.mxu0 %v14618_v17  ;;  %v1143_v44 = vsel %vm1134_vm1, %v8727_v39, %v14631_v62  ;;  %v14632_v7 = vunpack.i.h.bf16 %v11311_v28  ;;  %v9353_v40 = vld [vmem:[#allocation3 + $0x100] ss:$20 sps:$4 sm:$0xff]   ;;  %v9357_v28 = vld [vmem:[#allocation3 + $0xd8] ss:$20 sps:$4 sm:$0xff]  }
 0x1bb   : > { %v1153_v37 = vsel %vm1134_vm1, %v14629_v11, %v8722_v6  ;;  %v14633_v15 = vunpack.i.l.bf16 %v11138_v55  ;;  %v11498_v11 = vld [vmem:[#allocation9 + $0x10] ss:$8 sps:$4 sm:$0xff]   ;;  %v10071_v62 = vpack.c.bf16 %v1150_v4, %v1149_v63  ;;  %v11511_v63 = vld [vmem:[#allocation9 + $0x34] ss:$8 sps:$4 sm:$0xff]   ;;  %v8738_v4 = vunpack.i.h.bf16 %v8736_v45 }
 0x1bc   : > { %v1154_v16 = vsel %vm1134_vm1, %v14630_v50, %v8723_v43  ;;  %v1144_v49 = vsel %vm1134_vm1, %v8728_v51, %v14632_v7  ;;  %v14634_v43 = vunpack.i.h.bf16 %v11138_v55  ;;  %v8731_v50 = vpop.permute.xlu0 %8730  ;;  %v10072_v7 = vpack.c.bf16 %v1158_v21, %v1157_v36  ;;  %v9358_v36 = vld [vmem:[#allocation3 + $0xb0] ss:$20 sps:$4 sm:$0xff]   ;;  %v11509_v21 = vld [vmem:[#allocation9 + $0x20] ss:$8 sps:$4 sm:$0xff]  }
 0x1bd   : > { %v11490_v52 = vsel %vm1134_vm1, %v14633_v15, %v8727_v39  ;;  %2119 = vmatpush1.bf16.msra.mxu0 %v9353_v40  ;;  %v11502_v39 = vld [vmem:[#allocation9 + $0x24] ss:$8 sps:$4 sm:$0xff]   ;;  %v10073_v15 = vpack.c.bf16 %v1148_v20, %v1147_v9  ;;  %v10074_v55 = vpack.c.bf16 %v1156_v18, %v1155_v10  ;;  %2043 = vmatprep.subr.bf16.mxu1 %v10071_v62  ;;  %v8733_v33 = vunpack.i.h.bf16 %v8731_v50 }
 0x1be   : > { %v11496_v6 = vsel %vm1134_vm1, %v14634_v43, %v8728_v51  ;;  %2120 = vmatprep.subr.bf16.mxu0 %v14618_v17  ;;  %v10075_v51 = vpack.c.bf16 %v1146_v56, %v1145_v31  ;;  %v10076_v43 = vpack.c.bf16 %v1154_v16, %v1153_v37  ;;  %v10077_v38 = vpack.c.bf16 %v1144_v49, %v1143_v44  ;;  %v9362_v44 = vld [vmem:[#allocation3 + $0x88] ss:$20 sps:$4 sm:$0xff]  }
 0x1bf   : > { %v10078_v40 = vpack.c.bf16 %v11496_v6, %v11490_v52  ;;  %v8732_v30 = vunpack.i.l.bf16 %v8731_v50  ;;  %2044 = vmatpush1.bf16.msra.mxu1 %v10072_v7  ;;  %v8737_v18 = vunpack.i.l.bf16 %v8736_v45  ;;  %v14635_v9 = vunpack.i.l.bf16 %v11347_v32 }
 0x1c0   : > { %2013 = vmatmul.mubr.bf16.gmra.mxu0 %v11498_v11  ;;  %2045 = vmatprep.subr.bf16.mxu1 %v10073_v15  ;;  %v14636_v10 = vunpack.i.h.bf16 %v11347_v32  ;;  %v14637_v56 = vunpack.i.l.bf16 %v11176_v53  ;;  %v14638_v16 = vunpack.i.h.bf16 %v11176_v53  ;;  %v8741_v49 = vpop.permute.xlu0 %8740  ;;  %v14639_v32 = vunpack.i.l.bf16 %v11349_v8  ;;  %v8746_v15 = vpop.permute.xlu1 %8745 }
 0x1c1   : > { %2121 = vmatpush1.bf16.msra.mxu0 %v9357_v28  ;;  %7678 = vmatprep.mubr.msk.bf16.mxu0 %vm1957_vm0, %v11502_v39  ;;  %v821_v20 = vsel %vm806_vm4, %v8732_v30, %v14635_v9  ;;  %v14640_v53 = vunpack.i.l.bf16 %v11192_v25  ;;  %v14641_v52 = vunpack.i.h.bf16 %v11349_v8  ;;  %v14642_v28 = vunpack.i.h.bf16 %v11192_v25 }
 0x1c2   : > { %2122 = vmatprep.subr.bf16.mxu0 %v14618_v17  ;;  %v822_v31 = vsel %vm806_vm4, %v8733_v33, %v14636_v10  ;;  %v829_v37 = vsel %vm806_vm4, %v14637_v56, %v8732_v30  ;;  %v830_v45 = vsel %vm806_vm4, %v14638_v16, %v8733_v33  ;;  %v819_v30 = vsel %vm806_vm4, %v8737_v18, %v14639_v32 }
 0x1c3   : > { %2046 = vmatpush1.bf16.msra.mxu1 %v10074_v55  ;;  %v827_v33 = vsel %vm806_vm4, %v14640_v53, %v8737_v18  ;;  %v820_v6 = vsel %vm806_vm4, %v8738_v4, %v14641_v52  ;;  %v828_v50 = vsel %vm806_vm4, %v14642_v28, %v8738_v4  ;;  %v8743_v62 = vunpack.i.h.bf16 %v8741_v49  ;;  %v9363_v55 = vld [vmem:[#allocation3 + $0x60] ss:$20 sps:$4 sm:$0xff]  }
 0x1c4   : > { %2047 = vmatprep.subr.bf16.mxu1 %v10075_v51  ;;  %v8742_v7 = vunpack.i.l.bf16 %v8741_v49  ;;  %v11550_v51 = vld [vmem:[#allocation9 + $0x30] ss:$8 sps:$4 sm:$0xff]   ;;  %v8747_v18 = vunpack.i.l.bf16 %v8746_v15  ;;  %v10079_v8 = vpack.c.bf16 %v822_v31, %v821_v20  ;;  %v14643_v9 = vunpack.i.l.bf16 %v11383_v14 }
 0x1c5   : > { %2123 = vmatpush1.bf16.msra.mxu0 %v9358_v36  ;;  %v8748_v36 = vunpack.i.h.bf16 %v8746_v15  ;;  %v14644_v4 = vunpack.i.h.bf16 %v11383_v14  ;;  %v14646_v56 = vunpack.i.h.bf16 %v11235_v0  ;;  %v9367_v31 = vld [vmem:[#allocation3 + $0x38] ss:$20 sps:$4 sm:$0xff]   ;;  %v10080_v16 = vpack.c.bf16 %v830_v45, %v829_v37 }
 0x1c6   : > { %2124 = vmatprep.subr.bf16.mxu0 %v14618_v17  ;;  %v817_v25 = vsel %vm806_vm4, %v8742_v7, %v14643_v9  ;;  %v10081_v14 = vpack.c.bf16 %v820_v6, %v819_v30  ;;  %v14648_v49 = vunpack.i.h.bf16 %v11385_v12  ;;  %v14649_v32 = vunpack.i.l.bf16 %v11251_v48  ;;  %v9368_v30 = vld [vmem:[#allocation3 + $0x10] ss:$20 sps:$4 sm:$0xff]  }
 0x1c7   : > { %2048 = vmatpush1.bf16.msra.mxu1 %v10076_v43  ;;  %v818_v43 = vsel %vm806_vm4, %v8743_v62, %v14644_v4  ;;  %v826_v20 = vsel %vm806_vm4, %v14646_v56, %v8743_v62  ;;  %v10082_v53 = vpack.c.bf16 %v828_v50, %v827_v33  ;;  %v10087_v33 = vpack.c.bf16 %v10975_v34, %v10967_v29  ;;  %v9371_v50 = vld [vmem:[#allocation3 + $0x178] ss:$20 sps:$4 sm:$0xff]   ;;  %v14653_v4 = vld [vmem:[#allocation38_spill] sm:$0xff] }
 0x1c8   : > { %2023 = vmatmul.mubr.bf16.gmra.mxu0 %v11509_v21  ;;  %2049 = vmatprep.subr.bf16.mxu1 %v10077_v38  ;;  %v14645_v38 = vunpack.i.l.bf16 %v11235_v0  ;;  %v823_v37 = vsel %vm806_vm4, %v14649_v32, %v8747_v18  ;;  %v10083_v52 = vpack.c.bf16 %v818_v43, %v817_v25  ;;  %v10089_v15 = vpack.c.bf16 %v10978_v42, %v10972_v5  ;;  %v14652_v25 = vld [vmem:[#allocation39_spill] sm:$0xff] }
 0x1c9   : > { %2125 = vmatpush1.bf16.msra.mxu0 %v9362_v44  ;;  %7679 = vmatprep.mubr.msk.bf16.mxu0 %vm1957_vm0, %v11511_v63  ;;  %v14647_v44 = vunpack.i.l.bf16 %v11385_v12  ;;  %v9369_v12 = vld [vmem:[#allocation3 + $0x1c8] ss:$20 sps:$4 sm:$0xff]   ;;  %v10093_v43 = vpack.c.bf16 %v14653_v4, %v14652_v25 }
 0x1ca   : > { %2126 = vmatprep.subr.bf16.mxu0 %v14618_v17  ;;  %v825_v10 = vsel %vm806_vm4, %v14645_v38, %v8742_v7  ;;  %v10088_v7 = vpack.c.bf16 %v11012_v59, %v11006_v46  ;;  %v14654_v38 = vld [vmem:[#allocation42_spill] sm:$0xff] }
 0x1cb   : > { %2050 = vmatpush1.bf16.msra.mxu1 %v10078_v40  ;;  %v815_v0 = vsel %vm806_vm4, %v8747_v18, %v14647_v44  ;;  %v816_v40 = vsel %vm806_vm4, %v8748_v36, %v14648_v49  ;;  %v10084_v6 = vpack.c.bf16 %v826_v20, %v825_v10  ;;  %v10091_v18 = vpack.c.bf16 %v10981_v26, %v10986_v27  ;;  %v14655_v10 = vld [vmem:[#allocation41_spill] sm:$0xff] }
 0x1cc   : > { %2051 = vmatprep.subr.bf16.mxu1 %v10079_v8  ;;  %v10085_v28 = vpack.c.bf16 %v816_v40, %v815_v0  ;;  %v14651_v8 = vld [vmem:[#allocation40_spill] sm:$0xff]  ;;  %v10094_v56 = vpack.c.bf16 %v14655_v10, %v14654_v38 }
 0x1cd   : > { %2127 = vmatpush1.bf16.msra.mxu0 %v9363_v55  ;;  %v9372_v55 = vld [vmem:[#allocation3 + $0x150] ss:$20 sps:$4 sm:$0xff]   ;;  %v10092_v9 = vpack.c.bf16 %v14651_v8, %v11020_v1 }
 0x1ce   : > { %2128 = vmatprep.subr.bf16.mxu0 %v14618_v17 }
 0x1cf   : > { %2052 = vmatpush1.bf16.msra.mxu1 %v10080_v16 }
 0x1d0   : > { %2033 = vmatmul.mubr.bf16.gmra.mxu0 %v11550_v51  ;;  %2053 = vmatprep.subr.bf16.mxu1 %v10081_v14 }
 0x1d1   : > { %2129 = vmatpush1.bf16.msra.mxu0 %v9367_v31  ;;  %7684 = vmatprep.mubr.msk.bf16.mxu0 %vm1957_vm0, %v11038_v57  ;;  %v14650_v57 = vunpack.i.h.bf16 %v11251_v48  ;;  %v9370_v48 = vld [vmem:[#allocation3 + $0x1a0] ss:$20 sps:$4 sm:$0xff]  }
 0x1d2   : > { %2130 = vmatprep.subr.bf16.mxu0 %v14618_v17 }
 0x1d3   : > { %v824_v45 = vsel %vm806_vm4, %v14650_v57, %v8748_v36  ;;  %2054 = vmatpush1.bf16.msra.mxu1 %v10082_v53  ;;  %v10090_v36 = vpack.c.bf16 %v11014_v60, %v11010_v47  ;;  %v488_v57 = vld [vmem:[%s10680_s26 + $0x40] sm:$0xff] }
 0x1d4   : > { %2055 = vmatprep.subr.bf16.mxu1 %v10083_v52  ;;  %v10086_v62 = vpack.c.bf16 %v824_v45, %v823_v37  ;;  %v466_v37 = vld [vmem:[%s10672_s23 + $0x10] sm:$0xff]  ;;  %v467_v52 = vld [vmem:[%s10672_s23 + $0x18] sm:$0xff] }
 0x1d5   : > { %2131 = vmatpush1.bf16.msra.mxu0 %v9368_v30 }
 0x1d6   : > { %2140 = vmatprep.subr.bf16.mxu0 %v14618_v17 }
 0x1d7   : > { %2056 = vmatpush1.bf16.msra.mxu1 %v10084_v6 }
 0x1d8   : > { %2057 = vmatprep.subr.bf16.mxu1 %v10085_v28 }
 0x1d9   : > { %2141 = vmatpush2.bf16.msra.mxu0 %v9369_v12 }
 0x1da   : > { %2142 = vmatprep.subr.bf16.mxu0 %v14618_v17 }
 0x1db   : > { %2058 = vmatpush1.bf16.msra.mxu1 %v10086_v62  ;;  %v492_v62 = vld [vmem:[%s10680_s26 + $0x60] sm:$0xff] }
 0x1dc   : > { %2067 = vmatprep.subr.bf16.mxu1 %v10087_v33 }
 0x1dd   : > { %2143 = vmatpush2.bf16.msra.mxu0 %v9370_v48 }
 0x1de   : > { %2144 = vmatprep.subr.bf16.mxu0 %v14618_v17 }
 0x1df   : > { %2068 = vmatpush2.bf16.msra.mxu1 %v10088_v7 }
 0x1e0   : > { %2069 = vmatprep.subr.bf16.mxu1 %v10089_v15 }
 0x1e1   : > { %2145 = vmatpush2.bf16.msra.mxu0 %v9371_v50 }
 0x1e2   : > { %2146 = vmatprep.subr.bf16.mxu0 %v14618_v17 }
 0x1e3   : > { %2070 = vmatpush2.bf16.msra.mxu1 %v10090_v36 }
 0x1e4   : > { %2071 = vmatprep.subr.bf16.mxu1 %v10091_v18 }
 0x1e5   : > { %2147 = vmatpush2.bf16.msra.mxu0 %v9372_v55 }
 0x1e7   : > { %2072 = vmatpush2.bf16.msra.mxu1 %v10092_v9  ;;  %v468_v9 = vld [vmem:[%s10672_s23 + $0x20] sm:$0xff] }
 0x1e8   : > { %2149 = vmatmul.mubr.bf16.vlgmr.msra.gmra.mxu0 %v11421_v35  ;;  %2073 = vmatprep.subr.bf16.mxu1 %v10093_v43 }
 0x1e9   : > { %7685 = vmatprep.mubr.msk.bf16.mxu0 %vm1957_vm0, %v11423_v23 }
 0x1eb   : > { %2074 = vmatpush2.bf16.msra.mxu1 %v10094_v56 }
 0x1ee   : > { %2076 = vmatmul.mubr.bf16.vlgmr.msra.gmra.mxu1 %v11421_v35 }
 0x1ef   : > { %7681 = vmatprep.mubr.msk.bf16.mxu1 %vm1957_vm0, %v11423_v23 }
 0x1f0   : > { %2157 = vmatmul.mubr.bf16.gmra.mxu0 %v11498_v11 }
 0x1f1   : > { %7686 = vmatprep.mubr.msk.bf16.mxu0 %vm1957_vm0, %v11502_v39 }
 0x1f6   : > { %2086 = vmatmul.mubr.bf16.gmra.mxu1 %v11498_v11 }
 0x1f7   : > { %7682 = vmatprep.mubr.msk.bf16.mxu1 %vm1957_vm0, %v11502_v39 }
 0x1f8   : > { %2165 = vmatmul.mubr.bf16.gmra.mxu0 %v11509_v21 }
 0x1f9   : > { %7687 = vmatprep.mubr.msk.bf16.mxu0 %vm1957_vm0, %v11511_v63 }
 0x1fe   : > { %2096 = vmatmul.mubr.bf16.gmra.mxu1 %v11509_v21 }
 0x1ff   : > { %7683 = vmatprep.mubr.msk.bf16.mxu1 %vm1957_vm0, %v11511_v63 }
 0x200   : > { %2173 = vmatmul.mubr.bf16.gmra.mxu0 %v11550_v51 }
 0x206   : > { %2106 = vmatmul.mubr.bf16.gmra.mxu1 %v11550_v51 }
 0x278   : > { %v11629_v35 = vpop.f32.mrf.mxu0 }
 0x27a   : > { %v11631_v23 = vpop.f32.mrf.mxu0 }
 0x27c   : > { %v11633_v20 = vpop.f32.mrf.mxu0 }
 0x27e   : > { %v11635_v31 = vpop.f32.mrf.mxu0 }
 0x280   : > { %v2014_v11 = vpop.f32.mrf.mxu0 }
 0x281   : > { %9583 = vtanh.f32 %v2014_v11 }
 0x282   : > { %v2016_v39 = vpop.f32.mrf.mxu0 }
 0x283   : > { %9585 = vtanh.f32 %v2016_v39  ;;  %v469_v39 = vld [vmem:[%s10672_s23 + $0x28] sm:$0xff] }
 0x284   : > { %v2018_v16 = vpop.f32.mrf.mxu0 }
 0x285   : > { %9587 = vtanh.f32 %v2018_v16 }
 0x286   : > { %v2020_v21 = vpop.f32.mrf.mxu0 }
 0x287   : > { %9589 = vtanh.f32 %v2020_v21 }
 0x288   : > { %v2024_v63 = vpop.f32.mrf.mxu0 }
 0x289   : > { %9591 = vtanh.f32 %v2024_v63 }
 0x28a   : > { %v2026_v51 = vpop.f32.mrf.mxu0 }
 0x28b   : > { %9593 = vtanh.f32 %v2026_v51 }
 0x28c   : > { %v2028_v14 = vpop.f32.mrf.mxu0 }
 0x28d   : > { %9595 = vtanh.f32 %v2028_v14  ;;  %v500_v14 = vld [vmem:[%s10680_s26 + $0xa0] sm:$0xff] }
 0x28e   : > { %v9584_v44 = vpop.eup %9583  ;;  %v2030_v0 = vpop.f32.mrf.mxu0 }
 0x28f   : > { %9597 = vtanh.f32 %v2030_v0  ;;  %v2231_v49 = vadd.f32 %v9584_v44, %v10888_v19 }
 0x290   : > { %v9586_v40 = vpop.eup %9585  ;;  %v2034_v32 = vpop.f32.mrf.mxu0 }
 0x291   : > { %9599 = vtanh.f32 %v2034_v32  ;;  %v2232_v45 = vadd.f32 %v9586_v40, %v10897_v24  ;;  %v11643_v6 = vadd.f32 %v2231_v49, %v466_v37 }
 0x292   : > { %v9588_v30 = vpop.eup %9587  ;;  %v2036_v53 = vpop.f32.mrf.mxu0 }
 0x293   : > { %9601 = vtanh.f32 %v2036_v53  ;;  %v2236_v12 = vadd.f32 %v9588_v30, %v10882_v13  ;;  %v11645_v28 = vadd.f32 %v2232_v45, %v488_v57  ;;  %v470_v57 = vld [vmem:[%s10672_s23 + $0x30] sm:$0xff]  ;;  %v504_v45 = vld [vmem:[%s10680_s26 + $0xc0] sm:$0xff]  ;;  %v14656_v30 = vld [vmem:[#allocation27_spill] sm:$0xff] }
 0x294   : > { %v9590_v19 = vpop.eup %9589  ;;  %v2038_v48 = vpop.f32.mrf.mxu0 }
 0x295   : > { %9603 = vtanh.f32 %v2038_v48  ;;  %v11648_v33 = vadd.f32 %v2236_v12, %v467_v52  ;;  %v2237_v24 = vadd.f32 %v9590_v19, %v10893_v22  ;;  %v8279_v50 = vpack.c.bf16 %v11645_v28, %v11643_v6  ;;  %v496_v22 = vld [vmem:[%s10680_s26 + $0x80] sm:$0xff]  ;;  %v471_v12 = vld [vmem:[%s10672_s23 + $0x38] sm:$0xff]  ;;  %v14657_v48 = vld [vmem:[#allocation25_spill] sm:$0xff] }
 0x296   : > { %v9592_v7 = vpop.eup %9591  ;;  %v2040_v13 = vpop.f32.mrf.mxu0 }
 0x297   : > { %9605 = vtanh.f32 %v2040_v13  ;;  %v11655_v15 = vpack.i.bf16 %v11648_v33, %v11643_v6  ;;  %v11657_v55 = vadd.f32 %v2237_v24, %v492_v62  ;;  %3115 = vst [vmem:[#allocation3 + $0x168] sm:$0xff] %v8279_v50  ;;  %v2241_v36 = vadd.f32 %v9592_v7, %v10830_v54  ;;  %v508_v7 = vld [vmem:[%s10680_s26 + $0xe0] sm:$0xff] }
 0x298   : > { %v9594_v18 = vpop.eup %9593 }
 0x299   : > { %8750 = vrot.lane.b32.xlu0 %v11655_v15, %s10471_s0  ;;  %v8282_v43 = vpack.c.bf16 %v11657_v55, %v11648_v33  ;;  %v2242_v56 = vadd.f32 %v9594_v18, %v10852_v61  ;;  %v11670_v16 = vpack.i.bf16 %v11657_v55, %v11645_v28  ;;  %v11673_v21 = vadd.f32 %v2241_v36, %v468_v9  ;;  %v14658_v36 = vld [vmem:[#allocation26_spill] sm:$0xff] }
 0x29a   : > { %v9596_v11 = vpop.eup %9595 }
 0x29b   : > { %3118 = vst [vmem:[#allocation3 + $0x17c] sm:$0xff] %v8282_v43  ;;  %v2246_v54 = vadd.f32 %v9596_v11, %v10842_v58  ;;  %v11675_v63 = vadd.f32 %v2242_v56, %v496_v22 }
 0x29c   : > { %v9598_v51 = vpop.eup %9597 }
 0x29d   : > { %8755 = vrot.lane.b32.xlu0 %v11670_v16, %s10471_s0  ;;  %v11680_v61 = vadd.f32 %v2246_v54, %v469_v39  ;;  %v2247_v44 = vadd.f32 %v9598_v51, %v10864_v3  ;;  %v8285_v0 = vpack.c.bf16 %v11675_v63, %v11673_v21 }
 0x29e   : > { %v9600_v49 = vpop.eup %9599 }
 0x29f   : > { %v11687_v58 = vpack.i.bf16 %v11680_v61, %v11673_v21  ;;  %v11689_v40 = vadd.f32 %v2247_v44, %v500_v14  ;;  %3121 = vst [vmem:[#allocation3 + $0x190] sm:$0xff] %v8285_v0  ;;  %v2251_v32 = vadd.f32 %v9600_v49, %v10800_v41 }
 0x2a0   : > { %v9602_v37 = vpop.eup %9601 }
 0x2a1   : > { %8760 = vrot.lane.b32.xlu1 %v11687_v58, %s10471_s0  ;;  %v8288_v3 = vpack.c.bf16 %v11689_v40, %v11680_v61  ;;  %v2252_v53 = vadd.f32 %v9602_v37, %v14656_v30  ;;  %v11702_v19 = vpack.i.bf16 %v11689_v40, %v11675_v63  ;;  %v11705_v62 = vadd.f32 %v2251_v32, %v470_v57  ;;  %v483_v30 = vld [vmem:[%s10680_s26 + $0x18] sm:$0xff] }
 0x2a2   : > { %v9604_v52 = vpop.eup %9603 }
 0x2a3   : > { %3124 = vst [vmem:[#allocation3 + $0x1a4] sm:$0xff] %v8288_v3  ;;  %v2256_v41 = vadd.f32 %v9604_v52, %v14657_v48  ;;  %v11707_v24 = vadd.f32 %v2252_v53, %v504_v45  ;;  %v14659_v53 = vld [vmem:[#allocation37_spill] sm:$0xff] }
 0x2a4   : > { %v9606_v50 = vpop.eup %9605 }
 0x2a5   : > { %8765 = vrot.lane.b32.xlu1 %v11702_v19, %s10471_s0  ;;  %v11712_v13 = vadd.f32 %v2256_v41, %v471_v12  ;;  %v2257_v18 = vadd.f32 %v9606_v50, %v14658_v36  ;;  %v8291_v9 = vpack.c.bf16 %v11707_v24, %v11705_v62 }
 0x2a7   : > { %v11719_v22 = vpack.i.bf16 %v11712_v13, %v11705_v62  ;;  %v11721_v43 = vadd.f32 %v2257_v18, %v508_v7  ;;  %3127 = vst [vmem:[#allocation3 + $0x1b8] sm:$0xff] %v8291_v9  ;;  %v487_v18 = vld [vmem:[%s10680_s26 + $0x38] sm:$0xff]  ;;  %v14660_v9 = vld [vmem:[#allocation33_spill] sm:$0xff] }
 0x2a8   : > { %v2150_v56 = vpop.f32.mrf.mxu0 }
 0x2a9   : > { %9607 = vtanh.f32 %v2150_v56  ;;  %8770 = vrot.lane.b32.xlu0 %v11719_v22, %s10471_s0  ;;  %v8294_v11 = vpack.c.bf16 %v11721_v43, %v11712_v13  ;;  %v11729_v54 = vpack.i.bf16 %v11721_v43, %v11707_v24 }
 0x2aa   : > { %v2152_v39 = vpop.f32.mrf.mxu0 }
 0x2ab   : > { %3130 = vst [vmem:[#allocation3 + $0x1cc] sm:$0xff] %v8294_v11 }
 0x2ac   : > { %v2153_v51 = vpop.f32.mrf.mxu0 }
 0x2ad   : > { %9609 = vtanh.f32 %v2153_v51  ;;  %8775 = vrot.lane.b32.xlu0 %v11729_v54, %s10471_s0 }
 0x2ae   : > { %v2155_v14 = vpop.f32.mrf.mxu0  ;;  %v2077_v0 = vpop.f32.mrf.mxu1 }
 0x2b0   : > { %v2158_v44 = vpop.f32.mrf.mxu0  ;;  %v2079_v32 = vpop.f32.mrf.mxu1 }
 0x2b1   : > { %9611 = vtanh.f32 %v2158_v44 }
 0x2b2   : > { %v2160_v49 = vpop.f32.mrf.mxu0  ;;  %9613 = vtanh.f32 %v2077_v0  ;;  %v2081_v45 = vpop.f32.mrf.mxu1 }
 0x2b3   : > { %9615 = vtanh.f32 %v2079_v32  ;;  %v491_v32 = vld [vmem:[%s10680_s26 + $0x58] sm:$0xff] }
 0x2b4   : > { %v2161_v37 = vpop.f32.mrf.mxu0  ;;  %v2083_v12 = vpop.f32.mrf.mxu1 }
 0x2b5   : > { %9617 = vtanh.f32 %v2161_v37  ;;  %v14661_v37 = vld [vmem:[#allocation31_spill] sm:$0xff] }
 0x2b6   : > { %v9608_v57 = vpop.eup %9607  ;;  %v2163_v3 = vpop.f32.mrf.mxu0  ;;  %9619 = vtanh.f32 %v2081_v45 }
 0x2b7   : > { %v2225_v52 = vadd.f32 %v9608_v57, %v14659_v53  ;;  %9621 = vtanh.f32 %v2083_v12  ;;  %v2087_v7 = vpop.f32.mrf.mxu1 }
 0x2b8   : > { %v2166_v48 = vpop.f32.mrf.mxu0 }
 0x2b9   : > { %v11735_v41 = vadd.f32 %v2225_v52, %v483_v30  ;;  %9623 = vtanh.f32 %v2166_v48  ;;  %v2089_v39 = vpop.f32.mrf.mxu1 }
 0x2ba   : > { %v9610_v50 = vpop.eup %9609  ;;  %v2168_v36 = vpop.f32.mrf.mxu0  ;;  %9625 = vtanh.f32 %v2087_v7 }
 0x2bb   : > { %v2230_v56 = vadd.f32 %v9610_v50, %v14660_v9  ;;  %v8275_v11 = vpack.c.bf16 %v11735_v41, %v11735_v41  ;;  %9627 = vtanh.f32 %v2089_v39  ;;  %v2091_v0 = vpop.f32.mrf.mxu1  ;;  %v482_v36 = vld [vmem:[%s10680_s26 + $0x10] sm:$0xff] }
 0x2bc   : > { %v2169_v51 = vpop.f32.mrf.mxu0 }
 0x2bd   : > { %v11741_v14 = vadd.f32 %v2230_v56, %v487_v18  ;;  %3111 = vst [vmem:[#allocation3 + $0x150] sm:$0xf] %v8275_v11  ;;  %9629 = vtanh.f32 %v2169_v51  ;;  %v2093_v30 = vpop.f32.mrf.mxu1  ;;  %v481_v18 = vld [vmem:[%s10680_s26 + $0x8] sm:$0xff]  ;;  %v495_v56 = vld [vmem:[%s10680_s26 + $0x78] sm:$0xff] }
 0x2be   : > { %v9612_v44 = vpop.eup %9611  ;;  %v2171_v49 = vpop.f32.mrf.mxu0  ;;  %9631 = vtanh.f32 %v2091_v0 }
 0x2bf   : > { %v2235_v57 = vadd.f32 %v9612_v44, %v14661_v37  ;;  %v8278_v45 = vpack.c.bf16 %v11741_v14, %v11741_v14  ;;  %v9614_v3 = vpop.eup %9613  ;;  %9633 = vtanh.f32 %v11633_v20  ;;  %v2097_v50 = vpop.f32.mrf.mxu1  ;;  %v14663_v44 = vld [vmem:[#allocation30_spill] sm:$0xff] }
 0x2c0   : > { %v2174_v53 = vpop.f32.mrf.mxu0  ;;  %9635 = vtanh.f32 %v2093_v30  ;;  %v2223_v12 = vadd.f32 %v9614_v3, %v14654_v38  ;;  %v9616_v48 = vpop.eup %9615  ;;  %v486_v3 = vld [vmem:[%s10680_s26 + $0x30] sm:$0xff] }
 0x2c1   : > { %v11748_v52 = vadd.f32 %v2235_v57, %v491_v32  ;;  %3114 = vst [vmem:[#allocation3 + $0x164] sm:$0xf] %v8278_v45  ;;  %9637 = vtanh.f32 %v2174_v53  ;;  %v2224_v11 = vadd.f32 %v9616_v48, %v14652_v25  ;;  %v2099_v51 = vpop.f32.mrf.mxu1  ;;  %v499_v53 = vld [vmem:[%s10680_s26 + $0x98] sm:$0xff] }
 0x2c2   : > { %v2176_v7 = vpop.f32.mrf.mxu0  ;;  %v9618_v9 = vpop.eup %9617  ;;  %9639 = vtanh.f32 %v2097_v50  ;;  %v11761_v32 = vadd.f32 %v2223_v12, %v481_v18  ;;  %v485_v50 = vld [vmem:[%s10680_s26 + $0x28] sm:$0xff] }
 0x2c3   : > { %14662 = vst [vmem:[#allocation40_spill] sm:$0xff] %v11748_v52  ;;  %v8281_v20 = vpack.c.bf16 %v11748_v52, %v11748_v52  ;;  %v9620_v39 = vpop.eup %9619  ;;  %9641 = vtanh.f32 %v11629_v35  ;;  %v2240_v0 = vadd.f32 %v9618_v9, %v14663_v44  ;;  %v11759_v49 = vadd.f32 %v2224_v11, %v482_v36  ;;  %v2101_v57 = vpop.f32.mrf.mxu1  ;;  %v14665_v9 = vld [vmem:[#allocation24_spill] sm:$0xff] }
 0x2c4   : > { %v2177_v38 = vpop.f32.mrf.mxu0  ;;  %9643 = vtanh.f32 %v2099_v51  ;;  %v9622_v37 = vpop.eup %9621  ;;  %v2228_v35 = vadd.f32 %v9620_v39, %v14655_v10  ;;  %v490_v51 = vld [vmem:[%s10680_s26 + $0x50] sm:$0xff] }
 0x2c5   : > { %3117 = vst [vmem:[#allocation3 + $0x178] sm:$0xf] %v8281_v20  ;;  %9645 = vtanh.f32 %v2177_v38  ;;  %v11763_v25 = vadd.f32 %v2240_v0, %v495_v56  ;;  %v2229_v48 = vadd.f32 %v9622_v37, %v14653_v4  ;;  %v8274_v7 = vpack.c.bf16 %v11759_v49, %v11761_v32  ;;  %v2103_v36 = vpop.f32.mrf.mxu1  ;;  %v489_v38 = vld [vmem:[%s10680_s26 + $0x48] sm:$0xff]  ;;  %v503_v37 = vld [vmem:[%s10680_s26 + $0xb8] sm:$0xff] }
 0x2c6   : > { %v2179_v45 = vpop.f32.mrf.mxu0  ;;  %v9624_v30 = vpop.eup %9623  ;;  %9647 = vtanh.f32 %v2101_v57  ;;  %v11790_v44 = vadd.f32 %v2228_v35, %v485_v50 }
 0x2c7   : > { %14664 = vst [vmem:[#allocation39_spill] sm:$0xff] %v11763_v25  ;;  %v9626_v12 = vpop.eup %9625  ;;  %9649 = vtanh.f32 %v11635_v31  ;;  %v8284_v18 = vpack.c.bf16 %v11763_v25, %v11763_v25  ;;  %v11777_v10 = vpack.i.bf16 %v11763_v25, %v11748_v52  ;;  %v2245_v56 = vadd.f32 %v9624_v30, %v14665_v9  ;;  %3110 = vst [vmem:[#allocation3 + $0x148] sm:$0xff] %v8274_v7  ;;  %v2107_v31 = vpop.f32.mrf.mxu1  ;;  %v14667_v45 = vld [vmem:[#allocation29_spill] sm:$0xff]  ;;  %v464_v25 = vld [vmem:[%s10672_s23] sm:$0xff] }
 0x2c8   : > { %9651 = vtanh.f32 %v2103_v36  ;;  %v11780_v4 = vadd.f32 %v2229_v48, %v486_v3  ;;  %v2233_v20 = vadd.f32 %v9626_v12, %v11020_v1  ;;  %v9628_v11 = vpop.eup %9627  ;;  %v493_v9 = vld [vmem:[%s10680_s26 + $0x68] sm:$0xff] }
 0x2c9   : > { %9653 = vtanh.f32 %v11631_v23  ;;  %3120 = vst [vmem:[#allocation3 + $0x18c] sm:$0xf] %v8284_v18  ;;  %8780 = vrot.lane.b32.xlu1 %v11777_v10, %s10471_s0  ;;  %v11786_v39 = vadd.f32 %v2245_v56, %v499_v53  ;;  %v2234_v1 = vadd.f32 %v9628_v11, %v10986_v27  ;;  %v2109_v23 = vpop.f32.mrf.mxu1  ;;  %v494_v18 = vld [vmem:[%s10680_s26 + $0x70] sm:$0xff]  ;;  %v507_v11 = vld [vmem:[%s10680_s26 + $0xd8] sm:$0xff] }
 0x2ca   : > { %v9630_v0 = vpop.eup %9629  ;;  %9655 = vtanh.f32 %v2107_v31  ;;  %v8277_v53 = vpack.c.bf16 %v11780_v4, %v11790_v44  ;;  %v11802_v7 = vadd.f32 %v2233_v20, %v489_v38 }
 0x2cb   : > { %14666 = vst [vmem:[#allocation38_spill] sm:$0xff] %v11786_v39  ;;  %v9632_v57 = vpop.eup %9631  ;;  %v2250_v3 = vadd.f32 %v9630_v0, %v14667_v45  ;;  %v8287_v30 = vpack.c.bf16 %v11786_v39, %v11786_v39  ;;  %9657 = vtanh.f32 %v2109_v23  ;;  %v11799_v48 = vadd.f32 %v2234_v1, %v490_v51  ;;  %v2111_v12 = vpop.f32.mrf.mxu1 }
 0x2cc   : > { %v9634_v35 = vpop.eup %9633  ;;  %v2238_v50 = vadd.f32 %v9632_v57, %v14651_v8  ;;  %14669 = vst [vmem:[#allocation41_spill] sm:$0xff] %v11802_v7  ;;  %3113 = vst [vmem:[#allocation3 + $0x15c] sm:$0xff] %v8277_v53  ;;  %9659 = vtanh.f32 %v2111_v12  ;;  %v497_v53 = vld [vmem:[%s10680_s26 + $0x88] sm:$0xff] }
 0x2cd   : > { %14668 = vst [vmem:[#allocation42_spill] sm:$0xff] %v11799_v48  ;;  %v9636_v27 = vpop.eup %9635  ;;  %v11804_v36 = vadd.f32 %v2250_v3, %v503_v37  ;;  %3123 = vst [vmem:[#allocation3 + $0x1a0] sm:$0xf] %v8287_v30  ;;  %v8280_v51 = vpack.c.bf16 %v11799_v48, %v11802_v7  ;;  %v2113_v20 = vpop.f32.mrf.mxu1  ;;  %v14671_v37 = vld [vmem:[#allocation23_spill] sm:$0xff]  ;;  %v498_v30 = vld [vmem:[%s10680_s26 + $0x90] sm:$0xff] }
 0x2ce   : > { %v9638_v56 = vpop.eup %9637  ;;  %v2239_v31 = vadd.f32 %v9636_v27, %v10981_v26  ;;  %9661 = vtanh.f32 %v2113_v20  ;;  %v11821_v23 = vadd.f32 %v2238_v50, %v493_v9  ;;  %v14675_v20 = vld [vmem:[#allocation32_spill] sm:$0xff] }
 0x2cf   : > { %14670 = vst [vmem:[#allocation27_spill] sm:$0xff] %v11804_v36  ;;  %v9640_v8 = vpop.eup %9639  ;;  %v8290_v38 = vpack.c.bf16 %v11804_v36, %v11804_v36  ;;  %v11816_v0 = vpack.i.bf16 %v11804_v36, %v11786_v39  ;;  %v2255_v1 = vadd.f32 %v9638_v56, %v14671_v37  ;;  %3116 = vst [vmem:[#allocation3 + $0x170] sm:$0xff] %v8280_v51  ;;  %v511_v56 = vld [vmem:[%s10680_s26 + $0xf8] sm:$0xff] }
 0x2d0   : > { %v9642_v57 = vpop.eup %9641  ;;  %v11819_v26 = vadd.f32 %v2239_v31, %v494_v18  ;;  %14673 = vst [vmem:[#allocation26_spill] sm:$0xff] %v11821_v23  ;;  %v2243_v27 = vadd.f32 %v9640_v8, %v11010_v47  ;;  %v2226_v18 = vadd.f32 %v9634_v35, %v14675_v20  ;;  %v11837_v51 = vpack.i.bf16 %v11741_v14, %v11735_v41  ;;  %v465_v8 = vld [vmem:[%s10672_s23 + $0x8] sm:$0xff] }
 0x2d1   : > { %v9644_v45 = vpop.eup %9643  ;;  %3126 = vst [vmem:[#allocation3 + $0x1b4] sm:$0xf] %v8290_v38  ;;  %8785 = vrot.lane.b32.xlu0 %v11816_v0, %s10471_s0  ;;  %v11825_v3 = vadd.f32 %v2255_v1, %v507_v11  ;;  %v14676_v11 = vld [vmem:[#allocation28_spill] sm:$0xff] }
 0x2d2   : > { %14672 = vst [vmem:[#allocation25_spill] sm:$0xff] %v11819_v26  ;;  %v9646_v12 = vpop.eup %9645  ;;  %v2244_v50 = vadd.f32 %v9644_v45, %v10972_v5  ;;  %v8283_v9 = vpack.c.bf16 %v11819_v26, %v11821_v23  ;;  %v11845_v5 = vadd.f32 %v2243_v27, %v497_v53  ;;  %v501_v27 = vld [vmem:[%s10680_s26 + $0xa8] sm:$0xff] }
 0x2d3   : > { %14674 = vst [vmem:[#allocation37_spill] sm:$0xff] %v11825_v3  ;;  %v9648_v31 = vpop.eup %9647  ;;  %v2260_v38 = vadd.f32 %v9646_v12, %v14676_v11  ;;  %v8293_v47 = vpack.c.bf16 %v11825_v3, %v11825_v3  ;;  %v14680_v12 = vld [vmem:[#allocation34_spill] sm:$0xff] }
 0x2d4   : > { %v9650_v35 = vpop.eup %9649  ;;  %v11843_v37 = vadd.f32 %v2244_v50, %v498_v30  ;;  %3119 = vst [vmem:[#allocation3 + $0x184] sm:$0xff] %v8283_v9  ;;  %14678 = vst [vmem:[#allocation31_spill] sm:$0xff] %v11845_v5  ;;  %v2221_v20 = vadd.f32 %v9642_v57, %v14680_v12  ;;  %v502_v11 = vld [vmem:[%s10680_s26 + $0xb0] sm:$0xff]  ;;  %v2248_v36 = vadd.f32 %v9648_v31, %v11014_v60  ;;  %v14681_v60 = vld [vmem:[#allocation35_spill] sm:$0xff] }
 0x2d5   : > { %v9652_v1 = vpop.eup %9651  ;;  %8800 = vrot.lane.b32.xlu0 %v11837_v51, %s10471_s0  ;;  %v11849_v45 = vadd.f32 %v2260_v38, %v511_v56  ;;  %3129 = vst [vmem:[#allocation3 + $0x1c8] sm:$0xf] %v8293_v47  ;;  %v11855_v30 = vadd.f32 %v2226_v18, %v465_v8  ;;  %v2227_v31 = vadd.f32 %v9650_v35, %v14681_v60  ;;  %v484_v18 = vld [vmem:[%s10680_s26 + $0x20] sm:$0xff]  ;;  %v505_v35 = vld [vmem:[%s10680_s26 + $0xc8] sm:$0xff] }
 0x2d6   : > { %14677 = vst [vmem:[#allocation33_spill] sm:$0xff] %v11843_v37  ;;  %v9654_v39 = vpop.eup %9653  ;;  %v2249_v53 = vadd.f32 %v9652_v1, %v10978_v42  ;;  %v8286_v50 = vpack.c.bf16 %v11843_v37, %v11845_v5  ;;  %v11873_v8 = vadd.f32 %v2221_v20, %v464_v25  ;;  %v14683_v1 = vld [vmem:[#allocation36_spill] sm:$0xff]  ;;  %v509_v60 = vld [vmem:[%s10680_s26 + $0xe8] sm:$0xff] }
 0x2d7   : > { %14679 = vst [vmem:[#allocation30_spill] sm:$0xff] %v11849_v45  ;;  %v9656_v9 = vpop.eup %9655  ;;  %v8296_v56 = vpack.c.bf16 %v11849_v45, %v11849_v45  ;;  %v8789_v57 = vpack.i.bf16 %v11849_v45, %v11825_v3  ;;  %v2222_v12 = vadd.f32 %v9654_v39, %v14683_v1  ;;  %v506_v45 = vld [vmem:[%s10680_s26 + $0xd0] sm:$0xff] }
 0x2d8   : > { %v11867_v38 = vadd.f32 %v2249_v53, %v502_v11  ;;  %v2253_v42 = vadd.f32 %v9656_v9, %v11006_v46  ;;  %3122 = vst [vmem:[#allocation3 + $0x198] sm:$0xff] %v8286_v50  ;;  %v9658_v47 = vpop.eup %9657  ;;  %v11878_v11 = vadd.f32 %v2248_v36, %v501_v27  ;;  %v480_v46 = vld [vmem:[%s10680_s26] sm:$0xff]  ;;  %v8794_v9 = vpack.i.bf16 %v11855_v30, %v11873_v8  ;;  %v510_v27 = vld [vmem:[%s10680_s26 + $0xf0] sm:$0xff] }
 0x2d9   : > { %3132 = vst [vmem:[#allocation3 + $0x1dc] sm:$0xf] %v8296_v56  ;;  %8790 = vrot.lane.b32.xlu1 %v8789_v57, %s10471_s0  ;;  %8810 = vrot.lane.b32.xlu0 %v11719_v22, %s10472_s2  ;;  %v2254_v53 = vadd.f32 %v9658_v47, %v10967_v29  ;;  %v9660_v50 = vpop.eup %9659  ;;  %v11884_v56 = vadd.f32 %v2227_v31, %v484_v18 }
 0x2da   : > { %14682 = vst [vmem:[#allocation24_spill] sm:$0xff] %v11867_v38  ;;  %14684 = vst [vmem:[#allocation29_spill] sm:$0xff] %v11878_v11  ;;  %v8289_v22 = vpack.c.bf16 %v11867_v38, %v11878_v11  ;;  %v2258_v39 = vadd.f32 %v9660_v50, %v11012_v59  ;;  %v11891_v20 = vadd.f32 %v2253_v42, %v505_v35 }
 0x2db   : > { %v11888_v25 = vadd.f32 %v2254_v53, %v506_v45  ;;  %v9662_v36 = vpop.eup %9661  ;;  %v11896_v29 = vadd.f32 %v2222_v12, %v480_v46 }
 0x2dc   : > { %14686 = vst [vmem:[#allocation32_spill] sm:$0xff] %v11891_v20  ;;  %3125 = vst [vmem:[#allocation3 + $0x1ac] sm:$0xff] %v8289_v22  ;;  %v2259_v31 = vadd.f32 %v9662_v36, %v10975_v34  ;;  %v11907_v42 = vadd.f32 %v2258_v39, %v509_v60 }
 0x2dd   : > { %14685 = vst [vmem:[#allocation23_spill] sm:$0xff] %v11888_v25  ;;  %8815 = vrot.lane.b32.xlu0 %v11729_v54, %s10472_s2  ;;  %8795 = vrot.lane.b32.xlu1 %v8794_v9, %s10471_s0  ;;  %v8292_v45 = vpack.c.bf16 %v11888_v25, %v11891_v20  ;;  %v8804_v59 = vpack.i.bf16 %v11884_v56, %v11896_v29 }
 0x2de   : > { %v11905_v18 = vadd.f32 %v2259_v31, %v510_v27  ;;  %14688 = vst [vmem:[#allocation34_spill] sm:$0xff] %v11907_v42 }
 0x2df   : > { %3128 = vst [vmem:[#allocation3 + $0x1c0] sm:$0xff] %v8292_v45 }
 0x2e0   : > { %14687 = vst [vmem:[#allocation28_spill] sm:$0xff] %v11905_v18  ;;  %v8295_v54 = vpack.c.bf16 %v11905_v18, %v11907_v42  ;;  %v8869_v34 = vpack.i.bf16 %v11905_v18, %v11888_v25 }
 0x2e1   : > { %8825 = vrot.lane.b32.xlu0 %v11816_v0, %s10472_s2  ;;  %8805 = vrot.lane.b32.xlu1 %v8804_v59, %s10471_s0  ;;  %v8914_v0 = vpack.i.bf16 %v11878_v11, %v11845_v5 }
 0x2e2   : > { %3131 = vst [vmem:[#allocation3 + $0x1d4] sm:$0xff] %v8295_v54 }
 0x2e5   : > { %8840 = vrot.lane.b32.xlu0 %v11655_v15, %s10472_s2  ;;  %8820 = vrot.lane.b32.xlu1 %v11687_v58, %s10472_s2  ;;  %v8879_v15 = vpack.i.bf16 %v11819_v26, %v11799_v48  ;;  %v8909_v58 = vpack.i.bf16 %v11907_v42, %v11891_v20 }
 0x2e9   : > { %8850 = vrot.lane.b32.xlu0 %v11670_v16, %s10472_s2  ;;  %8830 = vrot.lane.b32.xlu1 %v8789_v57, %s10472_s2  ;;  %v8874_v16 = vpack.i.bf16 %v11867_v38, %v11843_v37  ;;  %v11958_v57 = vld [vmem:[#allocation9 + $0x44] ss:$8 sps:$4 sm:$0xff]  }
 0x2ea   : > { %7828 = vmatprep.mubr.msk.bf16.mxu1 %vm1957_vm0, %v11958_v57  ;;  %7832 = vmatprep.mubr.msk.bf16.mxu0 %vm1957_vm0, %v11958_v57 }
 0x2ed   : > { %8860 = vrot.lane.b32.xlu0 %v11837_v51, %s10472_s2  ;;  %8835 = vrot.lane.b32.xlu1 %v11702_v19, %s10472_s2  ;;  %v8884_v19 = vpack.i.bf16 %v11780_v4, %v11759_v49  ;;  %v8924_v51 = vpack.i.bf16 %v11790_v44, %v11761_v32 }
 0x2f1   : > { %8870 = vrot.lane.b32.xlu0 %v8869_v34, %s10471_s0  ;;  %8845 = vrot.lane.b32.xlu1 %v11777_v10, %s10472_s2  ;;  %v8919_v10 = vpack.i.bf16 %v11821_v23, %v11802_v7 }
 0x2f5   : > { %8880 = vrot.lane.b32.xlu0 %v8879_v15, %s10471_s0  ;;  %8855 = vrot.lane.b32.xlu1 %v8794_v9, %s10472_s2 }
 0x2f9   : > { %8890 = vrot.lane.b32.xlu0 %v8869_v34, %s10472_s2  ;;  %8865 = vrot.lane.b32.xlu1 %v8804_v59, %s10472_s2 }
 0x2fd   : > { %8900 = vrot.lane.b32.xlu0 %v8879_v15, %s10472_s2  ;;  %8875 = vrot.lane.b32.xlu1 %v8874_v16, %s10471_s0 }
 0x301   : > { %8910 = vrot.lane.b32.xlu0 %v8909_v58, %s10471_s0  ;;  %8885 = vrot.lane.b32.xlu1 %v8884_v19, %s10471_s0 }
 0x305   : > { %8920 = vrot.lane.b32.xlu0 %v8919_v10, %s10471_s0  ;;  %8895 = vrot.lane.b32.xlu1 %v8874_v16, %s10472_s2 }
 0x309   : > { %8930 = vrot.lane.b32.xlu0 %v8909_v58, %s10472_s2  ;;  %8905 = vrot.lane.b32.xlu1 %v8884_v19, %s10472_s2 }
 0x30b   : > { %v8751_v47 = vpop.permute.xlu0 %8750 }
 0x30c   : > { %v8753_v45 = vunpack.i.h.bf16 %v8751_v47  ;;  %v8752_v59 = vunpack.i.l.bf16 %v8751_v47 }
 0x30d   : > { %8940 = vrot.lane.b32.xlu0 %v8919_v10, %s10472_s2  ;;  %8915 = vrot.lane.b32.xlu1 %v8914_v0, %s10471_s0 }
 0x30f   : > { %v11967_v1 = vpop.permute.xlu0 %8755 }
 0x310   : > { %v14695_v11 = vunpack.i.h.bf16 %v11967_v1 }
 0x311   : > { %8925 = vrot.lane.b32.xlu1 %v8924_v51, %s10471_s0  ;;  %s14929_s0 = smov %s14928_s30 }
 0x313   : > { %v8761_v35 = vpop.permute.xlu1 %8760 }
 0x314   : > { %v8763_v27 = vunpack.i.h.bf16 %v8761_v35  ;;  %v8762_v60 = vunpack.i.l.bf16 %v8761_v35 }
 0x315   : > { %8935 = vrot.lane.b32.xlu1 %v8914_v0, %s10472_s2 }
 0x317   : > { %v11971_v53 = vpop.permute.xlu1 %8765 }
 0x318   : > { %v14422_v34 = vunpack.i.l.bf16 %v11971_v53  ;;  %v14689_v0 = vunpack.i.h.bf16 %v11971_v53 }
 0x319   : > { %8945 = vrot.lane.b32.xlu1 %v8924_v51, %s10472_s2 }
 0x31a   : > { %v2777_v10 = vsel %vm806_vm4, %v8762_v60, %v14422_v34  ;;  %v2778_v47 = vsel %vm806_vm4, %v8763_v27, %v14689_v0 }
 0x31b   : > { %v8771_v12 = vpop.permute.xlu0 %8770 }
 0x31c   : > { %v8773_v51 = vunpack.i.h.bf16 %v8771_v12  ;;  %v8772_v15 = vunpack.i.l.bf16 %v8771_v12 }
 0x31f   : > { %v11969_v46 = vpop.permute.xlu0 %8775 }
 0x320   : > { %v14690_v12 = vunpack.i.l.bf16 %v11969_v46  ;;  %v14693_v0 = vunpack.i.h.bf16 %v11969_v46 }
 0x322   : > { %v2779_v18 = vsel %vm806_vm4, %v8772_v15, %v14690_v12  ;;  %v2780_v12 = vsel %vm806_vm4, %v8773_v51, %v14693_v0 }
 0x33b   : > { %v11975_v9 = vpop.permute.xlu1 %8780 }
 0x33c   : > { %v14421_v31 = vunpack.i.l.bf16 %v11975_v9 }
 0x343   : > { %v11973_v50 = vpop.permute.xlu0 %8785 }
 0x344   : > { %v14418_v22 = vunpack.i.h.bf16 %v11973_v50  ;;  %v14419_v39 = vunpack.i.l.bf16 %v11973_v50 }
 0x346   : > { %v2786_v58 = vsel %vm806_vm4, %v14418_v22, %v8763_v27  ;;  %v2785_v19 = vsel %vm806_vm4, %v14419_v39, %v8762_v60  ;;  %v2783_v22 = vsel %vm806_vm4, %v14421_v31, %v8752_v59  ;;  %v14691_v31 = vunpack.i.h.bf16 %v11975_v9 }
 0x347   : > { %v11979_v36 = vpop.permute.xlu0 %8800 }
 0x348   : > { %v2784_v54 = vsel %vm806_vm4, %v14691_v31, %v8753_v45  ;;  %v14694_v31 = vunpack.i.l.bf16 %v11967_v1  ;;  %v14432_v38 = vunpack.i.l.bf16 %v11979_v36 }
 0x34a   : > { %v2775_v25 = vsel %vm806_vm4, %v8752_v59, %v14694_v31 }
 0x34b   : > { %v11997_v35 = vpop.permute.xlu1 %8790  ;;  %v11999_v16 = vpop.permute.xlu0 %8810 }
 0x34c   : > { %v14427_v39 = vunpack.i.l.bf16 %v11997_v35  ;;  %v14692_v34 = vunpack.i.h.bf16 %v11997_v35 }
 0x34e   : > { %v2787_v60 = vsel %vm806_vm4, %v14427_v39, %v8772_v15  ;;  %v2788_v27 = vsel %vm806_vm4, %v14692_v34, %v8773_v51  ;;  %v14431_v39 = vunpack.i.h.bf16 %v11979_v36  ;;  %v10095_v34 = vpack.c.bf16 %v2780_v12, %v2779_v18 }
 0x34f   : > { %v12035_v42 = vpop.permute.xlu0 %8815  ;;  %v8796_v3 = vpop.permute.xlu1 %8795  ;;  %v2776_v51 = vsel %vm806_vm4, %v8753_v45, %v14695_v11  ;;  %v10097_v18 = vpack.c.bf16 %v2778_v47, %v2777_v10  ;;  %v10099_v45 = vpack.c.bf16 %v2788_v27, %v2787_v60  ;;  %v10104_v27 = vpack.c.bf16 %v2786_v58, %v2785_v19 }
 0x350   : > { %v8798_v20 = vunpack.i.h.bf16 %v8796_v3  ;;  %v8797_v15 = vunpack.i.l.bf16 %v8796_v3  ;;  %3574 = vmatprep.subr.bf16.mxu1 %v10095_v34  ;;  %v10102_v60 = vpack.c.bf16 %v2776_v51, %v2775_v25  ;;  %v14697_v25 = vunpack.i.l.bf16 %v12035_v42 }
 0x351   : > { %10100 = vmatpush1.bf16.msk.msra.mxu1 %vm11219_vm6, %v10099_v45 }
 0x352   : > { %v2782_v59 = vsel %vm806_vm4, %v14431_v39, %v8798_v20  ;;  %v2781_v3 = vsel %vm806_vm4, %v14432_v38, %v8797_v15  ;;  %3576 = vmatprep.subr.bf16.mxu1 %v10097_v18  ;;  %v8812_v18 = vunpack.i.l.bf16 %v11999_v16  ;;  %v8813_v38 = vunpack.i.h.bf16 %v11999_v16 }
 0x353   : > { %v12047_v0 = vpop.permute.xlu0 %8825  ;;  %v12049_v37 = vpop.permute.xlu1 %8805  ;;  %v14698_v16 = vunpack.i.h.bf16 %v12035_v42  ;;  %v10113_v26 = vpack.c.bf16 %v2782_v59, %v2781_v3 }
 0x354   : > { %v14434_v12 = vunpack.i.h.bf16 %v12049_v37  ;;  %v14433_v11 = vunpack.i.l.bf16 %v12049_v37  ;;  %v2457_v58 = vsel %vm2426_vm7, %v8812_v18, %v14697_v25  ;;  %v14436_v51 = vunpack.i.h.bf16 %v12047_v0 }
 0x355   : > { %10105 = vmatpush1.bf16.msk.msra.mxu1 %vm11219_vm6, %v10104_v27  ;;  %v2458_v25 = vsel %vm2426_vm7, %v8813_v38, %v14698_v16 }
 0x356   : > { %v2773_v39 = vsel %vm806_vm4, %v8797_v15, %v14433_v11  ;;  %v2774_v34 = vsel %vm806_vm4, %v8798_v20, %v14434_v12  ;;  %3578 = vmatprep.subr.bf16.mxu1 %v10102_v60  ;;  %v14437_v60 = vunpack.i.l.bf16 %v12047_v0  ;;  %v10109_v15 = vpack.c.bf16 %v2784_v54, %v2783_v22 }
 0x357   : > { %v12071_v10 = vpop.permute.xlu0 %8840  ;;  %v8821_v47 = vpop.permute.xlu1 %8820  ;;  %v10107_v19 = vpack.c.bf16 %v2774_v34, %v2773_v39  ;;  %v10115_v31 = vpack.c.bf16 %v2458_v25, %v2457_v58  ;;  %v14702_v25 = vunpack.i.l.bf16 %v11997_v35 }
 0x358   : > { %v8823_v45 = vunpack.i.h.bf16 %v8821_v47  ;;  %v8822_v11 = vunpack.i.l.bf16 %v8821_v47  ;;  %v8842_v5 = vunpack.i.l.bf16 %v12071_v10 }
 0x359   : > { %10110 = vmatpush1.bf16.msk.msra.mxu1 %vm11219_vm6, %v10109_v15 }
 0x35a   : > { %3580 = vmatprep.subr.bf16.mxu1 %v10107_v19  ;;  %v2464_v34 = vsel %vm2426_vm7, %v14436_v51, %v8823_v45  ;;  %v2463_v22 = vsel %vm2426_vm7, %v14437_v60, %v8822_v11  ;;  %v8843_v51 = vunpack.i.h.bf16 %v12071_v10 }
 0x35b   : > { %v12079_v20 = vpop.permute.xlu0 %8850  ;;  %v12081_v12 = vpop.permute.xlu1 %8830 }
 0x35c   : > { %v14439_v47 = vunpack.i.h.bf16 %v12081_v12  ;;  %v14440_v27 = vunpack.i.l.bf16 %v12081_v12 }
 0x35d   : > { %10114 = vmatpush1.bf16.msk.msra.mxu1 %vm11219_vm6, %v10113_v26 }
 0x35e   : > { %v2466_v54 = vsel %vm2426_vm7, %v14439_v47, %v8813_v38  ;;  %v2465_v15 = vsel %vm2426_vm7, %v14440_v27, %v8812_v18  ;;  %v14699_v38 = vunpack.i.l.bf16 %v12079_v20  ;;  %v14700_v47 = vunpack.i.h.bf16 %v12079_v20  ;;  %3582 = vmatprep.subr.bf16.mxu1 %v10115_v31 }
 0x35f   : > { %v12117_v19 = vpop.permute.xlu0 %8860  ;;  %v12119_v16 = vpop.permute.xlu1 %8835  ;;  %v10118_v31 = vpack.c.bf16 %v2466_v54, %v2465_v15 }
 0x360   : > { %v14444_v60 = vunpack.i.h.bf16 %v12119_v16  ;;  %v14443_v39 = vunpack.i.l.bf16 %v12119_v16  ;;  %v2453_v18 = vsel %vm2426_vm7, %v8842_v5, %v14699_v38  ;;  %v2454_v27 = vsel %vm2426_vm7, %v8843_v51, %v14700_v47 }
 0x361   : > { %10119 = vmatpush1.bf16.msk.msra.mxu1 %vm12168_vm9, %v10118_v31  ;;  %v14708_v31 = vunpack.i.l.bf16 %v12117_v19 }
 0x362   : > { %v2455_v10 = vsel %vm2426_vm7, %v8822_v11, %v14443_v39  ;;  %v2456_v26 = vsel %vm2426_vm7, %v8823_v45, %v14444_v60  ;;  %v14701_v45 = vunpack.i.h.bf16 %v11997_v35 }
 0x363   : > { %v12143_v59 = vpop.permute.xlu0 %8870  ;;  %v12145_v3 = vpop.permute.xlu1 %8845  ;;  %v10120_v52 = vpack.c.bf16 %v2456_v26, %v2455_v10  ;;  %v10123_v26 = vpack.c.bf16 %v2464_v34, %v2463_v22 }
 0x364   : > { %v14445_v38 = vunpack.i.h.bf16 %v12143_v59  ;;  %v14446_v23 = vunpack.i.l.bf16 %v12143_v59  ;;  %v8848_v11 = vunpack.i.h.bf16 %v12145_v3  ;;  %v8847_v39 = vunpack.i.l.bf16 %v12145_v3 }
 0x365   : > { %3584 = vmatprep.subr.bf16.mxu1 %v10120_v52 }
 0x366   : > { %v2756_v58 = vsel %vm806_vm4, %v14445_v38, %v14701_v45  ;;  %v2755_v60 = vsel %vm806_vm4, %v14446_v23, %v14702_v25  ;;  %v2462_v35 = vsel %vm2426_vm7, %v8848_v11, %v8843_v51  ;;  %v2461_v25 = vsel %vm2426_vm7, %v8847_v39, %v8842_v5  ;;  %10124 = vmatpush1.bf16.msk.msra.mxu1 %vm12168_vm9, %v10123_v26 }
 0x367   : > { %v8272_v45 = vpack.c.bf16 %v2756_v58, %v2756_v58  ;;  %v8269_v38 = vpack.c.bf16 %v2755_v60, %v2755_v60  ;;  %v12178_v23 = vpop.permute.xlu0 %8880  ;;  %v8856_v47 = vpop.permute.xlu1 %8855  ;;  %v14705_v60 = vunpack.i.h.bf16 %v11975_v9  ;;  %v14706_v5 = vunpack.i.l.bf16 %v11975_v9 }
 0x368   : > { %v14449_v48 = vunpack.i.h.bf16 %v12178_v23  ;;  %v8882_v7 = vunpack.i.l.bf16 %v12178_v23  ;;  %v8858_v54 = vunpack.i.h.bf16 %v8856_v47  ;;  %v8857_v15 = vunpack.i.l.bf16 %v8856_v47 }
 0x369   : > { %2980 = vst [vmem:[#allocation3 + $0x13c] sm:$0xf] %v8272_v45  ;;  %2977 = vst [vmem:[#allocation3 + $0x128] sm:$0xf] %v8269_v38  ;;  %v14707_v47 = vunpack.i.h.bf16 %v12117_v19  ;;  %v14709_v26 = vunpack.i.l.bf16 %v12081_v12 }
 0x36a   : > { %v2752_v51 = vsel %vm806_vm4, %v14449_v48, %v14705_v60  ;;  %v2751_v10 = vsel %vm806_vm4, %v8882_v7, %v14706_v5  ;;  %v2459_v9 = vsel %vm2426_vm7, %v14708_v31, %v8857_v15  ;;  %v14710_v31 = vunpack.i.h.bf16 %v12081_v12 }
 0x36b   : > { %v8260_v52 = vpack.c.bf16 %v2752_v51, %v2752_v51  ;;  %v8257_v38 = vpack.c.bf16 %v2751_v10, %v2751_v10  ;;  %v2460_v58 = vsel %vm2426_vm7, %v14707_v47, %v8858_v54  ;;  %v12204_v45 = vpop.permute.xlu0 %8890  ;;  %v12206_v60 = vpop.permute.xlu1 %8865  ;;  %v10125_v10 = vpack.c.bf16 %v2454_v27, %v2453_v18 }
 0x36c   : > { %v14455_v34 = vunpack.i.h.bf16 %v12204_v45  ;;  %v14450_v22 = vunpack.i.l.bf16 %v12204_v45  ;;  %v14451_v51 = vunpack.i.h.bf16 %v12206_v60  ;;  %v14452_v5 = vunpack.i.l.bf16 %v12206_v60 }
 0x36d   : > { %2968 = vst [vmem:[#allocation3 + $0xec] sm:$0xf] %v8260_v52  ;;  %2965 = vst [vmem:[#allocation3 + $0xd8] sm:$0xf] %v8257_v38  ;;  %3586 = vmatprep.subr.bf16.mxu1 %v10125_v10 }
 0x36e   : > { %v2433_v47 = vsel %vm2426_vm7, %v14450_v22, %v14709_v26  ;;  %v2434_v52 = vsel %vm2426_vm7, %v14455_v34, %v14710_v31  ;;  %v2451_v27 = vsel %vm2426_vm7, %v8857_v15, %v14452_v5  ;;  %v2452_v18 = vsel %vm2426_vm7, %v8858_v54, %v14451_v51 }
 0x36f   : > { %v8245_v38 = vpack.c.bf16 %v2433_v47, %v2433_v47  ;;  %v8248_v48 = vpack.c.bf16 %v2434_v52, %v2434_v52  ;;  %v12232_v26 = vpop.permute.xlu0 %8900  ;;  %v12234_v12 = vpop.permute.xlu1 %8875  ;;  %v10128_v31 = vpack.c.bf16 %v2462_v35, %v2461_v25  ;;  %v10130_v35 = vpack.c.bf16 %v2452_v18, %v2451_v27 }
 0x370   : > { %v14454_v22 = vunpack.i.h.bf16 %v12232_v26  ;;  %v14453_v47 = vunpack.i.l.bf16 %v12232_v26  ;;  %v8878_v15 = vunpack.i.h.bf16 %v12234_v12  ;;  %v8877_v52 = vunpack.i.l.bf16 %v12234_v12 }
 0x371   : > { %10129 = vmatpush1.bf16.msk.msra.mxu1 %vm12168_vm9, %v10128_v31  ;;  %2665 = vst [vmem:[#allocation3 + $0x88] sm:$0xf] %v8245_v38  ;;  %2668 = vst [vmem:[#allocation3 + $0x9c] sm:$0xf] %v8248_v48  ;;  %v14711_v38 = vunpack.i.h.bf16 %v11973_v50  ;;  %v14712_v31 = vunpack.i.l.bf16 %v11973_v50 }
 0x372   : > { %v2429_v54 = vsel %vm2426_vm7, %v14453_v47, %v8847_v39  ;;  %v2430_v10 = vsel %vm2426_vm7, %v14454_v22, %v8848_v11  ;;  %3588 = vmatprep.subr.bf16.mxu1 %v10130_v35  ;;  %v10133_v22 = vpack.c.bf16 %v2460_v58, %v2459_v9  ;;  %v14715_v35 = vunpack.i.l.bf16 %v11969_v46 }
 0x373   : > { %v8233_v25 = vpack.c.bf16 %v2429_v54, %v2429_v54  ;;  %v8236_v51 = vpack.c.bf16 %v2430_v10, %v2430_v10  ;;  %v2754_v48 = vsel %vm806_vm4, %v8878_v15, %v14711_v38  ;;  %v2753_v39 = vsel %vm806_vm4, %v8877_v52, %v14712_v31  ;;  %v8911_v5 = vpop.permute.xlu0 %8910  ;;  %v12262_v47 = vpop.permute.xlu1 %8885  ;;  %v9373_v10 = vld [vmem:[#allocation3 + $0x1bc] ss:$20 sps:$4 sm:$0xff]  }
 0x374   : > { %v8266_v11 = vpack.c.bf16 %v2754_v48, %v2754_v48  ;;  %v8263_v27 = vpack.c.bf16 %v2753_v39, %v2753_v39  ;;  %v8913_v18 = vunpack.i.h.bf16 %v8911_v5  ;;  %v8912_v54 = vunpack.i.l.bf16 %v8911_v5 }
 0x375   : > { %2653 = vst [vmem:[#allocation3 + $0x38] sm:$0xf] %v8233_v25  ;;  %2656 = vst [vmem:[#allocation3 + $0x4c] sm:$0xf] %v8236_v51  ;;  %v8888_v38 = vunpack.i.h.bf16 %v12262_v47  ;;  %v8887_v50 = vunpack.i.l.bf16 %v12262_v47  ;;  %10134 = vmatpush1.bf16.msk.msra.mxu1 %vm12168_vm9, %v10133_v22  ;;  %v14713_v31 = vunpack.i.l.bf16 %v12143_v59  ;;  %v14714_v5 = vunpack.i.h.bf16 %v12143_v59 }
 0x376   : > { %2974 = vst [vmem:[#allocation3 + $0x114] sm:$0xf] %v8266_v11  ;;  %2971 = vst [vmem:[#allocation3 + $0x100] sm:$0xf] %v8263_v27  ;;  %v2771_v58 = vsel %vm806_vm4, %v14715_v35, %v8912_v54  ;;  %v14716_v9 = vunpack.i.h.bf16 %v11969_v46  ;;  %3598 = vmatprep.subr.bf16.mxu1 %v9373_v10  ;;  %v14717_v25 = vunpack.i.h.bf16 %v11979_v36  ;;  %v14718_v39 = vunpack.i.l.bf16 %v11979_v36 }
 0x377   : > { %v2763_v48 = vsel %vm806_vm4, %v8912_v54, %v14713_v31  ;;  %v2764_v51 = vsel %vm806_vm4, %v8913_v18, %v14714_v5  ;;  %v8921_v27 = vpop.permute.xlu0 %8920  ;;  %v12296_v46 = vpop.permute.xlu1 %8895  ;;  %v9375_v54 = vld [vmem:[#allocation3 + $0x1b8] ss:$20 sps:$4 sm:$0xff]   ;;  %v9376_v31 = vld [vmem:[#allocation3 + $0x194] ss:$20 sps:$4 sm:$0xff]   ;;  %v14730_v47 = vunpack.i.l.bf16 %v12204_v45 }
 0x378   : > { %v2772_v22 = vsel %vm806_vm4, %v14716_v9, %v8913_v18  ;;  %v2750_v59 = vsel %vm806_vm4, %v8888_v38, %v14717_v25  ;;  %v2749_v11 = vsel %vm806_vm4, %v8887_v50, %v14718_v39  ;;  %v8898_v5 = vunpack.i.h.bf16 %v12296_v46 }
 0x379   : > { %v8254_v18 = vpack.c.bf16 %v2750_v59, %v2750_v59  ;;  %v8251_v10 = vpack.c.bf16 %v2749_v11, %v2749_v11  ;;  %v8897_v35 = vunpack.i.l.bf16 %v12296_v46  ;;  %3599 = vmatpush2.bf16.msra.mxu1 %v9375_v54  ;;  %v10135_v9 = vpack.c.bf16 %v2764_v51, %v2763_v48  ;;  %v9379_v54 = vld [vmem:[#allocation3 + $0x16c] ss:$20 sps:$4 sm:$0xff]  }
 0x37a   : > { %v10136_v25 = vpack.c.bf16 %v2772_v22, %v2771_v58  ;;  %v8923_v36 = vunpack.i.h.bf16 %v8921_v27  ;;  %v8922_v34 = vunpack.i.l.bf16 %v8921_v27  ;;  %3600 = vmatprep.subr.bf16.mxu1 %v9376_v31  ;;  %v14719_v39 = vunpack.i.h.bf16 %v12047_v0  ;;  %v9378_v58 = vld [vmem:[#allocation3 + $0x190] ss:$20 sps:$4 sm:$0xff]  }
 0x37b   : > { %2962 = vst [vmem:[#allocation3 + $0xc4] sm:$0xf] %v8254_v18  ;;  %2959 = vst [vmem:[#allocation3 + $0xb0] sm:$0xf] %v8251_v10  ;;  %v14720_v11 = vunpack.i.l.bf16 %v12047_v0  ;;  %v12312_v51 = vpop.permute.xlu1 %8905  ;;  %3647 = vmatprep.subr.bf16.mxu0 %v10135_v9  ;;  %v14721_v31 = vunpack.i.h.bf16 %v12178_v23 }
 0x37c   : > { %v2432_v59 = vsel %vm2426_vm7, %v8898_v5, %v14719_v39  ;;  %3648 = vmatpush1.bf16.msra.mxu0 %v10136_v25  ;;  %v14456_v18 = vunpack.i.h.bf16 %v12312_v51  ;;  %v8907_v10 = vunpack.i.l.bf16 %v12312_v51  ;;  %v2759_v0 = vsel %vm806_vm4, %v8922_v34, %v8882_v7 }
 0x37d   : > { %v2431_v48 = vsel %vm2426_vm7, %v8897_v35, %v14720_v11  ;;  %v8242_v22 = vpack.c.bf16 %v2432_v59, %v2432_v59  ;;  %3601 = vmatpush2.bf16.msra.mxu1 %v9378_v58  ;;  %v2760_v9 = vsel %vm806_vm4, %v8923_v36, %v14721_v31  ;;  %v14722_v25 = vunpack.i.l.bf16 %v11967_v1 }
 0x37e   : > { %v8239_v27 = vpack.c.bf16 %v2431_v48, %v2431_v48  ;;  %3602 = vmatprep.subr.bf16.mxu1 %v9379_v54  ;;  %v14723_v59 = vunpack.i.h.bf16 %v11967_v1  ;;  %v14724_v7 = vunpack.i.h.bf16 %v12117_v19  ;;  %v14725_v48 = vunpack.i.l.bf16 %v12117_v19  ;;  %v9381_v1 = vld [vmem:[#allocation3 + $0x168] ss:$20 sps:$4 sm:$0xff]  }
 0x37f   : > { %2662 = vst [vmem:[#allocation3 + $0x74] sm:$0xf] %v8242_v22  ;;  %v12328_v39 = vsel %vm806_vm4, %v14722_v25, %v8922_v34  ;;  %v8916_v58 = vpop.permute.xlu1 %8915  ;;  %v8931_v22 = vpop.permute.xlu0 %8930  ;;  %v10137_v54 = vpack.c.bf16 %v11884_v56, %v11896_v29  ;;  %v10138_v19 = vpack.c.bf16 %v11855_v30, %v11873_v8 }
 0x380   : > { %2659 = vst [vmem:[#allocation3 + $0x60] sm:$0xf] %v8239_v27  ;;  %v12334_v11 = vsel %vm806_vm4, %v14723_v59, %v8923_v36  ;;  %v2428_v23 = vsel %vm2426_vm7, %v14456_v18, %v14724_v7  ;;  %v2427_v34 = vsel %vm2426_vm7, %v8907_v10, %v14725_v48  ;;  %v8918_v31 = vunpack.i.h.bf16 %v8916_v58  ;;  %v12368_v18 = vld [vmem:[#allocation9 + $0x40] ss:$8 sps:$4 sm:$0xff]  }
 0x381   : > { %v8230_v27 = vpack.c.bf16 %v2428_v23, %v2428_v23  ;;  %v8227_v36 = vpack.c.bf16 %v2427_v34, %v2427_v34  ;;  %v8917_v25 = vunpack.i.l.bf16 %v8916_v58  ;;  %3603 = vmatpush2.bf16.msra.mxu1 %v9381_v1  ;;  %v8933_v59 = vunpack.i.h.bf16 %v8931_v22 }
 0x382   : > { %3604 = vmatprep.subr.bf16.mxu1 %v10137_v54  ;;  %v8932_v7 = vunpack.i.l.bf16 %v8931_v22  ;;  %v14726_v48 = vunpack.i.h.bf16 %v11971_v53  ;;  %v2762_v1 = vsel %vm806_vm4, %v8918_v31, %v8878_v15 }
 0x383   : > { %2650 = vst [vmem:[#allocation3 + $0x24] sm:$0xf] %v8230_v27  ;;  %2647 = vst [vmem:[#allocation3 + $0x10] sm:$0xf] %v8227_v36  ;;  %v2761_v34 = vsel %vm806_vm4, %v8917_v25, %v8877_v52  ;;  %v8926_v58 = vpop.permute.xlu1 %8925  ;;  %v14727_v27 = vunpack.i.l.bf16 %v11971_v53  ;;  %v14728_v53 = vunpack.i.l.bf16 %v12049_v37 }
 0x384   : > { %v2770_v23 = vsel %vm806_vm4, %v14726_v48, %v8918_v31  ;;  %v8928_v36 = vunpack.i.h.bf16 %v8926_v58  ;;  %v8927_v54 = vunpack.i.l.bf16 %v8926_v58  ;;  %v14729_v31 = vunpack.i.h.bf16 %v12049_v37  ;;  %v9385_v58 = vld [vmem:[#allocation3 + $0x128] ss:$20 sps:$4 sm:$0xff]  }
 0x385   : > { %v2769_v22 = vsel %vm806_vm4, %v14727_v27, %v8917_v25  ;;  %3605 = vmatpush2.bf16.msra.mxu1 %v10138_v19  ;;  %v10139_v48 = vpack.c.bf16 %v2762_v1, %v2761_v34  ;;  %v14731_v27 = vunpack.i.h.bf16 %v12204_v45  ;;  %v14732_v37 = vunpack.i.l.bf16 %v12035_v42  ;;  %v8941_v45 = vpop.permute.xlu0 %8940 }
 0x386   : > { %v2757_v52 = vsel %vm806_vm4, %v8927_v54, %v8887_v50  ;;  %v2758_v12 = vsel %vm806_vm4, %v8928_v36, %v8888_v38  ;;  %v2765_v15 = vsel %vm806_vm4, %v14728_v53, %v8927_v54  ;;  %v2766_v25 = vsel %vm806_vm4, %v14729_v31, %v8928_v36  ;;  %3720 = vmatprep.subr.bf16.mxu1 %v14618_v17 }
 0x387   : > { %v8936_v19 = vpop.permute.xlu1 %8935  ;;  %v10140_v50 = vpack.c.bf16 %v2770_v23, %v2769_v22  ;;  %v2441_v38 = vsel %vm2426_vm7, %v8932_v7, %v14730_v47  ;;  %v2442_v54 = vsel %vm2426_vm7, %v8933_v59, %v14731_v27  ;;  %v2449_v36 = vsel %vm2426_vm7, %v14732_v37, %v8932_v7  ;;  %v12400_v23 = vld [vmem:[#allocation9 + $0x54] ss:$8 sps:$4 sm:$0xff]   ;;  %3649 = vmatprep.subr.bf16.mxu0 %v10139_v48 }
 0x388   : > { %3607 = vmatmul.mubr.bf16.vlgmr.msra.gmra.mxu1 %v12368_v18  ;;  %v10141_v34 = vpack.c.bf16 %v2760_v9, %v2759_v0  ;;  %v14733_v1 = vunpack.i.h.bf16 %v12035_v42  ;;  %v8938_v53 = vunpack.i.h.bf16 %v8936_v19  ;;  %v8937_v31 = vunpack.i.l.bf16 %v8936_v19  ;;  %v9386_v7 = vld [vmem:[#allocation3 + $0x100] ss:$20 sps:$4 sm:$0xff]   ;;  %v12411_v42 = vld [vmem:[#allocation9 + $0x50] ss:$8 sps:$4 sm:$0xff]  }
 0x389   : > { %3721 = vmatpush1.bf16.msra.mxu1 %v9385_v58  ;;  %3650 = vmatpush1.bf16.msra.mxu0 %v10140_v50  ;;  %v10142_v0 = vpack.c.bf16 %v12334_v11, %v12328_v39  ;;  %v8943_v9 = vunpack.i.h.bf16 %v8941_v45  ;;  %v10143_v48 = vpack.c.bf16 %v2758_v12, %v2757_v52  ;;  %v12413_v58 = vld [vmem:[#allocation9 + $0x64] ss:$8 sps:$4 sm:$0xff]   ;;  %v14734_v11 = vunpack.i.l.bf16 %v12119_v16 }
 0x38a   : > { %v2450_v22 = vsel %vm2426_vm7, %v14733_v1, %v8933_v59  ;;  %3651 = vmatprep.subr.bf16.mxu0 %v10141_v34  ;;  %3722 = vmatprep.subr.bf16.mxu1 %v14618_v17  ;;  %v8942_v59 = vunpack.i.l.bf16 %v8941_v45  ;;  %v2439_v19 = vsel %vm2426_vm7, %v8937_v31, %v8897_v35  ;;  %v2440_v39 = vsel %vm2426_vm7, %v8938_v53, %v8898_v5  ;;  %v9390_v35 = vld [vmem:[#allocation3 + $0xd8] ss:$20 sps:$4 sm:$0xff]  }
 0x38b   : > { %7829 = vmatprep.mubr.msk.bf16.mxu1 %vm1957_vm0, %v12400_v23  ;;  %v2447_v50 = vsel %vm2426_vm7, %v14734_v11, %v8937_v31  ;;  %v14735_v47 = vunpack.i.h.bf16 %v12119_v16  ;;  %v8946_v12 = vpop.permute.xlu1 %8945  ;;  %v10144_v46 = vpack.c.bf16 %v2766_v25, %v2765_v15  ;;  %v10145_v5 = vpack.c.bf16 %v2442_v54, %v2441_v38  ;;  %v12452_v31 = vld [vmem:[#allocation9 + $0x60] ss:$8 sps:$4 sm:$0xff]  }
 0x38c   : > { %v14736_v27 = vunpack.i.l.bf16 %v12232_v26  ;;  %v8947_v34 = vunpack.i.l.bf16 %v8946_v12  ;;  %v14737_v16 = vunpack.i.h.bf16 %v12232_v26  ;;  %v14738_v45 = vunpack.i.l.bf16 %v12079_v20 }
 0x38d   : > { %3723 = vmatpush1.bf16.msra.mxu1 %v9386_v7  ;;  %v2448_v52 = vsel %vm2426_vm7, %v14735_v47, %v8938_v53  ;;  %3652 = vmatpush1.bf16.msra.mxu0 %v10142_v0  ;;  %v14739_v25 = vunpack.i.h.bf16 %v12079_v20  ;;  %v8948_v54 = vunpack.i.h.bf16 %v8946_v12  ;;  %v9391_v53 = vld [vmem:[#allocation3 + $0xb0] ss:$20 sps:$4 sm:$0xff]   ;;  %v10146_v26 = vpack.c.bf16 %v2450_v22, %v2449_v36  ;;  %v12458_v20 = vld [vmem:[#allocation9 + $0x74] ss:$8 sps:$4 sm:$0xff]  }
 0x38e   : > { %3653 = vmatprep.subr.bf16.mxu0 %v10143_v48  ;;  %3724 = vmatprep.subr.bf16.mxu1 %v14618_v17  ;;  %v2437_v37 = vsel %vm2426_vm7, %v8942_v59, %v14736_v27  ;;  %v2438_v1 = vsel %vm2426_vm7, %v8943_v9, %v14737_v16  ;;  %v2445_v15 = vsel %vm2426_vm7, %v14738_v45, %v8942_v59  ;;  %v14741_v48 = vunpack.i.l.bf16 %v12206_v60  ;;  %v9399_v47 = vld [vmem:[#allocation9 + $0x70] ss:$8 sps:$4 sm:$0xff]   ;;  %v9409_v16 = vld [vmem:[#allocation3 + $0x174] ss:$20 sps:$4 sm:$0xff]   ;;  %v9413_v45 = vld [vmem:[#allocation3 + $0x14c] ss:$20 sps:$4 sm:$0xff]  }
 0x38f   : > { %v2446_v38 = vsel %vm2426_vm7, %v14739_v25, %v8943_v9  ;;  %v2435_v7 = vsel %vm2426_vm7, %v8947_v34, %v8907_v10  ;;  %v10147_v0 = vpack.c.bf16 %v2440_v39, %v2439_v19  ;;  %v14740_v9 = vunpack.i.h.bf16 %v12312_v51  ;;  %v9395_v10 = vld [vmem:[#allocation3 + $0x88] ss:$20 sps:$4 sm:$0xff]  }
 0x390   : > { %3617 = vmatmul.mubr.bf16.gmra.mxu1 %v12411_v42  ;;  %v2443_v36 = vsel %vm2426_vm7, %v14741_v48, %v8947_v34  ;;  %v14742_v22 = vunpack.i.h.bf16 %v12206_v60  ;;  %v10148_v51 = vpack.c.bf16 %v2448_v52, %v2447_v50  ;;  %v10149_v19 = vpack.c.bf16 %v2438_v1, %v2437_v37  ;;  %v9396_v60 = vld [vmem:[#allocation3 + $0x60] ss:$20 sps:$4 sm:$0xff]   ;;  %v9401_v52 = vld [vmem:[#allocation3 + $0x1c4] ss:$20 sps:$4 sm:$0xff]   ;;  %v9405_v27 = vld [vmem:[#allocation3 + $0x19c] ss:$20 sps:$4 sm:$0xff]  }
 0x391   : > { %3725 = vmatpush1.bf16.msra.mxu1 %v9390_v35  ;;  %7830 = vmatprep.mubr.msk.bf16.mxu1 %vm1957_vm0, %v12413_v58  ;;  %v2436_v59 = vsel %vm2426_vm7, %v8948_v54, %v14740_v9  ;;  %v10150_v39 = vpack.c.bf16 %v2446_v38, %v2445_v15  ;;  %v9400_v35 = vld [vmem:[#allocation3 + $0x38] ss:$20 sps:$4 sm:$0xff]   ;;  %v9408_v37 = vld [vmem:[#allocation3 + $0x1c8] ss:$20 sps:$4 sm:$0xff]   ;;  %v9411_v1 = vld [vmem:[#allocation3 + $0x170] ss:$20 sps:$4 sm:$0xff]  }
 0x392   : > { %3654 = vmatpush1.bf16.msra.mxu0 %v10144_v46  ;;  %3726 = vmatprep.subr.bf16.mxu1 %v14618_v17  ;;  %v2444_v11 = vsel %vm2426_vm7, %v14742_v22, %v8948_v54  ;;  %v10151_v12 = vpack.c.bf16 %v2436_v59, %v2435_v7  ;;  %v9404_v46 = vld [vmem:[#allocation3 + $0x10] ss:$20 sps:$4 sm:$0xff]   ;;  %v9407_v34 = vld [vmem:[#allocation3 + $0x198] ss:$20 sps:$4 sm:$0xff]   ;;  %v9415_v25 = vld [vmem:[#allocation3 + $0x148] ss:$20 sps:$4 sm:$0xff]  }
 0x393   : > { %3655 = vmatprep.subr.bf16.mxu0 %v10145_v5  ;;  %v10152_v50 = vpack.c.bf16 %v2444_v11, %v2443_v36  ;;  %v9403_v5 = vld [vmem:[#allocation3 + $0x1c0] ss:$20 sps:$4 sm:$0xff]   ;;  %v9416_v15 = vld [vmem:[#allocation3 + $0x178] ss:$20 sps:$4 sm:$0xff]   ;;  %v9417_v38 = vld [vmem:[#allocation3 + $0x150] ss:$20 sps:$4 sm:$0xff]  }
 0x395   : > { %3727 = vmatpush1.bf16.msra.mxu1 %v9391_v53 }
 0x396   : > { %3656 = vmatpush1.bf16.msra.mxu0 %v10146_v26  ;;  %3728 = vmatprep.subr.bf16.mxu1 %v14618_v17 }
 0x397   : > { %3657 = vmatprep.subr.bf16.mxu0 %v10147_v0 }
 0x398   : > { %3627 = vmatmul.mubr.bf16.gmra.mxu1 %v12452_v31 }
 0x399   : > { %3729 = vmatpush1.bf16.msra.mxu1 %v9395_v10  ;;  %7831 = vmatprep.mubr.msk.bf16.mxu1 %vm1957_vm0, %v12458_v20 }
 0x39a   : > { %3658 = vmatpush1.bf16.msra.mxu0 %v10148_v51  ;;  %3730 = vmatprep.subr.bf16.mxu1 %v14618_v17 }
 0x39b   : > { %3659 = vmatprep.subr.bf16.mxu0 %v10149_v19 }
 0x39d   : > { %3731 = vmatpush1.bf16.msra.mxu1 %v9396_v60  ;;  %v9911_v60 = vld [vmem:[%s10672_s23 + $0x10] sm:$0xff] }
 0x39e   : > { %3660 = vmatpush1.bf16.msra.mxu0 %v10150_v39  ;;  %3732 = vmatprep.subr.bf16.mxu1 %v14618_v17 }
 0x39f   : > { %3661 = vmatprep.subr.bf16.mxu0 %v10151_v12 }
 0x3a0   : > { %3637 = vmatmul.mubr.bf16.gmra.mxu1 %v9399_v47 }
 0x3a1   : > { %3733 = vmatpush1.bf16.msra.mxu1 %v9400_v35  ;;  %7836 = vmatprep.mubr.msk.bf16.mxu1 %vm1957_vm0, %v11958_v57  ;;  %v9412_v57 = vld [vmem:[#allocation3 + $0x1a0] ss:$20 sps:$4 sm:$0xff]  }
 0x3a2   : > { %3662 = vmatpush1.bf16.msra.mxu0 %v10152_v50  ;;  %3734 = vmatprep.subr.bf16.mxu1 %v14618_v17  ;;  %v9913_v50 = vld [vmem:[%s10672_s23 + $0x18] sm:$0xff] }
 0x3a3   : > { %3671 = vmatprep.subr.bf16.mxu0 %v9401_v52 }
 0x3a5   : > { %3735 = vmatpush1.bf16.msra.mxu1 %v9404_v46 }
 0x3a6   : > { %3672 = vmatpush2.bf16.msra.mxu0 %v9403_v5  ;;  %3744 = vmatprep.subr.bf16.mxu1 %v14618_v17 }
 0x3a7   : > { %3673 = vmatprep.subr.bf16.mxu0 %v9405_v27 }
 0x3a9   : > { %3745 = vmatpush2.bf16.msra.mxu1 %v9408_v37  ;;  %v9914_v37 = vld [vmem:[%s10680_s26 + $0x60] sm:$0xff] }
 0x3aa   : > { %3674 = vmatpush2.bf16.msra.mxu0 %v9407_v34  ;;  %3746 = vmatprep.subr.bf16.mxu1 %v14618_v17 }
 0x3ab   : > { %3675 = vmatprep.subr.bf16.mxu0 %v9409_v16 }
 0x3ad   : > { %3747 = vmatpush2.bf16.msra.mxu1 %v9412_v57 }
 0x3ae   : > { %3676 = vmatpush2.bf16.msra.mxu0 %v9411_v1  ;;  %3748 = vmatprep.subr.bf16.mxu1 %v14618_v17 }
 0x3af   : > { %3677 = vmatprep.subr.bf16.mxu0 %v9413_v45 }
 0x3b1   : > { %3749 = vmatpush2.bf16.msra.mxu1 %v9416_v15 }
 0x3b2   : > { %3678 = vmatpush2.bf16.msra.mxu0 %v9415_v25  ;;  %3750 = vmatprep.subr.bf16.mxu1 %v14618_v17 }
 0x3b5   : > { %3680 = vmatmul.mubr.bf16.vlgmr.msra.gmra.mxu0 %v12368_v18  ;;  %3751 = vmatpush2.bf16.msra.mxu1 %v9417_v38  ;;  %v9915_v38 = vld [vmem:[%s10672_s23 + $0x20] sm:$0xff] }
 0x3b6   : > { %7833 = vmatprep.mubr.msk.bf16.mxu0 %vm1957_vm0, %v12400_v23 }
 0x3b8   : > { %3753 = vmatmul.mubr.bf16.vlgmr.msra.gmra.mxu1 %v12368_v18 }
 0x3b9   : > { %7837 = vmatprep.mubr.msk.bf16.mxu1 %vm1957_vm0, %v12400_v23 }
 0x3bd   : > { %3690 = vmatmul.mubr.bf16.gmra.mxu0 %v12411_v42 }
 0x3be   : > { %7834 = vmatprep.mubr.msk.bf16.mxu0 %vm1957_vm0, %v12413_v58 }
 0x3c0   : > { %3761 = vmatmul.mubr.bf16.gmra.mxu1 %v12411_v42 }
 0x3c1   : > { %7838 = vmatprep.mubr.msk.bf16.mxu1 %vm1957_vm0, %v12413_v58 }
 0x3c5   : > { %3700 = vmatmul.mubr.bf16.gmra.mxu0 %v12452_v31 }
 0x3c6   : > { %7835 = vmatprep.mubr.msk.bf16.mxu0 %vm1957_vm0, %v12458_v20 }
 0x3c8   : > { %3769 = vmatmul.mubr.bf16.gmra.mxu1 %v12452_v31 }
 0x3c9   : > { %7839 = vmatprep.mubr.msk.bf16.mxu1 %vm1957_vm0, %v12458_v20 }
 0x3cd   : > { %3710 = vmatmul.mubr.bf16.gmra.mxu0 %v9399_v47 }
 0x3d0   : > { %3777 = vmatmul.mubr.bf16.gmra.mxu1 %v9399_v47  ;;  %v9912_v47 = vld [vmem:[%s10680_s26 + $0x40] sm:$0xff] }
 0x448   : > { %v12503_v18 = vpop.f32.mrf.mxu1 }
 0x44a   : > { %v12505_v23 = vpop.f32.mrf.mxu1 }
 0x44c   : > { %v12507_v42 = vpop.f32.mrf.mxu1 }
 0x44e   : > { %v12509_v54 = vpop.f32.mrf.mxu1 }
 0x450   : > { %v3618_v58 = vpop.f32.mrf.mxu1 }
 0x451   : > { %9663 = vtanh.f32 %v3618_v58  ;;  %v9916_v58 = vld [vmem:[%s10680_s26 + $0x80] sm:$0xff] }
 0x452   : > { %v3620_v53 = vpop.f32.mrf.mxu1 }
 0x453   : > { %9665 = vtanh.f32 %v3620_v53 }
 0x454   : > { %v3622_v26 = vpop.f32.mrf.mxu1 }
 0x455   : > { %9667 = vtanh.f32 %v3622_v26 }
 0x456   : > { %v3624_v31 = vpop.f32.mrf.mxu1 }
 0x457   : > { %9669 = vtanh.f32 %v3624_v31 }
 0x458   : > { %v3628_v7 = vpop.f32.mrf.mxu1 }
 0x459   : > { %9671 = vtanh.f32 %v3628_v7 }
 0x45a   : > { %v3630_v0 = vpop.f32.mrf.mxu1 }
 0x45b   : > { %9673 = vtanh.f32 %v3630_v0 }
 0x45c   : > { %v3632_v20 = vpop.f32.mrf.mxu1 }
 0x45d   : > { %9675 = vtanh.f32 %v3632_v20 }
 0x45e   : > { %v9664_v9 = vpop.eup %9663  ;;  %v3634_v59 = vpop.f32.mrf.mxu1 }
 0x45f   : > { %9677 = vtanh.f32 %v3634_v59  ;;  %v3835_v48 = vadd.f32 %v9664_v9, %v11643_v6  ;;  %v9918_v9 = vld [vmem:[%s10680_s26 + $0xa0] sm:$0xff] }
 0x460   : > { %v9666_v36 = vpop.eup %9665  ;;  %v3638_v22 = vpop.f32.mrf.mxu1 }
 0x461   : > { %9679 = vtanh.f32 %v3638_v22  ;;  %v3836_v11 = vadd.f32 %v9666_v36, %v11645_v28  ;;  %v12515_v39 = vadd.f32 %v9911_v60, %v3835_v48  ;;  %v9919_v60 = vld [vmem:[%s10672_s23 + $0x30] sm:$0xff] }
 0x462   : > { %v9668_v10 = vpop.eup %9667  ;;  %v3640_v51 = vpop.f32.mrf.mxu1 }
 0x463   : > { %v3840_v19 = vadd.f32 %v9668_v10, %v11648_v33  ;;  %v12518_v12 = vadd.f32 %v9912_v47, %v3836_v11  ;;  %9681 = vtanh.f32 %v3640_v51 }
 0x464   : > { %v9670_v35 = vpop.eup %9669  ;;  %v3642_v6 = vpop.f32.mrf.mxu1 }
 0x465   : > { %9683 = vtanh.f32 %v3642_v6  ;;  %v12521_v52 = vadd.f32 %v9913_v50, %v3840_v19  ;;  %v3841_v28 = vadd.f32 %v9670_v35, %v11657_v55  ;;  %v8351_v46 = vpack.c.bf16 %v12518_v12, %v12515_v39  ;;  %v9920_v35 = vld [vmem:[%s10672_s23 + $0x38] sm:$0xff] }
 0x466   : > { %v9672_v33 = vpop.eup %9671  ;;  %v3644_v5 = vpop.f32.mrf.mxu1 }
 0x467   : > { %9685 = vtanh.f32 %v3644_v5  ;;  %v12528_v27 = vpack.i.bf16 %v12521_v52, %v12515_v39  ;;  %v12531_v34 = vadd.f32 %v9914_v37, %v3841_v28  ;;  %4719 = vst [vmem:[#allocation3 + $0x168] sm:$0xff] %v8351_v46  ;;  %v3845_v16 = vadd.f32 %v9672_v33, %v11673_v21  ;;  %v9921_v46 = vld [vmem:[%s10680_s26 + $0xe0] sm:$0xff] }
 0x468   : > { %v9674_v55 = vpop.eup %9673 }
 0x469   : > { %8950 = vrot.lane.b32.xlu0 %v12528_v27, %s10472_s2  ;;  %v8354_v57 = vpack.c.bf16 %v12531_v34, %v12521_v52  ;;  %v3846_v1 = vadd.f32 %v9674_v55, %v11675_v63  ;;  %v12541_v15 = vpack.i.bf16 %v12531_v34, %v12518_v12  ;;  %v12545_v21 = vadd.f32 %v9915_v38, %v3845_v16  ;;  %v9917_v63 = vld [vmem:[%s10672_s23 + $0x28] sm:$0xff]  ;;  %v9922_v16 = vld [vmem:[%s10680_s26 + $0xc0] sm:$0xff] }
 0x46a   : > { %v9676_v45 = vpop.eup %9675 }
 0x46b   : > { %4722 = vst [vmem:[#allocation3 + $0x17c] sm:$0xff] %v8354_v57  ;;  %v3850_v25 = vadd.f32 %v9676_v45, %v11680_v61  ;;  %v12548_v53 = vadd.f32 %v9916_v58, %v3846_v1 }
 0x46c   : > { %v9678_v26 = vpop.eup %9677 }
 0x46d   : > { %8955 = vrot.lane.b32.xlu0 %v12541_v15, %s10472_s2  ;;  %v12553_v31 = vadd.f32 %v9917_v63, %v3850_v25  ;;  %v3851_v7 = vadd.f32 %v9678_v26, %v11689_v40  ;;  %v8357_v0 = vpack.c.bf16 %v12548_v53, %v12545_v21 }
 0x46e   : > { %v9680_v20 = vpop.eup %9679 }
 0x46f   : > { %v12560_v61 = vpack.i.bf16 %v12553_v31, %v12545_v21  ;;  %v12563_v59 = vadd.f32 %v9918_v9, %v3851_v7  ;;  %4725 = vst [vmem:[#allocation3 + $0x190] sm:$0xff] %v8357_v0  ;;  %v3855_v36 = vadd.f32 %v9680_v20, %v11705_v62 }
 0x470   : > { %v9682_v48 = vpop.eup %9681 }
 0x471   : > { %8960 = vrot.lane.b32.xlu1 %v12560_v61, %s10472_s2  ;;  %v8360_v40 = vpack.c.bf16 %v12563_v59, %v12553_v31  ;;  %v12572_v11 = vpack.i.bf16 %v12563_v59, %v12548_v53  ;;  %v12578_v47 = vadd.f32 %v9919_v60, %v3855_v36  ;;  %v3856_v6 = vadd.f32 %v9682_v48, %v11707_v24 }
 0x472   : > { %v9684_v22 = vpop.eup %9683 }
 0x473   : > { %4728 = vst [vmem:[#allocation3 + $0x1a4] sm:$0xff] %v8360_v40  ;;  %v3860_v10 = vadd.f32 %v9684_v22, %v11712_v13  ;;  %v12595_v24 = vadd.f32 %v9922_v16, %v3856_v6  ;;  %v9923_v6 = vld [vmem:[%s10680_s26 + $0x10] sm:$0xff] }
 0x474   : > { %v9686_v51 = vpop.eup %9685 }
 0x475   : > { %v3681_v19 = vpop.f32.mrf.mxu0  ;;  %8965 = vrot.lane.b32.xlu1 %v12572_v11, %s10472_s2  ;;  %v12581_v62 = vadd.f32 %v9920_v35, %v3860_v10  ;;  %v3861_v50 = vadd.f32 %v9686_v51, %v11721_v43 }
 0x476   : > { %9687 = vtanh.f32 %v3681_v19 }
 0x477   : > { %v3683_v28 = vpop.f32.mrf.mxu0  ;;  %v12587_v13 = vpack.i.bf16 %v12581_v62, %v12578_v47  ;;  %v12590_v33 = vadd.f32 %v9921_v46, %v3861_v50  ;;  %v9924_v50 = vld [vmem:[%s10680_s26 + $0x8] sm:$0xff] }
 0x478   : > { %9689 = vtanh.f32 %v3683_v28  ;;  %v3754_v5 = vpop.f32.mrf.mxu1 }
 0x479   : > { %v3685_v37 = vpop.f32.mrf.mxu0  ;;  %9691 = vtanh.f32 %v3754_v5  ;;  %8970 = vrot.lane.b32.xlu0 %v12587_v13, %s10472_s2  ;;  %v12599_v57 = vpack.i.bf16 %v12590_v33, %v12595_v24 }
 0x47a   : > { %v3756_v43 = vpop.f32.mrf.mxu1  ;;  %9693 = vtanh.f32 %v3685_v37  ;;  %v9925_v37 = vld [vmem:[%s10680_s26 + $0x18] sm:$0xff] }
 0x47b   : > { %v3687_v55 = vpop.f32.mrf.mxu0 }
 0x47c   : > { %9695 = vtanh.f32 %v3687_v55  ;;  %v3757_v1 = vpop.f32.mrf.mxu1 }
 0x47d   : > { %v3691_v45 = vpop.f32.mrf.mxu0  ;;  %9697 = vtanh.f32 %v3757_v1  ;;  %8975 = vrot.lane.b32.xlu0 %v12599_v57, %s10472_s2 }
 0x47e   : > { %9699 = vtanh.f32 %v3691_v45  ;;  %v3759_v25 = vpop.f32.mrf.mxu1 }
 0x47f   : > { %v3693_v38 = vpop.f32.mrf.mxu0 }
 0x480   : > { %9701 = vtanh.f32 %v3693_v38  ;;  %v3762_v58 = vpop.f32.mrf.mxu1 }
 0x481   : > { %v3695_v26 = vpop.f32.mrf.mxu0  ;;  %9703 = vtanh.f32 %v3762_v58 }
 0x482   : > { %9705 = vtanh.f32 %v3695_v26  ;;  %v3764_v63 = vpop.f32.mrf.mxu1  ;;  %v14743_v26 = vld [vmem:[#allocation41_spill] sm:$0xff] }
 0x483   : > { %v9688_v7 = vpop.eup %9687  ;;  %v3697_v0 = vpop.f32.mrf.mxu0 }
 0x484   : > { %v3827_v20 = vadd.f32 %v9688_v7, %v11761_v32  ;;  %9707 = vtanh.f32 %v3697_v0  ;;  %v3765_v9 = vpop.f32.mrf.mxu1 }
 0x485   : > { %v9690_v48 = vpop.eup %9689  ;;  %v3701_v40 = vpop.f32.mrf.mxu0  ;;  %9709 = vtanh.f32 %v3765_v9 }
 0x486   : > { %v9692_v36 = vpop.eup %9691  ;;  %v3828_v22 = vadd.f32 %v9690_v48, %v11759_v49  ;;  %9711 = vtanh.f32 %v3701_v40  ;;  %v3767_v10 = vpop.f32.mrf.mxu1  ;;  %v12610_v28 = vadd.f32 %v9924_v50, %v3827_v20  ;;  %v9926_v20 = vld [vmem:[%s10680_s26 + $0x38] sm:$0xff]  ;;  %v14744_v40 = vld [vmem:[#allocation42_spill] sm:$0xff] }
 0x487   : > { %v3829_v51 = vadd.f32 %v9692_v36, %v11735_v41  ;;  %v3703_v19 = vpop.f32.mrf.mxu0  ;;  %v9694_v60 = vpop.eup %9693 }
 0x488   : > { %9713 = vtanh.f32 %v3703_v19  ;;  %v3770_v35 = vpop.f32.mrf.mxu1  ;;  %v12607_v32 = vadd.f32 %v9923_v6, %v3828_v22  ;;  %v3832_v45 = vadd.f32 %v9694_v60, %v11790_v44  ;;  %v9927_v44 = vld [vmem:[%s10680_s26 + $0x30] sm:$0xff]  ;;  %v14745_v19 = vld [vmem:[#allocation40_spill] sm:$0xff]  ;;  %v9928_v6 = vld [vmem:[%s10680_s26 + $0x28] sm:$0xff] }
 0x489   : > { %v9696_v46 = vpop.eup %9695  ;;  %v3705_v5 = vpop.f32.mrf.mxu0  ;;  %9715 = vtanh.f32 %v3770_v35  ;;  %v12613_v16 = vadd.f32 %v9925_v37, %v3829_v51 }
 0x48a   : > { %v9698_v49 = vpop.eup %9697  ;;  %v3833_v43 = vadd.f32 %v9696_v46, %v11780_v4  ;;  %9717 = vtanh.f32 %v3705_v5  ;;  %v3772_v41 = vpop.f32.mrf.mxu1  ;;  %v8346_v55 = vpack.c.bf16 %v12607_v32, %v12610_v28  ;;  %v12635_v50 = vadd.f32 %v9928_v6, %v3832_v45  ;;  %v14746_v46 = vld [vmem:[#allocation26_spill] sm:$0xff]  ;;  %v9934_v6 = vld [vmem:[%s10680_s26 + $0x78] sm:$0xff] }
 0x48b   : > { %v9700_v1 = vpop.eup %9699  ;;  %v3834_v25 = vadd.f32 %v9698_v49, %v11741_v14  ;;  %v3707_v38 = vpop.f32.mrf.mxu0  ;;  %v8347_v58 = vpack.c.bf16 %v12613_v16, %v12613_v16  ;;  %v9929_v49 = vld [vmem:[%s10680_s26 + $0x50] sm:$0xff]  ;;  %v9930_v41 = vld [vmem:[%s10680_s26 + $0x48] sm:$0xff] }
 0x48c   : > { %v3837_v63 = vadd.f32 %v9700_v1, %v14743_v26  ;;  %9719 = vtanh.f32 %v3707_v38  ;;  %v3773_v4 = vpop.f32.mrf.mxu1  ;;  %4714 = vst [vmem:[#allocation3 + $0x148] sm:$0xff] %v8346_v55  ;;  %v12627_v14 = vadd.f32 %v9927_v44, %v3833_v43  ;;  %v14750_v26 = vld [vmem:[#allocation25_spill] sm:$0xff]  ;;  %v14751_v44 = vld [vmem:[#allocation39_spill] sm:$0xff] }
 0x48d   : > { %v9702_v7 = vpop.eup %9701  ;;  %v3711_v0 = vpop.f32.mrf.mxu0  ;;  %9721 = vtanh.f32 %v3773_v4  ;;  %v12624_v9 = vadd.f32 %v9926_v20, %v3834_v25  ;;  %4715 = vst [vmem:[#allocation3 + $0x150] sm:$0xf] %v8347_v58  ;;  %v9931_v25 = vld [vmem:[%s10680_s26 + $0x58] sm:$0xff] }
 0x48e   : > { %v9704_v48 = vpop.eup %9703  ;;  %v3838_v36 = vadd.f32 %v9702_v7, %v14744_v40  ;;  %9723 = vtanh.f32 %v3711_v0  ;;  %v3775_v22 = vpop.f32.mrf.mxu1  ;;  %v12642_v55 = vadd.f32 %v9930_v41, %v3837_v63  ;;  %v8349_v45 = vpack.c.bf16 %v12627_v14, %v12635_v50 }
 0x48f   : > { %v9706_v10 = vpop.eup %9705  ;;  %9725 = vtanh.f32 %v12503_v18  ;;  %v3713_v51 = vpop.f32.mrf.mxu0  ;;  %v3839_v60 = vadd.f32 %v9704_v48, %v14745_v19  ;;  %v8350_v35 = vpack.c.bf16 %v12624_v9, %v12624_v9 }
 0x490   : > { %v3842_v5 = vadd.f32 %v9706_v10, %v14746_v46  ;;  %9727 = vtanh.f32 %v3713_v51  ;;  %v3778_v37 = vpop.f32.mrf.mxu1  ;;  %v12639_v43 = vadd.f32 %v9929_v49, %v3838_v36  ;;  %14748 = vst [vmem:[#allocation36_spill] sm:$0xff] %v12642_v55  ;;  %4717 = vst [vmem:[#allocation3 + $0x15c] sm:$0xff] %v8349_v45  ;;  %v14752_v36 = vld [vmem:[#allocation31_spill] sm:$0xff]  ;;  %v9932_v51 = vld [vmem:[%s10680_s26 + $0x70] sm:$0xff] }
 0x491   : > { %v9708_v18 = vpop.eup %9707  ;;  %v3715_v1 = vpop.f32.mrf.mxu0  ;;  %9729 = vtanh.f32 %v3778_v37  ;;  %v12645_v38 = vadd.f32 %v9931_v25, %v3839_v60  ;;  %4718 = vst [vmem:[#allocation3 + $0x164] sm:$0xf] %v8350_v35  ;;  %v9933_v60 = vld [vmem:[%s10680_s26 + $0x68] sm:$0xff] }
 0x492   : > { %14747 = vst [vmem:[#allocation35_spill] sm:$0xff] %v12639_v43  ;;  %v9710_v58 = vpop.eup %9709  ;;  %v3843_v4 = vadd.f32 %v9708_v18, %v14750_v26  ;;  %9731 = vtanh.f32 %v3715_v1  ;;  %v3780_v7 = vpop.f32.mrf.mxu1  ;;  %v8352_v63 = vpack.c.bf16 %v12639_v43, %v12642_v55  ;;  %v12661_v35 = vadd.f32 %v9933_v60, %v3842_v5  ;;  %v14756_v49 = vld [vmem:[#allocation33_spill] sm:$0xff] }
 0x493   : > { %14749 = vst [vmem:[#allocation43_spill] sm:$0xff] %v12645_v38  ;;  %v9712_v0 = vpop.eup %9711  ;;  %9733 = vtanh.f32 %v12507_v42  ;;  %v3717_v20 = vpop.f32.mrf.mxu0  ;;  %v3844_v48 = vadd.f32 %v9710_v58, %v14751_v44  ;;  %v8353_v40 = vpack.c.bf16 %v12645_v38, %v12645_v38  ;;  %v14757_v58 = vld [vmem:[#allocation38_spill] sm:$0xff] }
 0x494   : > { %v3847_v22 = vadd.f32 %v9712_v0, %v14752_v36  ;;  %9735 = vtanh.f32 %v3717_v20  ;;  %v3781_v10 = vpop.f32.mrf.mxu1  ;;  %v12658_v19 = vadd.f32 %v9932_v51, %v3843_v4  ;;  %14754 = vst [vmem:[#allocation42_spill] sm:$0xff] %v12661_v35  ;;  %4720 = vst [vmem:[#allocation3 + $0x170] sm:$0xff] %v8352_v63  ;;  %v9935_v4 = vld [vmem:[%s10680_s26 + $0x90] sm:$0xff]  ;;  %v9937_v20 = vld [vmem:[%s10680_s26 + $0x98] sm:$0xff] }
 0x495   : > { %v9714_v42 = vpop.eup %9713  ;;  %9737 = vtanh.f32 %v3781_v10  ;;  %v12664_v46 = vadd.f32 %v9934_v6, %v3844_v48  ;;  %4721 = vst [vmem:[#allocation3 + $0x178] sm:$0xf] %v8353_v40  ;;  %v14761_v40 = vld [vmem:[#allocation29_spill] sm:$0xff]  ;;  %v14762_v10 = vld [vmem:[#allocation24_spill] sm:$0xff] }
 0x496   : > { %14753 = vst [vmem:[#allocation41_spill] sm:$0xff] %v12658_v19  ;;  %v9716_v37 = vpop.eup %9715  ;;  %9739 = vtanh.f32 %v12509_v54  ;;  %v3848_v41 = vadd.f32 %v9714_v42, %v14756_v49  ;;  %v3783_v18 = vpop.f32.mrf.mxu1  ;;  %v8355_v5 = vpack.c.bf16 %v12658_v19, %v12661_v35  ;;  %v9936_v54 = vld [vmem:[%s10680_s26 + $0x88] sm:$0xff]  ;;  %v14763_v42 = vld [vmem:[#allocation27_spill] sm:$0xff]  ;;  %v14764_v49 = vld [vmem:[#allocation32_spill] sm:$0xff] }
 0x497   : > { %14755 = vst [vmem:[#allocation40_spill] sm:$0xff] %v12664_v46  ;;  %v9718_v1 = vpop.eup %9717  ;;  %v12672_v25 = vpack.i.bf16 %v12664_v46, %v12645_v38  ;;  %v8356_v45 = vpack.c.bf16 %v12664_v46, %v12664_v46  ;;  %v3849_v26 = vadd.f32 %v9716_v37, %v14757_v58  ;;  %v12681_v63 = vadd.f32 %v9936_v54, %v3847_v22  ;;  %v9938_v18 = vld [vmem:[%s10680_s26 + $0xb0] sm:$0xff] }
 0x498   : > { %v12678_v7 = vadd.f32 %v9935_v4, %v3848_v41  ;;  %4723 = vst [vmem:[#allocation3 + $0x184] sm:$0xff] %v8355_v5  ;;  %9741 = vtanh.f32 %v12505_v23  ;;  %v3852_v36 = vadd.f32 %v9718_v1, %v14761_v40  ;;  %v14767_v4 = vld [vmem:[#allocation23_spill] sm:$0xff] }
 0x499   : > { %14759 = vst [vmem:[#allocation25_spill] sm:$0xff] %v12681_v63  ;;  %v9720_v0 = vpop.eup %9719  ;;  %8980 = vrot.lane.b32.xlu1 %v12672_v25, %s10472_s2  ;;  %4724 = vst [vmem:[#allocation3 + $0x18c] sm:$0xf] %v8356_v45  ;;  %v12687_v44 = vadd.f32 %v9937_v20, %v3849_v26  ;;  %v9939_v45 = vld [vmem:[%s10680_s26 + $0xb8] sm:$0xff] }
 0x49a   : > { %14758 = vst [vmem:[#allocation26_spill] sm:$0xff] %v12678_v7  ;;  %v9722_v48 = vpop.eup %9721  ;;  %v3853_v51 = vadd.f32 %v9720_v0, %v14762_v10  ;;  %v8358_v22 = vpack.c.bf16 %v12678_v7, %v12681_v63  ;;  %v9940_v0 = vld [vmem:[%s10680_s26 + $0xa8] sm:$0xff] }
 0x49b   : > { %14760 = vst [vmem:[#allocation39_spill] sm:$0xff] %v12687_v44  ;;  %v9724_v60 = vpop.eup %9723  ;;  %v3854_v23 = vadd.f32 %v9722_v48, %v14763_v42  ;;  %v8359_v6 = vpack.c.bf16 %v12687_v44, %v12687_v44  ;;  %v12705_v20 = vadd.f32 %v9940_v0, %v3852_v36  ;;  %v14770_v42 = vld [vmem:[#allocation34_spill] sm:$0xff] }
 0x49c   : > { %v9726_v37 = vpop.eup %9725  ;;  %v3857_v41 = vadd.f32 %v9724_v60, %v14764_v49  ;;  %v12698_v5 = vadd.f32 %v9938_v18, %v3853_v51  ;;  %4726 = vst [vmem:[#allocation3 + $0x198] sm:$0xff] %v8358_v22  ;;  %v14769_v51 = vld [vmem:[#allocation37_spill] sm:$0xff] }
 0x49d   : > { %v9728_v1 = vpop.eup %9727  ;;  %v12701_v58 = vadd.f32 %v9939_v45, %v3854_v23  ;;  %4727 = vst [vmem:[#allocation3 + $0x1a0] sm:$0xf] %v8359_v6  ;;  %14768 = vst [vmem:[#allocation38_spill] sm:$0xff] %v12705_v20  ;;  %v9941_v6 = vld [vmem:[%s10680_s26 + $0xd0] sm:$0xff]  ;;  %v9942_v18 = vld [vmem:[%s10680_s26 + $0xc8] sm:$0xff] }
 0x49e   : > { %14765 = vst [vmem:[#allocation31_spill] sm:$0xff] %v12698_v5  ;;  %v9730_v26 = vpop.eup %9729  ;;  %v3858_v54 = vadd.f32 %v9728_v1, %v14767_v4  ;;  %v12717_v1 = vadd.f32 %v9942_v18, %v3857_v41  ;;  %v8361_v36 = vpack.c.bf16 %v12698_v5, %v12705_v20  ;;  %v9943_v4 = vld [vmem:[%s10680_s26 + $0xd8] sm:$0xff] }
 0x49f   : > { %14766 = vst [vmem:[#allocation33_spill] sm:$0xff] %v12701_v58  ;;  %v9732_v48 = vpop.eup %9731  ;;  %v8984_v40 = vpack.i.bf16 %v12701_v58, %v12687_v44  ;;  %v8362_v10 = vpack.c.bf16 %v12701_v58, %v12701_v58  ;;  %v3859_v22 = vadd.f32 %v9730_v26, %v14769_v51 }
 0x4a0   : > { %v9734_v60 = vpop.eup %9733  ;;  %v3862_v23 = vadd.f32 %v9732_v48, %v14770_v42  ;;  %v12714_v49 = vadd.f32 %v9941_v6, %v3858_v54  ;;  %14772 = vst [vmem:[#allocation24_spill] sm:$0xff] %v12717_v1  ;;  %v14774_v48 = vld [vmem:[#allocation28_spill] sm:$0xff]  ;;  %4729 = vst [vmem:[#allocation3 + $0x1ac] sm:$0xff] %v8361_v36  ;;  %v8999_v42 = vpack.i.bf16 %v12624_v9, %v12613_v16  ;;  %v14775_v6 = vld [vmem:[#allocation30_spill] sm:$0xff] }
 0x4a1   : > { %v9736_v45 = vpop.eup %9735  ;;  %8985 = vrot.lane.b32.xlu0 %v8984_v40, %s10472_s2  ;;  %4730 = vst [vmem:[#allocation3 + $0x1b4] sm:$0xf] %v8362_v10  ;;  %v12723_v26 = vadd.f32 %v9943_v4, %v3859_v22  ;;  %v3830_v22 = vadd.f32 %v9734_v60, %v11855_v30  ;;  %v9944_v4 = vld [vmem:[%s10680_s26 + $0xf0] sm:$0xff]  ;;  %v9946_v36 = vld [vmem:[%s10680_s26 + $0xf8] sm:$0xff] }
 0x4a2   : > { %14771 = vst [vmem:[#allocation29_spill] sm:$0xff] %v12714_v49  ;;  %v9738_v0 = vpop.eup %9737  ;;  %v3863_v54 = vadd.f32 %v9736_v45, %v14774_v48  ;;  %v8364_v41 = vpack.c.bf16 %v12714_v49, %v12717_v1  ;;  %v9945_v45 = vld [vmem:[%s10680_s26 + $0xe8] sm:$0xff] }
 0x4a3   : > { %14773 = vst [vmem:[#allocation27_spill] sm:$0xff] %v12723_v26  ;;  %v9740_v51 = vpop.eup %9739  ;;  %v3864_v18 = vadd.f32 %v9738_v0, %v14775_v6  ;;  %v8365_v10 = vpack.c.bf16 %v12723_v26, %v12723_v26  ;;  %v12738_v48 = vadd.f32 %v9945_v45, %v3862_v23  ;;  %v3825_v0 = vadd.f32 %v9726_v37, %v11873_v8  ;;  %v12820_v45 = vld [vmem:[#allocation9 + $0x84] ss:$8 sps:$4 sm:$0xff]  }
 0x4a4   : > { %v12735_v58 = vadd.f32 %v9944_v4, %v3863_v54  ;;  %4732 = vst [vmem:[#allocation3 + $0x1c0] sm:$0xff] %v8364_v41  ;;  %v3831_v30 = vadd.f32 %v9740_v51, %v11884_v56  ;;  %v9947_v41 = vld [vmem:[%s10672_s23 + $0x8] sm:$0xff]  ;;  %v9948_v56 = vld [vmem:[%s10672_s23] sm:$0xff]  ;;  %7980 = vmatprep.mubr.msk.bf16.mxu0 %vm1957_vm0, %v12820_v45  ;;  %7984 = vmatprep.mubr.msk.bf16.mxu1 %vm1957_vm0, %v12820_v45 }
 0x4a5   : > { %14777 = vst [vmem:[#allocation23_spill] sm:$0xff] %v12738_v48  ;;  %9000 = vrot.lane.b32.xlu0 %v8999_v42, %s10472_s2  ;;  %v12742_v44 = vadd.f32 %v9946_v36, %v3864_v18  ;;  %4733 = vst [vmem:[#allocation3 + $0x1c8] sm:$0xf] %v8365_v10  ;;  %v9742_v6 = vpop.eup %9741  ;;  %v12753_v18 = vadd.f32 %v9947_v41, %v3830_v22  ;;  %v12760_v37 = vadd.f32 %v9948_v56, %v3825_v0  ;;  %v9949_v10 = vld [vmem:[%s10680_s26 + $0x20] sm:$0xff] }
 0x4a6   : > { %14776 = vst [vmem:[#allocation32_spill] sm:$0xff] %v12735_v58  ;;  %v8367_v60 = vpack.c.bf16 %v12735_v58, %v12738_v48  ;;  %v3826_v8 = vadd.f32 %v9742_v6, %v11896_v29  ;;  %v12765_v4 = vadd.f32 %v9949_v10, %v3831_v30  ;;  %v9950_v29 = vld [vmem:[%s10680_s26] sm:$0xff] }
 0x4a7   : > { %14778 = vst [vmem:[#allocation37_spill] sm:$0xff] %v12742_v44  ;;  %v8989_v23 = vpack.i.bf16 %v12742_v44, %v12723_v26  ;;  %v8368_v54 = vpack.c.bf16 %v12742_v44, %v12742_v44  ;;  %v8994_v51 = vpack.i.bf16 %v12753_v18, %v12760_v37 }
 0x4a8   : > { %4735 = vst [vmem:[#allocation3 + $0x1d4] sm:$0xff] %v8367_v60  ;;  %v12771_v22 = vadd.f32 %v9950_v29, %v3826_v8 }
 0x4a9   : > { %9010 = vrot.lane.b32.xlu0 %v12587_v13, %s10473_s19  ;;  %8990 = vrot.lane.b32.xlu1 %v8989_v23, %s10472_s2  ;;  %4736 = vst [vmem:[#allocation3 + $0x1dc] sm:$0xf] %v8368_v54 }
 0x4aa   : > { %v9004_v13 = vpack.i.bf16 %v12765_v4, %v12771_v22 }
 0x4ad   : > { %9015 = vrot.lane.b32.xlu0 %v12599_v57, %s10473_s19  ;;  %8995 = vrot.lane.b32.xlu1 %v8994_v51, %s10472_s2  ;;  %v9069_v57 = vpack.i.bf16 %v12735_v58, %v12714_v49 }
 0x4b1   : > { %9025 = vrot.lane.b32.xlu0 %v8984_v40, %s10473_s19  ;;  %9005 = vrot.lane.b32.xlu1 %v9004_v13, %s10472_s2  ;;  %v9114_v40 = vpack.i.bf16 %v12705_v20, %v12681_v63 }
 0x4b5   : > { %9040 = vrot.lane.b32.xlu0 %v12528_v27, %s10473_s19  ;;  %9020 = vrot.lane.b32.xlu1 %v12560_v61, %s10473_s19  ;;  %v9079_v27 = vpack.i.bf16 %v12658_v19, %v12639_v43  ;;  %v9109_v61 = vpack.i.bf16 %v12738_v48, %v12717_v1 }
 0x4b9   : > { %9050 = vrot.lane.b32.xlu0 %v12541_v15, %s10473_s19  ;;  %9030 = vrot.lane.b32.xlu1 %v8989_v23, %s10473_s19  ;;  %v9074_v15 = vpack.i.bf16 %v12698_v5, %v12678_v7 }
 0x4bd   : > { %9060 = vrot.lane.b32.xlu0 %v8999_v42, %s10473_s19  ;;  %9035 = vrot.lane.b32.xlu1 %v12572_v11, %s10473_s19  ;;  %v9084_v11 = vpack.i.bf16 %v12627_v14, %v12607_v32  ;;  %v9124_v42 = vpack.i.bf16 %v12635_v50, %v12610_v28 }
 0x4c1   : > { %9070 = vrot.lane.b32.xlu0 %v9069_v57, %s10472_s2  ;;  %9045 = vrot.lane.b32.xlu1 %v12672_v25, %s10473_s19  ;;  %v9119_v25 = vpack.i.bf16 %v12661_v35, %v12642_v55 }
 0x4c5   : > { %9080 = vrot.lane.b32.xlu0 %v9079_v27, %s10472_s2  ;;  %9055 = vrot.lane.b32.xlu1 %v8994_v51, %s10473_s19 }
 0x4c9   : > { %9090 = vrot.lane.b32.xlu0 %v9069_v57, %s10473_s19  ;;  %9065 = vrot.lane.b32.xlu1 %v9004_v13, %s10473_s19 }
 0x4cd   : > { %9100 = vrot.lane.b32.xlu0 %v9079_v27, %s10473_s19  ;;  %9075 = vrot.lane.b32.xlu1 %v9074_v15, %s10472_s2 }
 0x4d1   : > { %9110 = vrot.lane.b32.xlu0 %v9109_v61, %s10472_s2  ;;  %9085 = vrot.lane.b32.xlu1 %v9084_v11, %s10472_s2 }
 0x4d5   : > { %9120 = vrot.lane.b32.xlu0 %v9119_v25, %s10472_s2  ;;  %9095 = vrot.lane.b32.xlu1 %v9074_v15, %s10473_s19 }
 0x4d9   : > { %9130 = vrot.lane.b32.xlu0 %v9109_v61, %s10473_s19  ;;  %9105 = vrot.lane.b32.xlu1 %v9084_v11, %s10473_s19 }
 0x4db   : > { %v8951_v36 = vpop.permute.xlu0 %8950 }
 0x4dc   : > { %v8953_v57 = vunpack.i.h.bf16 %v8951_v36  ;;  %v8952_v27 = vunpack.i.l.bf16 %v8951_v36 }
 0x4dd   : > { %9140 = vrot.lane.b32.xlu0 %v9119_v25, %s10473_s19  ;;  %9115 = vrot.lane.b32.xlu1 %v9114_v40, %s10472_s2 }
 0x4df   : > { %v12829_v0 = vpop.permute.xlu0 %8955 }
 0x4e0   : > { %v14787_v63 = vunpack.i.l.bf16 %v12829_v0 }
 0x4e1   : > { %9125 = vrot.lane.b32.xlu1 %v9124_v42, %s10472_s2 }
 0x4e3   : > { %v8961_v30 = vpop.permute.xlu1 %8960 }
 0x4e4   : > { %v8963_v10 = vunpack.i.h.bf16 %v8961_v30  ;;  %v8962_v29 = vunpack.i.l.bf16 %v8961_v30 }
 0x4e5   : > { %9135 = vrot.lane.b32.xlu1 %v9114_v40, %s10473_s19 }
 0x4e7   : > { %v12833_v23 = vpop.permute.xlu1 %8965 }
 0x4e8   : > { %v14780_v36 = vunpack.i.h.bf16 %v12833_v23  ;;  %v14781_v61 = vunpack.i.l.bf16 %v12833_v23 }
 0x4e9   : > { %9145 = vrot.lane.b32.xlu1 %v9124_v42, %s10473_s19 }
 0x4ea   : > { %v4382_v30 = vsel %vm2426_vm7, %v8963_v10, %v14780_v36  ;;  %v4381_v48 = vsel %vm2426_vm7, %v8962_v29, %v14781_v61 }
 0x4eb   : > { %v8971_v6 = vpop.permute.xlu0 %8970 }
 0x4ec   : > { %v8973_v15 = vunpack.i.h.bf16 %v8971_v6  ;;  %v8972_v13 = vunpack.i.l.bf16 %v8971_v6 }
 0x4ef   : > { %v12831_v60 = vpop.permute.xlu0 %8975 }
 0x4f0   : > { %v14782_v6 = vunpack.i.h.bf16 %v12831_v60  ;;  %v14785_v61 = vunpack.i.l.bf16 %v12831_v60 }
 0x4f2   : > { %v4384_v26 = vsel %vm2426_vm7, %v8973_v15, %v14782_v6  ;;  %v4383_v6 = vsel %vm2426_vm7, %v8972_v13, %v14785_v61 }
 0x50b   : > { %v12837_v41 = vpop.permute.xlu1 %8980 }
 0x50c   : > { %v14779_v44 = vunpack.i.h.bf16 %v12837_v41 }
 0x513   : > { %v12835_v54 = vpop.permute.xlu0 %8985 }
 0x514   : > { %v14460_v8 = vunpack.i.h.bf16 %v12835_v54  ;;  %v14462_v56 = vunpack.i.l.bf16 %v12835_v54 }
 0x516   : > { %v4390_v40 = vsel %vm2426_vm7, %v14460_v8, %v8963_v10  ;;  %v4389_v42 = vsel %vm2426_vm7, %v14462_v56, %v8962_v29  ;;  %v4388_v8 = vsel %vm2426_vm7, %v14779_v44, %v8953_v57  ;;  %v14783_v44 = vunpack.i.l.bf16 %v12837_v41 }
 0x517   : > { %v12841_v51 = vpop.permute.xlu0 %9000 }
 0x518   : > { %v4387_v56 = vsel %vm2426_vm7, %v14783_v44, %v8952_v27  ;;  %v14786_v44 = vunpack.i.h.bf16 %v12829_v0  ;;  %v14473_v7 = vunpack.i.l.bf16 %v12841_v51 }
 0x51a   : > { %v4380_v5 = vsel %vm2426_vm7, %v8953_v57, %v14786_v44 }
 0x51b   : > { %v12859_v11 = vpop.permute.xlu0 %9010  ;;  %v12861_v25 = vpop.permute.xlu1 %8990 }
 0x51c   : > { %v14469_v58 = vunpack.i.h.bf16 %v12861_v25  ;;  %v14784_v36 = vunpack.i.l.bf16 %v12861_v25 }
 0x51e   : > { %v4392_v10 = vsel %vm2426_vm7, %v14469_v58, %v8973_v15  ;;  %v4391_v29 = vsel %vm2426_vm7, %v14784_v36, %v8972_v13  ;;  %v14476_v58 = vunpack.i.h.bf16 %v12841_v51  ;;  %v10153_v36 = vpack.c.bf16 %v4384_v26, %v4383_v6 }
 0x51f   : > { %v12897_v49 = vpop.permute.xlu0 %9015  ;;  %v8996_v1 = vpop.permute.xlu1 %8995  ;;  %v4379_v13 = vsel %vm2426_vm7, %v8952_v27, %v14787_v63  ;;  %v10155_v26 = vpack.c.bf16 %v4382_v30, %v4381_v48  ;;  %v10157_v27 = vpack.c.bf16 %v4392_v10, %v4391_v29  ;;  %v10162_v29 = vpack.c.bf16 %v4390_v40, %v4389_v42 }
 0x520   : > { %v8998_v20 = vunpack.i.h.bf16 %v8996_v1  ;;  %v8997_v15 = vunpack.i.l.bf16 %v8996_v1  ;;  %5178 = vmatprep.subr.bf16.mxu0 %v10153_v36  ;;  %v10160_v10 = vpack.c.bf16 %v4380_v5, %v4379_v13 }
 0x521   : > { %10158 = vmatpush1.bf16.msk.msra.mxu0 %vm12168_vm9, %v10157_v27 }
 0x522   : > { %v4386_v57 = vsel %vm2426_vm7, %v14476_v58, %v8998_v20  ;;  %v4385_v1 = vsel %vm2426_vm7, %v14473_v7, %v8997_v15  ;;  %5180 = vmatprep.subr.bf16.mxu0 %v10155_v26  ;;  %v14477_v7 = vunpack.i.l.bf16 %v12897_v49  ;;  %v9012_v26 = vunpack.i.l.bf16 %v12859_v11 }
 0x523   : > { %v12909_v61 = vpop.permute.xlu0 %9025  ;;  %v12911_v46 = vpop.permute.xlu1 %9005  ;;  %v9013_v58 = vunpack.i.h.bf16 %v12859_v11  ;;  %v10171_v19 = vpack.c.bf16 %v4386_v57, %v4385_v1 }
 0x524   : > { %v14475_v6 = vunpack.i.h.bf16 %v12911_v46  ;;  %v14474_v63 = vunpack.i.l.bf16 %v12911_v46  ;;  %v4061_v5 = vsel %vm4030_vm10, %v9012_v26, %v14477_v7  ;;  %v14479_v42 = vunpack.i.h.bf16 %v12909_v61 }
 0x525   : > { %10163 = vmatpush1.bf16.msk.msra.mxu0 %vm12168_vm9, %v10162_v29  ;;  %v14480_v13 = vunpack.i.l.bf16 %v12909_v61  ;;  %v10167_v29 = vpack.c.bf16 %v4388_v8, %v4387_v56 }
 0x526   : > { %v4377_v44 = vsel %vm2426_vm7, %v8997_v15, %v14474_v63  ;;  %v4378_v36 = vsel %vm2426_vm7, %v8998_v20, %v14475_v6  ;;  %v14478_v15 = vunpack.i.h.bf16 %v12897_v49  ;;  %5182 = vmatprep.subr.bf16.mxu0 %v10160_v10 }
 0x527   : > { %v12933_v48 = vpop.permute.xlu0 %9040  ;;  %v9021_v30 = vpop.permute.xlu1 %9020  ;;  %v10165_v40 = vpack.c.bf16 %v4378_v36, %v4377_v44 }
 0x528   : > { %v9023_v27 = vunpack.i.h.bf16 %v9021_v30  ;;  %v9022_v63 = vunpack.i.l.bf16 %v9021_v30  ;;  %v4062_v11 = vsel %vm4030_vm10, %v9013_v58, %v14478_v15  ;;  %v9042_v7 = vunpack.i.l.bf16 %v12933_v48 }
 0x529   : > { %10168 = vmatpush1.bf16.msk.msra.mxu0 %vm12168_vm9, %v10167_v29  ;;  %v10173_v1 = vpack.c.bf16 %v4062_v11, %v4061_v5  ;;  %v14791_v11 = vunpack.i.h.bf16 %v12861_v25 }
 0x52a   : > { %5184 = vmatprep.subr.bf16.mxu0 %v10165_v40  ;;  %v4068_v36 = vsel %vm4030_vm10, %v14479_v42, %v9023_v27  ;;  %v4067_v8 = vsel %vm4030_vm10, %v14480_v13, %v9022_v63  ;;  %v9043_v42 = vunpack.i.h.bf16 %v12933_v48 }
 0x52b   : > { %v12941_v20 = vpop.permute.xlu0 %9050  ;;  %v12943_v6 = vpop.permute.xlu1 %9030 }
 0x52c   : > { %v14482_v30 = vunpack.i.h.bf16 %v12943_v6  ;;  %v14483_v10 = vunpack.i.l.bf16 %v12943_v6 }
 0x52d   : > { %10172 = vmatpush1.bf16.msk.msra.mxu0 %vm12168_vm9, %v10171_v19 }
 0x52e   : > { %v4070_v56 = vsel %vm4030_vm10, %v14482_v30, %v9013_v58  ;;  %v4069_v40 = vsel %vm4030_vm10, %v14483_v10, %v9012_v26  ;;  %v14788_v58 = vunpack.i.l.bf16 %v12941_v20  ;;  %v14789_v30 = vunpack.i.h.bf16 %v12941_v20  ;;  %5186 = vmatprep.subr.bf16.mxu0 %v10173_v1 }
 0x52f   : > { %v12979_v29 = vpop.permute.xlu0 %9060  ;;  %v12981_v15 = vpop.permute.xlu1 %9035  ;;  %v10176_v1 = vpack.c.bf16 %v4070_v56, %v4069_v40 }
 0x530   : > { %v14487_v13 = vunpack.i.h.bf16 %v12981_v15  ;;  %v14486_v44 = vunpack.i.l.bf16 %v12981_v15  ;;  %v4057_v26 = vsel %vm4030_vm10, %v9042_v7, %v14788_v58  ;;  %v4058_v10 = vsel %vm4030_vm10, %v9043_v42, %v14789_v30 }
 0x531   : > { %10177 = vmatpush1.bf16.msk.msra.mxu0 %vm13030_vm12, %v10176_v1  ;;  %v14797_v1 = vunpack.i.l.bf16 %v12979_v29 }
 0x532   : > { %v4059_v48 = vsel %vm4030_vm10, %v9022_v63, %v14486_v44  ;;  %v4060_v3 = vsel %vm4030_vm10, %v9023_v27, %v14487_v13  ;;  %v14790_v27 = vunpack.i.l.bf16 %v12861_v25 }
 0x533   : > { %v13005_v19 = vpop.permute.xlu0 %9070  ;;  %v13007_v57 = vpop.permute.xlu1 %9045  ;;  %v10178_v38 = vpack.c.bf16 %v4060_v3, %v4059_v48  ;;  %v10181_v3 = vpack.c.bf16 %v4068_v36, %v4067_v8 }
 0x534   : > { %v14489_v58 = vunpack.i.h.bf16 %v13005_v19  ;;  %v14488_v35 = vunpack.i.l.bf16 %v13005_v19  ;;  %v9048_v63 = vunpack.i.h.bf16 %v13007_v57  ;;  %v9047_v44 = vunpack.i.l.bf16 %v13007_v57 }
 0x535   : > { %5188 = vmatprep.subr.bf16.mxu0 %v10178_v38 }
 0x536   : > { %v4359_v5 = vsel %vm2426_vm7, %v14488_v35, %v14790_v27  ;;  %v4360_v13 = vsel %vm2426_vm7, %v14489_v58, %v14791_v11  ;;  %v4066_v25 = vsel %vm4030_vm10, %v9048_v63, %v9043_v42  ;;  %v4065_v11 = vsel %vm4030_vm10, %v9047_v44, %v9042_v7  ;;  %10182 = vmatpush1.bf16.msk.msra.mxu0 %vm13030_vm12, %v10181_v3 }
 0x537   : > { %v8341_v27 = vpack.c.bf16 %v4359_v5, %v4359_v5  ;;  %v8344_v35 = vpack.c.bf16 %v4360_v13, %v4360_v13  ;;  %v13040_v58 = vpop.permute.xlu0 %9080  ;;  %v9056_v30 = vpop.permute.xlu1 %9055  ;;  %v14794_v13 = vunpack.i.h.bf16 %v12837_v41  ;;  %v14795_v7 = vunpack.i.l.bf16 %v12837_v41 }
 0x538   : > { %v14492_v43 = vunpack.i.h.bf16 %v13040_v58  ;;  %v9082_v55 = vunpack.i.l.bf16 %v13040_v58  ;;  %v9058_v56 = vunpack.i.h.bf16 %v9056_v30  ;;  %v9057_v40 = vunpack.i.l.bf16 %v9056_v30 }
 0x539   : > { %4581 = vst [vmem:[#allocation3 + $0x128] sm:$0xf] %v8341_v27  ;;  %4584 = vst [vmem:[#allocation3 + $0x13c] sm:$0xf] %v8344_v35  ;;  %v14796_v30 = vunpack.i.h.bf16 %v12979_v29  ;;  %v14798_v3 = vunpack.i.l.bf16 %v12943_v6 }
 0x53a   : > { %v4356_v42 = vsel %vm2426_vm7, %v14492_v43, %v14794_v13  ;;  %v4355_v48 = vsel %vm2426_vm7, %v9082_v55, %v14795_v7  ;;  %v4063_v41 = vsel %vm4030_vm10, %v14797_v1, %v9057_v40  ;;  %v14799_v1 = vunpack.i.h.bf16 %v12943_v6 }
 0x53b   : > { %v8332_v38 = vpack.c.bf16 %v4356_v42, %v4356_v42  ;;  %v8329_v35 = vpack.c.bf16 %v4355_v48, %v4355_v48  ;;  %v4064_v5 = vsel %vm4030_vm10, %v14796_v30, %v9058_v56  ;;  %v13066_v27 = vpop.permute.xlu0 %9090  ;;  %v13068_v13 = vpop.permute.xlu1 %9065  ;;  %v10183_v48 = vpack.c.bf16 %v4058_v10, %v4057_v26 }
 0x53c   : > { %v14497_v36 = vunpack.i.h.bf16 %v13066_v27  ;;  %v14493_v8 = vunpack.i.l.bf16 %v13066_v27  ;;  %v14494_v42 = vunpack.i.h.bf16 %v13068_v13  ;;  %v14495_v7 = vunpack.i.l.bf16 %v13068_v13 }
 0x53d   : > { %4572 = vst [vmem:[#allocation3 + $0xec] sm:$0xf] %v8332_v38  ;;  %4569 = vst [vmem:[#allocation3 + $0xd8] sm:$0xf] %v8329_v35  ;;  %5190 = vmatprep.subr.bf16.mxu0 %v10183_v48 }
 0x53e   : > { %v4037_v30 = vsel %vm4030_vm10, %v14493_v8, %v14798_v3  ;;  %v4038_v38 = vsel %vm4030_vm10, %v14497_v36, %v14799_v1  ;;  %v4055_v10 = vsel %vm4030_vm10, %v9057_v40, %v14495_v7  ;;  %v4056_v26 = vsel %vm4030_vm10, %v9058_v56, %v14494_v42 }
 0x53f   : > { %v8317_v35 = vpack.c.bf16 %v4037_v30, %v4037_v30  ;;  %v8320_v43 = vpack.c.bf16 %v4038_v38, %v4038_v38  ;;  %v13094_v3 = vpop.permute.xlu0 %9100  ;;  %v13096_v6 = vpop.permute.xlu1 %9075  ;;  %v10186_v1 = vpack.c.bf16 %v4066_v25, %v4065_v11  ;;  %v10188_v56 = vpack.c.bf16 %v12590_v33, %v12595_v24 }
 0x540   : > { %v14498_v8 = vunpack.i.h.bf16 %v13094_v3  ;;  %v14496_v30 = vunpack.i.l.bf16 %v13094_v3  ;;  %v9078_v40 = vunpack.i.h.bf16 %v13096_v6  ;;  %v9077_v38 = vunpack.i.l.bf16 %v13096_v6 }
 0x541   : > { %10187 = vmatpush1.bf16.msk.msra.mxu0 %vm13030_vm12, %v10186_v1  ;;  %4269 = vst [vmem:[#allocation3 + $0x88] sm:$0xf] %v8317_v35  ;;  %4272 = vst [vmem:[#allocation3 + $0x9c] sm:$0xf] %v8320_v43  ;;  %v10189_v11 = vpack.c.bf16 %v4056_v26, %v4055_v10  ;;  %v14800_v1 = vunpack.i.h.bf16 %v12835_v54  ;;  %v14801_v7 = vunpack.i.l.bf16 %v12835_v54  ;;  %v10192_v54 = vpack.c.bf16 %v4064_v5, %v4063_v41 }
 0x542   : > { %v4033_v48 = vsel %vm4030_vm10, %v14496_v30, %v9047_v44  ;;  %v4034_v25 = vsel %vm4030_vm10, %v14498_v8, %v9048_v63  ;;  %v14804_v5 = vunpack.i.h.bf16 %v13005_v19 }
 0x543   : > { %v8305_v35 = vpack.c.bf16 %v4033_v48, %v4033_v48  ;;  %v8308_v43 = vpack.c.bf16 %v4034_v25, %v4034_v25  ;;  %v4358_v42 = vsel %vm2426_vm7, %v9078_v40, %v14800_v1  ;;  %v4357_v44 = vsel %vm2426_vm7, %v9077_v38, %v14801_v7  ;;  %v9111_v30 = vpop.permute.xlu0 %9110  ;;  %v13126_v36 = vpop.permute.xlu1 %9085  ;;  %5192 = vmatprep.subr.bf16.mxu0 %v10189_v11 }
 0x544   : > { %v8338_v63 = vpack.c.bf16 %v4358_v42, %v4358_v42  ;;  %v8335_v10 = vpack.c.bf16 %v4357_v44, %v4357_v44  ;;  %v9113_v26 = vunpack.i.h.bf16 %v9111_v30  ;;  %v9112_v48 = vunpack.i.l.bf16 %v9111_v30 }
 0x545   : > { %4257 = vst [vmem:[#allocation3 + $0x38] sm:$0xf] %v8305_v35  ;;  %4260 = vst [vmem:[#allocation3 + $0x4c] sm:$0xf] %v8308_v43  ;;  %v9088_v25 = vunpack.i.h.bf16 %v13126_v36  ;;  %v9087_v1 = vunpack.i.l.bf16 %v13126_v36  ;;  %10193 = vmatpush1.bf16.msk.msra.mxu0 %vm13030_vm12, %v10192_v54  ;;  %v10194_v7 = vpack.c.bf16 %v12581_v62, %v12578_v47  ;;  %v14802_v42 = vunpack.i.h.bf16 %v12831_v60 }
 0x546   : > { %4578 = vst [vmem:[#allocation3 + $0x114] sm:$0xf] %v8338_v63  ;;  %4575 = vst [vmem:[#allocation3 + $0x100] sm:$0xf] %v8335_v10  ;;  %v14803_v11 = vunpack.i.l.bf16 %v13005_v19  ;;  %v4368_v41 = vsel %vm2426_vm7, %v9113_v26, %v14804_v5  ;;  %v14805_v43 = vunpack.i.l.bf16 %v12831_v60  ;;  %5202 = vmatprep.subr.bf16.mxu0 %v10188_v56  ;;  %v14806_v63 = vunpack.i.h.bf16 %v12841_v51  ;;  %v9418_v56 = vld [vmem:[#allocation3 + $0x194] ss:$20 sps:$4 sm:$0xff]  }
 0x547   : > { %v4376_v30 = vsel %vm2426_vm7, %v14802_v42, %v9113_v26  ;;  %v14807_v54 = vunpack.i.l.bf16 %v12841_v51  ;;  %v9121_v26 = vpop.permute.xlu0 %9120  ;;  %v13162_v60 = vpop.permute.xlu1 %9095  ;;  %v14819_v36 = vunpack.i.l.bf16 %v13066_v27 }
 0x548   : > { %v4367_v35 = vsel %vm2426_vm7, %v9112_v48, %v14803_v11  ;;  %v4375_v44 = vsel %vm2426_vm7, %v14805_v43, %v9112_v48  ;;  %v4354_v10 = vsel %vm2426_vm7, %v9088_v25, %v14806_v63  ;;  %v9098_v11 = vunpack.i.h.bf16 %v13162_v60 }
 0x549   : > { %v4353_v19 = vsel %vm2426_vm7, %v9087_v1, %v14807_v54  ;;  %v8326_v42 = vpack.c.bf16 %v4354_v10, %v4354_v10  ;;  %v9097_v5 = vunpack.i.l.bf16 %v13162_v60  ;;  %5203 = vmatpush2.bf16.msra.mxu0 %v10194_v7  ;;  %v10195_v43 = vpack.c.bf16 %v4368_v41, %v4367_v35  ;;  %v9420_v35 = vld [vmem:[#allocation3 + $0x190] ss:$20 sps:$4 sm:$0xff]  }
 0x54a   : > { %v8323_v48 = vpack.c.bf16 %v4353_v19, %v4353_v19  ;;  %v10196_v63 = vpack.c.bf16 %v4376_v30, %v4375_v44  ;;  %v9123_v51 = vunpack.i.h.bf16 %v9121_v26  ;;  %v9122_v8 = vunpack.i.l.bf16 %v9121_v26  ;;  %5204 = vmatprep.subr.bf16.mxu0 %v9418_v56  ;;  %v9421_v26 = vld [vmem:[#allocation3 + $0x16c] ss:$20 sps:$4 sm:$0xff]  }
 0x54b   : > { %4566 = vst [vmem:[#allocation3 + $0xc4] sm:$0xf] %v8326_v42  ;;  %v14808_v54 = vunpack.i.h.bf16 %v12909_v61  ;;  %v14809_v19 = vunpack.i.l.bf16 %v12909_v61  ;;  %v13178_v30 = vpop.permute.xlu1 %9105  ;;  %5251 = vmatprep.subr.bf16.mxu1 %v10195_v43  ;;  %v14810_v61 = vunpack.i.h.bf16 %v12829_v0 }
 0x54c   : > { %4563 = vst [vmem:[#allocation3 + $0xb0] sm:$0xf] %v8323_v48  ;;  %5252 = vmatpush1.bf16.msra.mxu1 %v10196_v63  ;;  %v14499_v42 = vunpack.i.h.bf16 %v13178_v30  ;;  %v9107_v48 = vunpack.i.l.bf16 %v13178_v30  ;;  %v4363_v43 = vsel %vm2426_vm7, %v9122_v8, %v9082_v55  ;;  %v14811_v63 = vunpack.i.h.bf16 %v13040_v58 }
 0x54d   : > { %v4036_v10 = vsel %vm4030_vm10, %v9098_v11, %v14808_v54  ;;  %v4035_v7 = vsel %vm4030_vm10, %v9097_v5, %v14809_v19  ;;  %5205 = vmatpush2.bf16.msra.mxu0 %v9420_v35  ;;  %v13186_v56 = vsel %vm2426_vm7, %v14810_v61, %v9123_v51  ;;  %v14814_v35 = vunpack.i.l.bf16 %v12979_v29 }
 0x54e   : > { %v8314_v41 = vpack.c.bf16 %v4036_v10, %v4036_v10  ;;  %v8311_v44 = vpack.c.bf16 %v4035_v7, %v4035_v7  ;;  %5206 = vmatprep.subr.bf16.mxu0 %v9421_v26  ;;  %v4364_v54 = vsel %vm2426_vm7, %v9123_v51, %v14811_v63  ;;  %v14812_v10 = vunpack.i.l.bf16 %v12829_v0  ;;  %v9423_v0 = vld [vmem:[#allocation3 + $0x168] ss:$20 sps:$4 sm:$0xff]  }
 0x54f   : > { %v14813_v7 = vunpack.i.h.bf16 %v12979_v29  ;;  %v4031_v58 = vsel %vm4030_vm10, %v9107_v48, %v14814_v35  ;;  %v9116_v51 = vpop.permute.xlu1 %9115  ;;  %v10197_v26 = vpack.c.bf16 %v12765_v4, %v12771_v22  ;;  %v10198_v29 = vpack.c.bf16 %v12753_v18, %v12760_v37 }
 0x550   : > { %4266 = vst [vmem:[#allocation3 + $0x74] sm:$0xf] %v8314_v41  ;;  %4263 = vst [vmem:[#allocation3 + $0x60] sm:$0xf] %v8311_v44  ;;  %v13200_v19 = vsel %vm2426_vm7, %v14812_v10, %v9122_v8  ;;  %v9131_v41 = vpop.permute.xlu0 %9130  ;;  %v8299_v8 = vpack.c.bf16 %v4031_v58, %v4031_v58  ;;  %v9118_v61 = vunpack.i.h.bf16 %v9116_v51  ;;  %v9117_v63 = vunpack.i.l.bf16 %v9116_v51 }
 0x551   : > { %v4032_v55 = vsel %vm4030_vm10, %v14499_v42, %v14813_v7  ;;  %5207 = vmatpush2.bf16.msra.mxu0 %v9423_v0  ;;  %v9133_v10 = vunpack.i.h.bf16 %v9131_v41  ;;  %v9132_v7 = vunpack.i.l.bf16 %v9131_v41  ;;  %v14815_v35 = vunpack.i.h.bf16 %v12833_v23  ;;  %v13234_v42 = vld [vmem:[#allocation9 + $0x80] ss:$8 sps:$4 sm:$0xff]  }
 0x552   : > { %v8302_v44 = vpack.c.bf16 %v4032_v55, %v4032_v55  ;;  %4251 = vst [vmem:[#allocation3 + $0x10] sm:$0xf] %v8299_v8  ;;  %5208 = vmatprep.subr.bf16.mxu0 %v10197_v26  ;;  %v4365_v58 = vsel %vm2426_vm7, %v9117_v63, %v9077_v38  ;;  %v4366_v0 = vsel %vm2426_vm7, %v9118_v61, %v9078_v40 }
 0x553   : > { %v4374_v55 = vsel %vm2426_vm7, %v14815_v35, %v9118_v61  ;;  %v9126_v51 = vpop.permute.xlu1 %9125  ;;  %v14818_v61 = vunpack.i.h.bf16 %v12911_v46  ;;  %v10199_v35 = vpack.c.bf16 %v4366_v0, %v4365_v58  ;;  %v10201_v58 = vpack.c.bf16 %v4364_v54, %v4363_v43 }
 0x554   : > { %4254 = vst [vmem:[#allocation3 + $0x24] sm:$0xf] %v8302_v44  ;;  %v14816_v44 = vunpack.i.l.bf16 %v12833_v23  ;;  %v9128_v8 = vunpack.i.h.bf16 %v9126_v51  ;;  %v9127_v26 = vunpack.i.l.bf16 %v9126_v51  ;;  %v14817_v23 = vunpack.i.l.bf16 %v12911_v46  ;;  %v9427_v51 = vld [vmem:[#allocation3 + $0x128] ss:$20 sps:$4 sm:$0xff]  }
 0x555   : > { %5209 = vmatpush2.bf16.msra.mxu0 %v10198_v29  ;;  %v14821_v46 = vunpack.i.l.bf16 %v12897_v49  ;;  %v14822_v0 = vunpack.i.h.bf16 %v12897_v49  ;;  %5253 = vmatprep.subr.bf16.mxu1 %v10199_v35  ;;  %v10202_v43 = vpack.c.bf16 %v13186_v56, %v13200_v19  ;;  %v13277_v49 = vld [vmem:[#allocation9 + $0x90] ss:$8 sps:$4 sm:$0xff]   ;;  %v14823_v19 = vunpack.i.l.bf16 %v12981_v15 }
 0x556   : > { %v4373_v41 = vsel %vm2426_vm7, %v14816_v44, %v9117_v63  ;;  %v4361_v38 = vsel %vm2426_vm7, %v9127_v26, %v9087_v1  ;;  %v4362_v6 = vsel %vm2426_vm7, %v9128_v8, %v9088_v25  ;;  %v4369_v40 = vsel %vm2426_vm7, %v14817_v23, %v9127_v26  ;;  %5324 = vmatprep.subr.bf16.mxu0 %v14618_v17 }
 0x557   : > { %v4370_v63 = vsel %vm2426_vm7, %v14818_v61, %v9128_v8  ;;  %v9136_v29 = vpop.permute.xlu1 %9135  ;;  %v10200_v1 = vpack.c.bf16 %v4374_v55, %v4373_v41  ;;  %v4045_v25 = vsel %vm4030_vm10, %v9132_v7, %v14819_v36  ;;  %v14820_v44 = vunpack.i.h.bf16 %v13066_v27  ;;  %v13266_v55 = vld [vmem:[#allocation9 + $0x94] ss:$8 sps:$4 sm:$0xff]   ;;  %v9141_v27 = vpop.permute.xlu0 %9140 }
 0x558   : > { %v4053_v8 = vsel %vm4030_vm10, %v14821_v46, %v9132_v7  ;;  %5211 = vmatmul.mubr.bf16.vlgmr.msra.gmra.mxu0 %v13234_v42  ;;  %v4054_v41 = vsel %vm4030_vm10, %v14822_v0, %v9133_v10  ;;  %v9138_v23 = vunpack.i.h.bf16 %v9136_v29  ;;  %v9137_v61 = vunpack.i.l.bf16 %v9136_v29  ;;  %v9428_v7 = vld [vmem:[#allocation3 + $0x100] ss:$20 sps:$4 sm:$0xff]  }
 0x559   : > { %v4046_v26 = vsel %vm4030_vm10, %v9133_v10, %v14820_v44  ;;  %5325 = vmatpush1.bf16.msra.mxu0 %v9427_v51  ;;  %5254 = vmatpush1.bf16.msra.mxu1 %v10200_v1  ;;  %v9143_v54 = vunpack.i.h.bf16 %v9141_v27  ;;  %v9142_v10 = vunpack.i.l.bf16 %v9141_v27  ;;  %v10203_v35 = vpack.c.bf16 %v4362_v6, %v4361_v38  ;;  %v13279_v51 = vld [vmem:[#allocation9 + $0xa4] ss:$8 sps:$4 sm:$0xff]  }
 0x55a   : > { %5255 = vmatprep.subr.bf16.mxu1 %v10201_v58  ;;  %5326 = vmatprep.subr.bf16.mxu0 %v14618_v17  ;;  %v4043_v29 = vsel %vm4030_vm10, %v9137_v61, %v9097_v5  ;;  %v4044_v56 = vsel %vm4030_vm10, %v9138_v23, %v9098_v11  ;;  %v4051_v1 = vsel %vm4030_vm10, %v14823_v19, %v9137_v61  ;;  %v14824_v36 = vunpack.i.h.bf16 %v12981_v15  ;;  %v9432_v5 = vld [vmem:[#allocation3 + $0xd8] ss:$20 sps:$4 sm:$0xff]   ;;  %v13318_v61 = vld [vmem:[#allocation9 + $0xa0] ss:$8 sps:$4 sm:$0xff]  }
 0x55b   : > { %7981 = vmatprep.mubr.msk.bf16.mxu0 %vm1957_vm0, %v13266_v55  ;;  %v9146_v6 = vpop.permute.xlu1 %9145  ;;  %v10204_v60 = vpack.c.bf16 %v4370_v63, %v4369_v40  ;;  %v10205_v11 = vpack.c.bf16 %v4046_v26, %v4045_v25  ;;  %v14825_v44 = vunpack.i.l.bf16 %v13094_v3  ;;  %v14826_v15 = vunpack.i.h.bf16 %v13094_v3 }
 0x55c   : > { %v4052_v38 = vsel %vm4030_vm10, %v14824_v36, %v9138_v23  ;;  %v9147_v58 = vunpack.i.l.bf16 %v9146_v6  ;;  %v14827_v27 = vunpack.i.l.bf16 %v12941_v20  ;;  %v14828_v63 = vunpack.i.h.bf16 %v12941_v20  ;;  %v9433_v23 = vld [vmem:[#allocation3 + $0xb0] ss:$20 sps:$4 sm:$0xff]   ;;  %v13324_v20 = vld [vmem:[#allocation9 + $0xb4] ss:$8 sps:$4 sm:$0xff]  }
 0x55d   : > { %5327 = vmatpush1.bf16.msra.mxu0 %v9428_v7  ;;  %5256 = vmatpush1.bf16.msra.mxu1 %v10202_v43  ;;  %v4041_v46 = vsel %vm4030_vm10, %v9142_v10, %v14825_v44  ;;  %v4042_v0 = vsel %vm4030_vm10, %v9143_v54, %v14826_v15  ;;  %v9148_v26 = vunpack.i.h.bf16 %v9146_v6  ;;  %v10206_v3 = vpack.c.bf16 %v4054_v41, %v4053_v8  ;;  %v9441_v36 = vld [vmem:[#allocation9 + $0xb0] ss:$8 sps:$4 sm:$0xff]   ;;  %v9451_v15 = vld [vmem:[#allocation3 + $0x174] ss:$20 sps:$4 sm:$0xff]  }
 0x55e   : > { %5257 = vmatprep.subr.bf16.mxu1 %v10203_v35  ;;  %5328 = vmatprep.subr.bf16.mxu0 %v14618_v17  ;;  %v4049_v40 = vsel %vm4030_vm10, %v14827_v27, %v9142_v10  ;;  %v4050_v25 = vsel %vm4030_vm10, %v14828_v63, %v9143_v54  ;;  %v4039_v7 = vsel %vm4030_vm10, %v9147_v58, %v9107_v48  ;;  %v14829_v54 = vunpack.i.h.bf16 %v13178_v30  ;;  %v9437_v48 = vld [vmem:[#allocation3 + $0x88] ss:$20 sps:$4 sm:$0xff]   ;;  %v9455_v27 = vld [vmem:[#allocation3 + $0x14c] ss:$20 sps:$4 sm:$0xff]  }
 0x55f   : > { %v10207_v43 = vpack.c.bf16 %v4044_v56, %v4043_v29  ;;  %v14830_v35 = vunpack.i.l.bf16 %v13068_v13  ;;  %v14831_v41 = vunpack.i.h.bf16 %v13068_v13  ;;  %v10208_v30 = vpack.c.bf16 %v4052_v38, %v4051_v1  ;;  %v9438_v13 = vld [vmem:[#allocation3 + $0x60] ss:$20 sps:$4 sm:$0xff]   ;;  %v9443_v38 = vld [vmem:[#allocation3 + $0x1c4] ss:$20 sps:$4 sm:$0xff]   ;;  %v9447_v44 = vld [vmem:[#allocation3 + $0x19c] ss:$20 sps:$4 sm:$0xff]  }
 0x560   : > { %5221 = vmatmul.mubr.bf16.gmra.mxu0 %v13277_v49  ;;  %v4040_v10 = vsel %vm4030_vm10, %v9148_v26, %v14829_v54  ;;  %v10209_v29 = vpack.c.bf16 %v4042_v0, %v4041_v46  ;;  %v10210_v56 = vpack.c.bf16 %v4050_v25, %v4049_v40  ;;  %v9450_v46 = vld [vmem:[#allocation3 + $0x1c8] ss:$20 sps:$4 sm:$0xff]   ;;  %v9453_v0 = vld [vmem:[#allocation3 + $0x170] ss:$20 sps:$4 sm:$0xff]   ;;  %v9458_v40 = vld [vmem:[#allocation3 + $0x178] ss:$20 sps:$4 sm:$0xff]  }
 0x561   : > { %5329 = vmatpush1.bf16.msra.mxu0 %v9432_v5  ;;  %7982 = vmatprep.mubr.msk.bf16.mxu0 %vm1957_vm0, %v13279_v51  ;;  %v4047_v8 = vsel %vm4030_vm10, %v14830_v35, %v9147_v58  ;;  %v4048_v19 = vsel %vm4030_vm10, %v14831_v41, %v9148_v26  ;;  %v10211_v6 = vpack.c.bf16 %v4040_v10, %v4039_v7  ;;  %v9442_v5 = vld [vmem:[#allocation3 + $0x38] ss:$20 sps:$4 sm:$0xff]   ;;  %v9457_v63 = vld [vmem:[#allocation3 + $0x148] ss:$20 sps:$4 sm:$0xff]   ;;  %v9459_v25 = vld [vmem:[#allocation3 + $0x150] ss:$20 sps:$4 sm:$0xff]  }
 0x562   : > { %5258 = vmatpush1.bf16.msra.mxu1 %v10204_v60  ;;  %5330 = vmatprep.subr.bf16.mxu0 %v14618_v17  ;;  %v10212_v1 = vpack.c.bf16 %v4048_v19, %v4047_v8  ;;  %v9446_v60 = vld [vmem:[#allocation3 + $0x10] ss:$20 sps:$4 sm:$0xff]   ;;  %v9449_v58 = vld [vmem:[#allocation3 + $0x198] ss:$20 sps:$4 sm:$0xff]  }
 0x563   : > { %5259 = vmatprep.subr.bf16.mxu1 %v10205_v11  ;;  %v9445_v11 = vld [vmem:[#allocation3 + $0x1c0] ss:$20 sps:$4 sm:$0xff]  }
 0x564   : > { %v9951_v19 = vld [vmem:[%s10672_s23] sm:$0xff] }
 0x565   : > { %5331 = vmatpush1.bf16.msra.mxu0 %v9433_v23 }
 0x566   : > { %5260 = vmatpush1.bf16.msra.mxu1 %v10206_v3  ;;  %5332 = vmatprep.subr.bf16.mxu0 %v14618_v17 }
 0x567   : > { %5261 = vmatprep.subr.bf16.mxu1 %v10207_v43 }
 0x568   : > { %5231 = vmatmul.mubr.bf16.gmra.mxu0 %v13318_v61 }
 0x569   : > { %5333 = vmatpush1.bf16.msra.mxu0 %v9437_v48  ;;  %7983 = vmatprep.mubr.msk.bf16.mxu0 %vm1957_vm0, %v13324_v20 }
 0x56a   : > { %5262 = vmatpush1.bf16.msra.mxu1 %v10208_v30  ;;  %5334 = vmatprep.subr.bf16.mxu0 %v14618_v17  ;;  %v9952_v30 = vld [vmem:[%s10680_s26] sm:$0xff] }
 0x56b   : > { %5263 = vmatprep.subr.bf16.mxu1 %v10209_v29 }
 0x56d   : > { %5335 = vmatpush1.bf16.msra.mxu0 %v9438_v13 }
 0x56e   : > { %5264 = vmatpush1.bf16.msra.mxu1 %v10210_v56  ;;  %5336 = vmatprep.subr.bf16.mxu0 %v14618_v17 }
 0x56f   : > { %5265 = vmatprep.subr.bf16.mxu1 %v10211_v6 }
 0x570   : > { %5241 = vmatmul.mubr.bf16.gmra.mxu0 %v9441_v36 }
 0x571   : > { %5337 = vmatpush1.bf16.msra.mxu0 %v9442_v5  ;;  %7988 = vmatprep.mubr.msk.bf16.mxu0 %vm1957_vm0, %v12820_v45  ;;  %v9454_v45 = vld [vmem:[#allocation3 + $0x1a0] ss:$20 sps:$4 sm:$0xff]  }
 0x572   : > { %5266 = vmatpush1.bf16.msra.mxu1 %v10212_v1  ;;  %5338 = vmatprep.subr.bf16.mxu0 %v14618_v17 }
 0x573   : > { %5275 = vmatprep.subr.bf16.mxu1 %v9443_v38  ;;  %v9954_v38 = vld [vmem:[%s10680_s26 + $0x20] sm:$0xff] }
 0x575   : > { %5339 = vmatpush1.bf16.msra.mxu0 %v9446_v60 }
 0x576   : > { %5276 = vmatpush2.bf16.msra.mxu1 %v9445_v11  ;;  %5348 = vmatprep.subr.bf16.mxu0 %v14618_v17 }
 0x577   : > { %5277 = vmatprep.subr.bf16.mxu1 %v9447_v44 }
 0x579   : > { %5349 = vmatpush2.bf16.msra.mxu0 %v9450_v46 }
 0x57a   : > { %5278 = vmatpush2.bf16.msra.mxu1 %v9449_v58  ;;  %5350 = vmatprep.subr.bf16.mxu0 %v14618_v17 }
 0x57b   : > { %5279 = vmatprep.subr.bf16.mxu1 %v9451_v15 }
 0x57d   : > { %5351 = vmatpush2.bf16.msra.mxu0 %v9454_v45  ;;  %v9955_v45 = vld [vmem:[%s10672_s23 + $0x10] sm:$0xff] }
 0x57e   : > { %5280 = vmatpush2.bf16.msra.mxu1 %v9453_v0  ;;  %5352 = vmatprep.subr.bf16.mxu0 %v14618_v17  ;;  %v9956_v0 = vld [vmem:[%s10680_s26 + $0x40] sm:$0xff] }
 0x57f   : > { %5281 = vmatprep.subr.bf16.mxu1 %v9455_v27 }
 0x581   : > { %5353 = vmatpush2.bf16.msra.mxu0 %v9458_v40 }
 0x582   : > { %5282 = vmatpush2.bf16.msra.mxu1 %v9457_v63  ;;  %5354 = vmatprep.subr.bf16.mxu0 %v14618_v17 }
 0x585   : > { %5284 = vmatmul.mubr.bf16.vlgmr.msra.gmra.mxu1 %v13234_v42  ;;  %5355 = vmatpush2.bf16.msra.mxu0 %v9459_v25 }
 0x586   : > { %7985 = vmatprep.mubr.msk.bf16.mxu1 %vm1957_vm0, %v13266_v55 }
 0x588   : > { %5357 = vmatmul.mubr.bf16.vlgmr.msra.gmra.mxu0 %v13234_v42 }
 0x589   : > { %7989 = vmatprep.mubr.msk.bf16.mxu0 %vm1957_vm0, %v13266_v55 }
 0x58d   : > { %5294 = vmatmul.mubr.bf16.gmra.mxu1 %v13277_v49 }
 0x58e   : > { %7986 = vmatprep.mubr.msk.bf16.mxu1 %vm1957_vm0, %v13279_v51 }
 0x590   : > { %5365 = vmatmul.mubr.bf16.gmra.mxu0 %v13277_v49 }
 0x591   : > { %7990 = vmatprep.mubr.msk.bf16.mxu0 %vm1957_vm0, %v13279_v51 }
 0x595   : > { %5304 = vmatmul.mubr.bf16.gmra.mxu1 %v13318_v61 }
 0x596   : > { %7987 = vmatprep.mubr.msk.bf16.mxu1 %vm1957_vm0, %v13324_v20 }
 0x598   : > { %5373 = vmatmul.mubr.bf16.gmra.mxu0 %v13318_v61 }
 0x599   : > { %7991 = vmatprep.mubr.msk.bf16.mxu0 %vm1957_vm0, %v13324_v20 }
 0x59d   : > { %5314 = vmatmul.mubr.bf16.gmra.mxu1 %v9441_v36 }
 0x5a0   : > { %5381 = vmatmul.mubr.bf16.gmra.mxu0 %v9441_v36  ;;  %v9953_v36 = vld [vmem:[%s10672_s23 + $0x8] sm:$0xff] }
 0x618   : > { %v5212_v42 = vpop.f32.mrf.mxu0 }
 0x619   : > { %9743 = vtanh.f32 %v5212_v42 }
 0x61a   : > { %v5214_v55 = vpop.f32.mrf.mxu0 }
 0x61b   : > { %9745 = vtanh.f32 %v5214_v55  ;;  %v9957_v55 = vld [vmem:[%s10672_s23 + $0x18] sm:$0xff] }
 0x61c   : > { %v5216_v49 = vpop.f32.mrf.mxu0 }
 0x61d   : > { %9747 = vtanh.f32 %v5216_v49 }
 0x61e   : > { %v5218_v26 = vpop.f32.mrf.mxu0 }
 0x61f   : > { %9749 = vtanh.f32 %v5218_v26 }
 0x620   : > { %v5222_v51 = vpop.f32.mrf.mxu0 }
 0x621   : > { %9751 = vtanh.f32 %v5222_v51 }
 0x622   : > { %v5224_v23 = vpop.f32.mrf.mxu0 }
 0x623   : > { %9753 = vtanh.f32 %v5224_v23 }
 0x624   : > { %v5226_v3 = vpop.f32.mrf.mxu0 }
 0x625   : > { %9755 = vtanh.f32 %v5226_v3  ;;  %v9958_v3 = vld [vmem:[%s10680_s26 + $0x60] sm:$0xff] }
 0x626   : > { %v9744_v61 = vpop.eup %9743  ;;  %v5228_v7 = vpop.f32.mrf.mxu0 }
 0x627   : > { %9757 = vtanh.f32 %v5228_v7  ;;  %v5429_v43 = vadd.f32 %v9744_v61, %v12760_v37 }
 0x628   : > { %v9746_v20 = vpop.eup %9745  ;;  %v5232_v54 = vpop.f32.mrf.mxu0 }
 0x629   : > { %v5430_v10 = vadd.f32 %v9746_v20, %v12771_v22  ;;  %9759 = vtanh.f32 %v5232_v54  ;;  %v13373_v48 = vadd.f32 %v9951_v19, %v5429_v43 }
 0x62a   : > { %v9748_v35 = vpop.eup %9747  ;;  %v5234_v8 = vpop.f32.mrf.mxu0 }
 0x62b   : > { %9761 = vtanh.f32 %v5234_v8  ;;  %v5434_v41 = vadd.f32 %v9748_v35, %v12753_v18  ;;  %v13376_v29 = vadd.f32 %v9952_v30, %v5430_v10  ;;  %v9959_v8 = vld [vmem:[%s10672_s23 + $0x20] sm:$0xff] }
 0x62c   : > { %v9750_v13 = vpop.eup %9749  ;;  %v5236_v37 = vpop.f32.mrf.mxu0 }
 0x62d   : > { %v5435_v56 = vadd.f32 %v9750_v13, %v12765_v4  ;;  %9763 = vtanh.f32 %v5236_v37  ;;  %v13380_v22 = vadd.f32 %v9953_v36, %v5434_v41  ;;  %v9960_v41 = vld [vmem:[%s10680_s26 + $0x80] sm:$0xff]  ;;  %v9961_v13 = vld [vmem:[%s10672_s23 + $0x28] sm:$0xff] }
 0x62e   : > { %v9752_v6 = vpop.eup %9751  ;;  %v5238_v5 = vpop.f32.mrf.mxu0 }
 0x62f   : > { %9765 = vtanh.f32 %v5238_v5  ;;  %v5439_v18 = vadd.f32 %v9752_v6, %v12515_v39  ;;  %v13385_v1 = vpack.i.bf16 %v13380_v22, %v13373_v48  ;;  %v13388_v60 = vadd.f32 %v9954_v38, %v5435_v56 }
 0x630   : > { %v9754_v11 = vpop.eup %9753  ;;  %v5242_v4 = vpop.f32.mrf.mxu0 }
 0x631   : > { %v5440_v44 = vadd.f32 %v9754_v11, %v12518_v12  ;;  %9767 = vtanh.f32 %v5242_v4  ;;  %v5519_v39 = vadd.f32 %v9955_v45, %v5439_v18 }
 0x632   : > { %v9756_v46 = vpop.eup %9755  ;;  %v5244_v58 = vpop.f32.mrf.mxu0 }
 0x633   : > { %9769 = vtanh.f32 %v5244_v58  ;;  %v5444_v15 = vadd.f32 %v9756_v46, %v12521_v52  ;;  %v13394_v27 = vadd.f32 %v9956_v0, %v5440_v44  ;;  %v9963_v58 = vld [vmem:[%s10672_s23 + $0x30] sm:$0xff] }
 0x634   : > { %v9758_v40 = vpop.eup %9757  ;;  %v5246_v63 = vpop.f32.mrf.mxu0 }
 0x635   : > { %v5445_v42 = vadd.f32 %v9758_v40, %v12531_v34  ;;  %9771 = vtanh.f32 %v5246_v63  ;;  %v5524_v49 = vadd.f32 %v9957_v55, %v5444_v15  ;;  %v8423_v52 = vpack.c.bf16 %v13394_v27, %v5519_v39  ;;  %v9964_v15 = vld [vmem:[%s10680_s26 + $0xc0] sm:$0xff]  ;;  %v9965_v40 = vld [vmem:[%s10672_s23 + $0x38] sm:$0xff]  ;;  %s10474_s23 = smov 16  }
 0x636   : > { %v9760_v26 = vpop.eup %9759  ;;  %v5248_v51 = vpop.f32.mrf.mxu0 }
 0x637   : > { %9773 = vtanh.f32 %v5248_v51  ;;  %v13403_v23 = vpack.i.bf16 %v5524_v49, %v5519_v39  ;;  %v13406_v61 = vadd.f32 %v9958_v3, %v5445_v42  ;;  %6323 = vst [vmem:[#allocation3 + $0x168] sm:$0xff] %v8423_v52  ;;  %v5449_v7 = vadd.f32 %v9760_v26, %v12545_v21 }
 0x638   : > { %v9762_v34 = vpop.eup %9761 }
 0x639   : > { %v5450_v43 = vadd.f32 %v9762_v34, %v12548_v53  ;;  %9150 = vrot.lane.b32.xlu0 %v13403_v23, %s10473_s19  ;;  %v8426_v20 = vpack.c.bf16 %v13406_v61, %v5524_v49  ;;  %v13415_v10 = vpack.i.bf16 %v13406_v61, %v13394_v27  ;;  %v5529_v21 = vadd.f32 %v9959_v8, %v5449_v7  ;;  %v9966_v49 = vld [vmem:[%s10680_s26 + $0xe0] sm:$0xff] }
 0x63a   : > { %v9764_v54 = vpop.eup %9763 }
 0x63b   : > { %6326 = vst [vmem:[#allocation3 + $0x17c] sm:$0xff] %v8426_v20  ;;  %v5454_v35 = vadd.f32 %v9764_v54, %v12553_v31  ;;  %v13420_v19 = vadd.f32 %v9960_v41, %v5450_v43  ;;  %v9962_v31 = vld [vmem:[%s10680_s26 + $0xa0] sm:$0xff] }
 0x63c   : > { %v9766_v53 = vpop.eup %9765 }
 0x63d   : > { %v5455_v30 = vadd.f32 %v9766_v53, %v12563_v59  ;;  %9155 = vrot.lane.b32.xlu0 %v13415_v10, %s10473_s19  ;;  %v5534_v37 = vadd.f32 %v9961_v13, %v5454_v35  ;;  %v8429_v56 = vpack.c.bf16 %v13420_v19, %v5529_v21 }
 0x63e   : > { %v9768_v36 = vpop.eup %9767 }
 0x63f   : > { %v13427_v6 = vpack.i.bf16 %v5534_v37, %v5529_v21  ;;  %v13430_v5 = vadd.f32 %v9962_v31, %v5455_v30  ;;  %6329 = vst [vmem:[#allocation3 + $0x190] sm:$0xff] %v8429_v56  ;;  %v5459_v18 = vadd.f32 %v9768_v36, %v12578_v47 }
 0x640   : > { %v9770_v38 = vpop.eup %9769 }
 0x641   : > { %v5460_v59 = vadd.f32 %v9770_v38, %v12595_v24  ;;  %9160 = vrot.lane.b32.xlu1 %v13427_v6, %s10473_s19  ;;  %v8432_v11 = vpack.c.bf16 %v13430_v5, %v5534_v37  ;;  %v13439_v44 = vpack.i.bf16 %v13430_v5, %v13420_v19  ;;  %v13443_v47 = vadd.f32 %v9963_v58, %v5459_v18 }
 0x642   : > { %v9772_v4 = vpop.eup %9771 }
 0x643   : > { %6332 = vst [vmem:[#allocation3 + $0x1a4] sm:$0xff] %v8432_v11  ;;  %v5464_v46 = vadd.f32 %v9772_v4, %v12581_v62  ;;  %v13446_v45 = vadd.f32 %v9964_v15, %v5460_v59 }
 0x644   : > { %v9774_v24 = vpop.eup %9773 }
 0x645   : > { %v5465_v39 = vadd.f32 %v9774_v24, %v12590_v33  ;;  %v5285_v0 = vpop.f32.mrf.mxu1  ;;  %9165 = vrot.lane.b32.xlu1 %v13439_v44, %s10473_s19  ;;  %v13452_v63 = vadd.f32 %v9965_v40, %v5464_v46  ;;  %v8435_v42 = vpack.c.bf16 %v13446_v45, %v13443_v47  ;;  %v9967_v24 = vld [vmem:[%s10680_s26 + $0x8] sm:$0xff] }
 0x646   : > { %9775 = vtanh.f32 %v5285_v0 }
 0x647   : > { %v5287_v62 = vpop.f32.mrf.mxu1  ;;  %v13458_v55 = vpack.i.bf16 %v13452_v63, %v13443_v47  ;;  %v13461_v52 = vadd.f32 %v9966_v49, %v5465_v39  ;;  %6335 = vst [vmem:[#allocation3 + $0x1b8] sm:$0xff] %v8435_v42  ;;  %v9968_v39 = vld [vmem:[%s10680_s26 + $0x10] sm:$0xff] }
 0x648   : > { %9777 = vtanh.f32 %v5287_v62  ;;  %v5358_v33 = vpop.f32.mrf.mxu0  ;;  %v9969_v62 = vld [vmem:[%s10680_s26 + $0x18] sm:$0xff] }
 0x649   : > { %v5289_v26 = vpop.f32.mrf.mxu1  ;;  %9779 = vtanh.f32 %v5358_v33  ;;  %9170 = vrot.lane.b32.xlu0 %v13458_v55, %s10473_s19  ;;  %v8438_v51 = vpack.c.bf16 %v13461_v52, %v13452_v63  ;;  %v13469_v34 = vpack.i.bf16 %v13461_v52, %v13446_v45 }
 0x64a   : > { %9781 = vtanh.f32 %v5289_v26  ;;  %v5360_v3 = vpop.f32.mrf.mxu0 }
 0x64b   : > { %v5291_v7 = vpop.f32.mrf.mxu1  ;;  %6338 = vst [vmem:[#allocation3 + $0x1cc] sm:$0xff] %v8438_v51 }
 0x64c   : > { %9783 = vtanh.f32 %v5291_v7  ;;  %v5361_v54 = vpop.f32.mrf.mxu0 }
 0x64d   : > { %v5295_v35 = vpop.f32.mrf.mxu1  ;;  %9785 = vtanh.f32 %v5361_v54  ;;  %9175 = vrot.lane.b32.xlu0 %v13469_v34, %s10473_s19 }
 0x64e   : > { %9787 = vtanh.f32 %v5295_v35  ;;  %v5363_v8 = vpop.f32.mrf.mxu0 }
 0x64f   : > { %v5297_v21 = vpop.f32.mrf.mxu1  ;;  %v14834_v8 = vld [vmem:[#allocation36_spill] sm:$0xff] }
 0x650   : > { %9789 = vtanh.f32 %v5297_v21  ;;  %v5366_v41 = vpop.f32.mrf.mxu0 }
 0x651   : > { %v5299_v53 = vpop.f32.mrf.mxu1  ;;  %9791 = vtanh.f32 %v5366_v41  ;;  %v9970_v41 = vld [vmem:[%s10680_s26 + $0x30] sm:$0xff] }
 0x652   : > { %9793 = vtanh.f32 %v5299_v53  ;;  %v5368_v30 = vpop.f32.mrf.mxu0 }
 0x653   : > { %v9776_v13 = vpop.eup %9775  ;;  %v5301_v37 = vpop.f32.mrf.mxu1 }
 0x654   : > { %v5431_v56 = vadd.f32 %v9776_v13, %v12610_v28  ;;  %9795 = vtanh.f32 %v5301_v37  ;;  %v5369_v36 = vpop.f32.mrf.mxu0  ;;  %v9971_v13 = vld [vmem:[%s10680_s26 + $0x38] sm:$0xff] }
 0x655   : > { %v9778_v31 = vpop.eup %9777  ;;  %v5305_v18 = vpop.f32.mrf.mxu1  ;;  %9797 = vtanh.f32 %v5369_v36 }
 0x656   : > { %v9780_v38 = vpop.eup %9779  ;;  %v5432_v59 = vadd.f32 %v9778_v31, %v12607_v32  ;;  %9799 = vtanh.f32 %v5305_v18  ;;  %v5371_v11 = vpop.f32.mrf.mxu0  ;;  %v13481_v28 = vadd.f32 %v9967_v24, %v5431_v56  ;;  %v14837_v56 = vld [vmem:[#allocation35_spill] sm:$0xff]  ;;  %v9972_v18 = vld [vmem:[%s10680_s26 + $0x28] sm:$0xff] }
 0x657   : > { %v9782_v4 = vpop.eup %9781  ;;  %v5433_v46 = vadd.f32 %v9780_v38, %v12613_v16  ;;  %v5307_v58 = vpop.f32.mrf.mxu1  ;;  %v14838_v11 = vld [vmem:[#allocation43_spill] sm:$0xff] }
 0x658   : > { %9801 = vtanh.f32 %v5307_v58  ;;  %v5374_v15 = vpop.f32.mrf.mxu0  ;;  %v13484_v0 = vadd.f32 %v9968_v39, %v5432_v59  ;;  %v5436_v33 = vadd.f32 %v9782_v4, %v12635_v50  ;;  %v14839_v39 = vld [vmem:[#allocation42_spill] sm:$0xff] }
 0x659   : > { %v9784_v40 = vpop.eup %9783  ;;  %v5309_v42 = vpop.f32.mrf.mxu1  ;;  %9803 = vtanh.f32 %v5374_v15  ;;  %v13487_v32 = vadd.f32 %v9969_v62, %v5433_v46  ;;  %v9973_v15 = vld [vmem:[%s10680_s26 + $0x48] sm:$0xff]  ;;  %v9974_v62 = vld [vmem:[%s10680_s26 + $0x50] sm:$0xff] }
 0x65a   : > { %14832 = vst [vmem:[#allocation34_spill] sm:$0xff] %v13484_v0  ;;  %v9786_v49 = vpop.eup %9785  ;;  %v5437_v16 = vadd.f32 %v9784_v40, %v12627_v14  ;;  %9805 = vtanh.f32 %v5309_v42  ;;  %v5376_v26 = vpop.f32.mrf.mxu0  ;;  %v8418_v51 = vpack.c.bf16 %v13484_v0, %v13481_v28  ;;  %v13505_v38 = vadd.f32 %v9972_v18, %v5436_v33 }
 0x65b   : > { %14833 = vst [vmem:[#allocation28_spill] sm:$0xff] %v13487_v32  ;;  %v9788_v3 = vpop.eup %9787  ;;  %v5438_v7 = vadd.f32 %v9786_v49, %v12624_v9  ;;  %v5311_v54 = vpop.f32.mrf.mxu1  ;;  %v8419_v35 = vpack.c.bf16 %v13487_v32, %v13487_v32 }
 0x65c   : > { %v5441_v21 = vadd.f32 %v9788_v3, %v14834_v8  ;;  %9807 = vtanh.f32 %v5311_v54  ;;  %v5377_v50 = vpop.f32.mrf.mxu0  ;;  %v13498_v14 = vadd.f32 %v9970_v41, %v5437_v16  ;;  %6318 = vst [vmem:[#allocation3 + $0x148] sm:$0xff] %v8418_v51  ;;  %v9975_v51 = vld [vmem:[%s10680_s26 + $0x58] sm:$0xff]  ;;  %v14842_v54 = vld [vmem:[#allocation41_spill] sm:$0xff]  ;;  %v14843_v41 = vld [vmem:[#allocation40_spill] sm:$0xff] }
 0x65d   : > { %v9790_v53 = vpop.eup %9789  ;;  %v5315_v30 = vpop.f32.mrf.mxu1  ;;  %9809 = vtanh.f32 %v5377_v50  ;;  %v13501_v37 = vadd.f32 %v9971_v13, %v5438_v7  ;;  %6319 = vst [vmem:[#allocation3 + $0x150] sm:$0xf] %v8419_v35 }
 0x65e   : > { %14835 = vst [vmem:[#allocation30_spill] sm:$0xff] %v13498_v14  ;;  %v9792_v9 = vpop.eup %9791  ;;  %v5442_v36 = vadd.f32 %v9790_v53, %v14837_v56  ;;  %9811 = vtanh.f32 %v5315_v30  ;;  %v5379_v31 = vpop.f32.mrf.mxu0  ;;  %v13511_v24 = vadd.f32 %v9973_v15, %v5441_v21  ;;  %v8421_v33 = vpack.c.bf16 %v13498_v14, %v13505_v38 }
 0x65f   : > { %14836 = vst [vmem:[#allocation36_spill] sm:$0xff] %v13501_v37  ;;  %v9794_v59 = vpop.eup %9793  ;;  %v5443_v4 = vadd.f32 %v9792_v9, %v14838_v11  ;;  %v5317_v46 = vpop.f32.mrf.mxu1  ;;  %v8422_v58 = vpack.c.bf16 %v13501_v37, %v13501_v37  ;;  %v14844_v9 = vld [vmem:[#allocation25_spill] sm:$0xff] }
 0x660   : > { %v5446_v40 = vadd.f32 %v9794_v59, %v14839_v39  ;;  %9813 = vtanh.f32 %v5317_v46  ;;  %v5382_v42 = vpop.f32.mrf.mxu0  ;;  %v13515_v49 = vadd.f32 %v9974_v62, %v5442_v36  ;;  %6321 = vst [vmem:[#allocation3 + $0x15c] sm:$0xff] %v8421_v33  ;;  %v9976_v31 = vld [vmem:[%s10680_s26 + $0x68] sm:$0xff]  ;;  %v9977_v59 = vld [vmem:[%s10680_s26 + $0x70] sm:$0xff]  ;;  %v9978_v46 = vld [vmem:[%s10680_s26 + $0x78] sm:$0xff] }
 0x661   : > { %v9796_v16 = vpop.eup %9795  ;;  %v5319_v26 = vpop.f32.mrf.mxu1  ;;  %9815 = vtanh.f32 %v5382_v42  ;;  %v13520_v3 = vadd.f32 %v9975_v51, %v5443_v4  ;;  %6322 = vst [vmem:[#allocation3 + $0x164] sm:$0xf] %v8422_v58  ;;  %v14847_v39 = vld [vmem:[#allocation26_spill] sm:$0xff] }
 0x662   : > { %14840 = vst [vmem:[#allocation35_spill] sm:$0xff] %v13515_v49  ;;  %v9798_v7 = vpop.eup %9797  ;;  %v5447_v35 = vadd.f32 %v9796_v16, %v14842_v54  ;;  %9817 = vtanh.f32 %v5319_v26  ;;  %v5384_v8 = vpop.f32.mrf.mxu0  ;;  %v8424_v21 = vpack.c.bf16 %v13515_v49, %v13511_v24  ;;  %v13530_v18 = vadd.f32 %v9976_v31, %v5446_v40  ;;  %v14848_v16 = vld [vmem:[#allocation39_spill] sm:$0xff]  ;;  %v14849_v54 = vld [vmem:[#allocation38_spill] sm:$0xff] }
 0x663   : > { %14841 = vst [vmem:[#allocation43_spill] sm:$0xff] %v13520_v3  ;;  %v9800_v50 = vpop.eup %9799  ;;  %v5448_v53 = vadd.f32 %v9798_v7, %v14843_v41  ;;  %v5321_v30 = vpop.f32.mrf.mxu1  ;;  %v8425_v13 = vpack.c.bf16 %v13520_v3, %v13520_v3  ;;  %v9979_v8 = vld [vmem:[%s10680_s26 + $0x88] sm:$0xff] }
 0x664   : > { %v5451_v56 = vadd.f32 %v9800_v50, %v14844_v9  ;;  %9819 = vtanh.f32 %v5321_v30  ;;  %v5385_v36 = vpop.f32.mrf.mxu0  ;;  %v13533_v11 = vadd.f32 %v9977_v59, %v5447_v35  ;;  %6324 = vst [vmem:[#allocation3 + $0x170] sm:$0xff] %v8424_v21  ;;  %v9980_v50 = vld [vmem:[%s10680_s26 + $0x90] sm:$0xff]  ;;  %v9981_v30 = vld [vmem:[%s10680_s26 + $0x98] sm:$0xff] }
 0x665   : > { %v9802_v4 = vpop.eup %9801  ;;  %9821 = vtanh.f32 %v5385_v36  ;;  %v13536_v58 = vadd.f32 %v9978_v46, %v5448_v53  ;;  %6325 = vst [vmem:[#allocation3 + $0x178] sm:$0xf] %v8425_v13  ;;  %v14852_v36 = vld [vmem:[#allocation31_spill] sm:$0xff] }
 0x666   : > { %14845 = vst [vmem:[#allocation42_spill] sm:$0xff] %v13533_v11  ;;  %v9804_v15 = vpop.eup %9803  ;;  %v5452_v42 = vadd.f32 %v9802_v4, %v14847_v39  ;;  %v5387_v62 = vpop.f32.mrf.mxu0  ;;  %v8427_v40 = vpack.c.bf16 %v13533_v11, %v13530_v18  ;;  %v13550_v21 = vadd.f32 %v9979_v8, %v5451_v56  ;;  %v14853_v4 = vld [vmem:[#allocation33_spill] sm:$0xff]  ;;  %v14854_v39 = vld [vmem:[#allocation24_spill] sm:$0xff] }
 0x667   : > { %14846 = vst [vmem:[#allocation41_spill] sm:$0xff] %v13536_v58  ;;  %v9806_v33 = vpop.eup %9805  ;;  %v5453_v26 = vadd.f32 %v9804_v15, %v14848_v16  ;;  %v13544_v51 = vpack.i.bf16 %v13536_v58, %v13520_v3  ;;  %v8428_v7 = vpack.c.bf16 %v13536_v58, %v13536_v58  ;;  %v9982_v62 = vld [vmem:[%s10680_s26 + $0xa8] sm:$0xff] }
 0x668   : > { %v5456_v35 = vadd.f32 %v9806_v33, %v14849_v54  ;;  %v13553_v41 = vadd.f32 %v9980_v50, %v5452_v42  ;;  %6327 = vst [vmem:[#allocation3 + $0x184] sm:$0xff] %v8427_v40  ;;  %v9983_v33 = vld [vmem:[%s10680_s26 + $0xb0] sm:$0xff]  ;;  %v14857_v50 = vld [vmem:[#allocation29_spill] sm:$0xff] }
 0x669   : > { %v9808_v53 = vpop.eup %9807  ;;  %9180 = vrot.lane.b32.xlu1 %v13544_v51, %s10473_s19  ;;  %6328 = vst [vmem:[#allocation3 + $0x18c] sm:$0xf] %v8428_v7  ;;  %v13558_v13 = vadd.f32 %v9981_v30, %v5453_v26  ;;  %v9984_v7 = vld [vmem:[%s10680_s26 + $0xb8] sm:$0xff] }
 0x66a   : > { %14850 = vst [vmem:[#allocation40_spill] sm:$0xff] %v13553_v41  ;;  %v9810_v9 = vpop.eup %9809  ;;  %v5457_v31 = vadd.f32 %v9808_v53, %v14852_v36  ;;  %v8430_v56 = vpack.c.bf16 %v13553_v41, %v13550_v21  ;;  %v13568_v40 = vadd.f32 %v9982_v62, %v5456_v35 }
 0x66b   : > { %14851 = vst [vmem:[#allocation25_spill] sm:$0xff] %v13558_v13  ;;  %v9812_v59 = vpop.eup %9811  ;;  %v5458_v46 = vadd.f32 %v9810_v9, %v14853_v4  ;;  %v8431_v15 = vpack.c.bf16 %v13558_v13, %v13558_v13  ;;  %v14858_v9 = vld [vmem:[#allocation27_spill] sm:$0xff] }
 0x66c   : > { %v5461_v42 = vadd.f32 %v9812_v59, %v14854_v39  ;;  %v13571_v16 = vadd.f32 %v9983_v33, %v5457_v31  ;;  %6330 = vst [vmem:[#allocation3 + $0x198] sm:$0xff] %v8430_v56  ;;  %v14859_v59 = vld [vmem:[#allocation23_spill] sm:$0xff]  ;;  %v9986_v39 = vld [vmem:[%s10680_s26 + $0xd0] sm:$0xff] }
 0x66d   : > { %v9814_v26 = vpop.eup %9813  ;;  %v13574_v54 = vadd.f32 %v9984_v7, %v5458_v46  ;;  %6331 = vst [vmem:[#allocation3 + $0x1a0] sm:$0xf] %v8431_v15  ;;  %v9985_v46 = vld [vmem:[%s10680_s26 + $0xc8] sm:$0xff] }
 0x66e   : > { %14855 = vst [vmem:[#allocation26_spill] sm:$0xff] %v13571_v16  ;;  %v9816_v8 = vpop.eup %9815  ;;  %v5462_v53 = vadd.f32 %v9814_v26, %v14857_v50  ;;  %v8433_v30 = vpack.c.bf16 %v13571_v16, %v13568_v40  ;;  %v13586_v15 = vadd.f32 %v9985_v46, %v5461_v42  ;;  %v9987_v26 = vld [vmem:[%s10680_s26 + $0xd8] sm:$0xff]  ;;  %v14862_v50 = vld [vmem:[#allocation32_spill] sm:$0xff]  ;;  %v9988_v46 = vld [vmem:[%s10680_s26 + $0xe8] sm:$0xff] }
 0x66f   : > { %14856 = vst [vmem:[#allocation39_spill] sm:$0xff] %v13574_v54  ;;  %v9818_v35 = vpop.eup %9817  ;;  %v5463_v36 = vadd.f32 %v9816_v8, %v14858_v9  ;;  %v9184_v31 = vpack.i.bf16 %v13574_v54, %v13558_v13  ;;  %v8434_v56 = vpack.c.bf16 %v13574_v54, %v13574_v54  ;;  %v14863_v9 = vld [vmem:[#allocation37_spill] sm:$0xff] }
 0x670   : > { %v5466_v4 = vadd.f32 %v9818_v35, %v14859_v59  ;;  %v13589_v62 = vadd.f32 %v9986_v39, %v5462_v53  ;;  %6333 = vst [vmem:[#allocation3 + $0x1ac] sm:$0xff] %v8433_v30  ;;  %v9199_v53 = vpack.i.bf16 %v13501_v37, %v13487_v32 }
 0x671   : > { %v9820_v33 = vpop.eup %9819  ;;  %9185 = vrot.lane.b32.xlu0 %v9184_v31, %s10473_s19  ;;  %6334 = vst [vmem:[#allocation3 + $0x1b4] sm:$0xf] %v8434_v56  ;;  %v13593_v7 = vadd.f32 %v9987_v26, %v5463_v36  ;;  %v9989_v56 = vld [vmem:[%s10680_s26 + $0xf0] sm:$0xff] }
 0x672   : > { %14860 = vst [vmem:[#allocation38_spill] sm:$0xff] %v13589_v62  ;;  %v9822_v8 = vpop.eup %9821  ;;  %v5467_v35 = vadd.f32 %v9820_v33, %v14862_v50  ;;  %v8436_v42 = vpack.c.bf16 %v13589_v62, %v13586_v15  ;;  %v13604_v39 = vadd.f32 %v9988_v46, %v5466_v4  ;;  %v9990_v33 = vld [vmem:[%s10680_s26 + $0xf8] sm:$0xff] }
 0x673   : > { %14861 = vst [vmem:[#allocation31_spill] sm:$0xff] %v13593_v7  ;;  %v5468_v59 = vadd.f32 %v9822_v8, %v14863_v9  ;;  %v8437_v30 = vpack.c.bf16 %v13593_v7, %v13593_v7  ;;  %v7234_v9 = vld [vmem:[%s14865_s17 + $0x8] sm:$0xff] }
 0x674   : > { %v13607_v36 = vadd.f32 %v9989_v56, %v5467_v35  ;;  %6336 = vst [vmem:[#allocation3 + $0x1c0] sm:$0xff] %v8436_v42  ;;  %v9204_v35 = vpack.i.bf16 %v13388_v60, %v13376_v29  ;;  %v13677_v42 = vld [vmem:[#allocation9 + $0xc4] ss:$8 sps:$4 sm:$0xff]  }
 0x675   : > { %9200 = vrot.lane.b32.xlu0 %v9199_v53, %s10473_s19  ;;  %v13611_v26 = vadd.f32 %v9990_v33, %v5468_v59  ;;  %6337 = vst [vmem:[#allocation3 + $0x1c8] sm:$0xf] %v8437_v30  ;;  %8132 = vmatprep.mubr.msk.bf16.mxu1 %vm1957_vm0, %v13677_v42 }
 0x676   : > { %v8439_v8 = vpack.c.bf16 %v13607_v36, %v13604_v39  ;;  %8136 = vmatprep.mubr.msk.bf16.mxu0 %vm1957_vm0, %v13677_v42 }
 0x677   : > { %14864 = vst [vmem:[#allocation33_spill] sm:$0xff] %v13611_v26  ;;  %v9189_v50 = vpack.i.bf16 %v13611_v26, %v13593_v7  ;;  %v8440_v4 = vpack.c.bf16 %v13611_v26, %v13611_v26 }
 0x678   : > { %6339 = vst [vmem:[#allocation3 + $0x1d4] sm:$0xff] %v8439_v8 }
 0x679   : > { %9210 = vrot.lane.b32.xlu0 %v13458_v55, %s10474_s23  ;;  %9190 = vrot.lane.b32.xlu1 %v9189_v50, %s10473_s19  ;;  %6340 = vst [vmem:[#allocation3 + $0x1dc] sm:$0xf] %v8440_v4  ;;  %v9269_v55 = vpack.i.bf16 %v13604_v39, %v13586_v15 }
 0x67d   : > { %9215 = vrot.lane.b32.xlu0 %v13469_v34, %s10474_s23  ;;  %9195 = vrot.lane.b32.xlu1 %v13385_v1, %s10473_s19  ;;  %v9294_v34 = vpack.i.bf16 %v13533_v11, %v13515_v49 }
 0x681   : > { %9225 = vrot.lane.b32.xlu0 %v9184_v31, %s10474_s23  ;;  %9205 = vrot.lane.b32.xlu1 %v9204_v35, %s10473_s19  ;;  %v7233_v31 = vld [vmem:[%s14865_s17] sm:$0xff] }
 0x685   : > { %9240 = vrot.lane.b32.xlu0 %v13403_v23, %s10474_s23  ;;  %9220 = vrot.lane.b32.xlu1 %v13427_v6, %s10474_s23  ;;  %v9279_v23 = vpack.i.bf16 %v13568_v40, %v13550_v21  ;;  %v9299_v6 = vpack.i.bf16 %v13505_v38, %v13481_v28 }
 0x689   : > { %9250 = vrot.lane.b32.xlu0 %v13415_v10, %s10474_s23  ;;  %9230 = vrot.lane.b32.xlu1 %v9189_v50, %s10474_s23  ;;  %v9289_v10 = vpack.i.bf16 %v13530_v18, %v13511_v24 }
 0x68d   : > { %9260 = vrot.lane.b32.xlu0 %v9199_v53, %s10474_s23  ;;  %9235 = vrot.lane.b32.xlu1 %v13439_v44, %s10474_s23  ;;  %v9274_v44 = vpack.i.bf16 %v13607_v36, %v13589_v62 }
 0x691   : > { %9245 = vrot.lane.b32.xlu1 %v13544_v51, %s10474_s23  ;;  %9270 = vrot.lane.b32.xlu0 %v9269_v55, %s10473_s19  ;;  %v9304_v51 = vpack.i.bf16 %v13498_v14, %v13484_v0 }
 0x695   : > { %9255 = vrot.lane.b32.xlu1 %v13385_v1, %s10474_s23  ;;  %9280 = vrot.lane.b32.xlu0 %v9279_v23, %s10473_s19  ;;  %v9284_v1 = vpack.i.bf16 %v13571_v16, %v13553_v41 }
 0x699   : > { %9265 = vrot.lane.b32.xlu1 %v9204_v35, %s10474_s23  ;;  %9290 = vrot.lane.b32.xlu0 %v9289_v10, %s10473_s19 }
 0x69d   : > { %9300 = vrot.lane.b32.xlu0 %v9299_v6, %s10473_s19  ;;  %9275 = vrot.lane.b32.xlu1 %v9274_v44, %s10473_s19 }
 0x6a1   : > { %9310 = vrot.lane.b32.xlu0 %v9269_v55, %s10474_s23  ;;  %9285 = vrot.lane.b32.xlu1 %v9284_v1, %s10473_s19 }
 0x6a5   : > { %9320 = vrot.lane.b32.xlu0 %v9279_v23, %s10474_s23  ;;  %9295 = vrot.lane.b32.xlu1 %v9294_v34, %s10473_s19 }
 0x6a9   : > { %9330 = vrot.lane.b32.xlu0 %v9289_v10, %s10474_s23  ;;  %9305 = vrot.lane.b32.xlu1 %v9304_v51, %s10473_s19  ;;  %s7346_s19 = scalar_lea.sflag [#allocation6], %s10668_s6 }
 0x6ab   : > { %v9151_v59 = vpop.permute.xlu0 %9150 }
 0x6ac   : > { %v9153_v4 = vunpack.i.h.bf16 %v9151_v59  ;;  %v9152_v35 = vunpack.i.l.bf16 %v9151_v59 }
 0x6ad   : > { %9340 = vrot.lane.b32.xlu0 %v9299_v6, %s10474_s23  ;;  %9315 = vrot.lane.b32.xlu1 %v9274_v44, %s10474_s23 }
 0x6af   : > { %v13689_v30 = vpop.permute.xlu0 %9155 }
 0x6b0   : > { %v14503_v33 = vunpack.i.h.bf16 %v13689_v30  ;;  %v14502_v8 = vunpack.i.l.bf16 %v13689_v30 }
 0x6b1   : > { %7237 = vperm.xlu0 %8547, %v7233_v31   ;;  %9325 = vrot.lane.b32.xlu1 %v9284_v1, %s10474_s23 }
 0x6b2   : > { %v5984_v44 = vsel %vm4030_vm10, %v9153_v4, %v14503_v33  ;;  %v5983_v1 = vsel %vm4030_vm10, %v9152_v35, %v14502_v8 }
 0x6b3   : > { %v9161_v53 = vpop.permute.xlu1 %9160 }
 0x6b4   : > { %v9163_v59 = vunpack.i.h.bf16 %v9161_v53  ;;  %v9162_v25 = vunpack.i.l.bf16 %v9161_v53 }
 0x6b5   : > { %9335 = vrot.lane.b32.xlu1 %v9294_v34, %s10474_s23 }
 0x6b7   : > { %v13691_v46 = vpop.permute.xlu1 %9165 }
 0x6b8   : > { %v14508_v31 = vunpack.i.l.bf16 %v13691_v46 }
 0x6b9   : > { %9345 = vrot.lane.b32.xlu1 %v9304_v51, %s10474_s23  ;;  %v14509_v51 = vunpack.i.h.bf16 %v13691_v46 }
 0x6ba   : > { %v5985_v53 = vsel %vm4030_vm10, %v9162_v25, %v14508_v31 }
 0x6bb   : > { %v9171_v56 = vpop.permute.xlu0 %9170 }
 0x6bc   : > { %v9172_v0 = vunpack.i.l.bf16 %v9171_v56 }
 0x6bd   : > { %7242 = vperm.xlu1 %8548, %v7234_v9  }
 0x6bf   : > { %v13719_v34 = vpop.permute.xlu0 %9175 }
 0x6c0   : > { %v14522_v33 = vunpack.i.h.bf16 %v13719_v34  ;;  %v14519_v43 = vunpack.i.l.bf16 %v13719_v34  ;;  %v14869_v7 = vunpack.i.h.bf16 %v13719_v34 }
 0x6db   : > { %v13695_v50 = vpop.permute.xlu1 %9180 }
 0x6dc   : > { %v14501_v55 = vunpack.i.h.bf16 %v13695_v50  ;;  %v14500_v23 = vunpack.i.l.bf16 %v13695_v50 }
 0x6de   : > { %v13703_v10 = vsel %vm4030_vm10, %v14501_v55, %v9153_v4  ;;  %v13709_v6 = vsel %vm4030_vm10, %v14500_v23, %v9152_v35  ;;  %v5986_v55 = vsel %vm4030_vm10, %v9163_v59, %v14509_v51 }
 0x6e3   : > { %v13723_v9 = vpop.permute.xlu0 %9185 }
 0x6e4   : > { %v14504_v12 = vunpack.i.h.bf16 %v13723_v9  ;;  %v14505_v23 = vunpack.i.l.bf16 %v13723_v9 }
 0x6e6   : > { %v5994_v4 = vsel %vm4030_vm10, %v14504_v12, %v9163_v59  ;;  %v5993_v35 = vsel %vm4030_vm10, %v14505_v23, %v9162_v25  ;;  %v9173_v23 = vunpack.i.h.bf16 %v9171_v56  ;;  %v5987_v56 = vsel %vm4030_vm10, %v9172_v0, %v14519_v43 }
 0x6e7   : > { %v13743_v8 = vpop.permute.xlu0 %9200 }
 0x6e8   : > { %v5988_v51 = vsel %vm4030_vm10, %v9173_v23, %v14522_v33  ;;  %v14520_v11 = vunpack.i.h.bf16 %v13743_v8  ;;  %v14521_v3 = vunpack.i.l.bf16 %v13743_v8  ;;  %v10226_v33 = vpack.c.bf16 %v5994_v4, %v5993_v35 }
 0x6eb   : > { %v9211_v12 = vpop.permute.xlu0 %9210  ;;  %v13747_v20 = vpop.permute.xlu1 %9190 }
 0x6ec   : > { %v14513_v14 = vunpack.i.h.bf16 %v13747_v20  ;;  %v14516_v59 = vunpack.i.l.bf16 %v13747_v20 }
 0x6ee   : > { %v5996_v25 = vsel %vm4030_vm10, %v14513_v14, %v9173_v23  ;;  %v5995_v31 = vsel %vm4030_vm10, %v14516_v59, %v9172_v0  ;;  %v10218_v59 = vpack.c.bf16 %v5988_v51, %v5987_v56 }
 0x6ef   : > { %v13767_v32 = vpop.permute.xlu0 %9215  ;;  %v9196_v49 = vpop.permute.xlu1 %9195  ;;  %v10221_v56 = vpack.c.bf16 %v5996_v25, %v5995_v31 }
 0x6f0   : > { %v9198_v37 = vunpack.i.h.bf16 %v9196_v49  ;;  %v9197_v14 = vunpack.i.l.bf16 %v9196_v49  ;;  %6782 = vmatprep.subr.bf16.mxu1 %v10218_v59  ;;  %v10219_v49 = vpack.c.bf16 %v5986_v55, %v5985_v53  ;;  %v14527_v31 = vunpack.i.h.bf16 %v13767_v32 }
 0x6f1   : > { %10222 = vmatpush1.bf16.msk.msra.mxu1 %vm13030_vm12, %v10221_v56  ;;  %v14526_v25 = vunpack.i.l.bf16 %v13767_v32 }
 0x6f2   : > { %v5990_v23 = vsel %vm4030_vm10, %v14520_v11, %v9198_v37  ;;  %v5989_v0 = vsel %vm4030_vm10, %v14521_v3, %v9197_v14  ;;  %6784 = vmatprep.subr.bf16.mxu1 %v10219_v49  ;;  %v10224_v3 = vpack.c.bf16 %v5984_v44, %v5983_v1 }
 0x6f3   : > { %v13771_v41 = vpop.permute.xlu0 %9225  ;;  %v13773_v58 = vpop.permute.xlu1 %9205  ;;  %v10235_v16 = vpack.c.bf16 %v5990_v23, %v5989_v0 }
 0x6f4   : > { %v14524_v43 = vunpack.i.h.bf16 %v13773_v58  ;;  %v14523_v51 = vunpack.i.l.bf16 %v13773_v58  ;;  %v14525_v1 = vunpack.i.h.bf16 %v13771_v41 }
 0x6f5   : > { %10227 = vmatpush1.bf16.msk.msra.mxu1 %vm13030_vm12, %v10226_v33  ;;  %v14528_v33 = vunpack.i.l.bf16 %v13771_v41 }
 0x6f6   : > { %v5981_v11 = vsel %vm4030_vm10, %v9197_v14, %v14523_v51  ;;  %v5982_v59 = vsel %vm4030_vm10, %v9198_v37, %v14524_v43  ;;  %6786 = vmatprep.subr.bf16.mxu1 %v10224_v3  ;;  %v9213_v37 = vunpack.i.h.bf16 %v9211_v12  ;;  %v9212_v43 = vunpack.i.l.bf16 %v9211_v12 }
 0x6f7   : > { %v9241_v55 = vpop.permute.xlu0 %9240  ;;  %v9221_v53 = vpop.permute.xlu1 %9220  ;;  %v10229_v44 = vpack.c.bf16 %v5982_v59, %v5981_v11  ;;  %v10231_v3 = vpack.c.bf16 %v13703_v10, %v13709_v6 }
 0x6f8   : > { %v9223_v14 = vunpack.i.h.bf16 %v9221_v53  ;;  %v9222_v49 = vunpack.i.l.bf16 %v9221_v53  ;;  %v5665_v12 = vsel %vm5634_vm13, %v9212_v43, %v14526_v25  ;;  %v5666_v11 = vsel %vm5634_vm13, %v9213_v37, %v14527_v31 }
 0x6f9   : > { %10232 = vmatpush1.bf16.msk.msra.mxu1 %vm13030_vm12, %v10231_v3  ;;  %v9242_v25 = vunpack.i.l.bf16 %v9241_v55  ;;  %v10238_v0 = vpack.c.bf16 %v5666_v11, %v5665_v12 }
 0x6fa   : > { %6788 = vmatprep.subr.bf16.mxu1 %v10229_v44  ;;  %v5672_v10 = vsel %vm5634_vm13, %v14525_v1, %v9223_v14  ;;  %v5671_v6 = vsel %vm5634_vm13, %v14528_v33, %v9222_v49  ;;  %v9243_v1 = vunpack.i.h.bf16 %v9241_v55 }
 0x6fb   : > { %v13800_v56 = vpop.permute.xlu0 %9250  ;;  %v13802_v51 = vpop.permute.xlu1 %9230  ;;  %v10245_v62 = vpack.c.bf16 %v5672_v10, %v5671_v6 }
 0x6fc   : > { %v14530_v4 = vunpack.i.h.bf16 %v13802_v51  ;;  %v14531_v35 = vunpack.i.l.bf16 %v13802_v51 }
 0x6fd   : > { %10236 = vmatpush1.bf16.msk.msra.mxu1 %vm13030_vm12, %v10235_v16 }
 0x6fe   : > { %v5674_v59 = vsel %vm5634_vm13, %v14530_v4, %v9213_v37  ;;  %v5673_v53 = vsel %vm5634_vm13, %v14531_v35, %v9212_v43  ;;  %v14532_v4 = vunpack.i.l.bf16 %v13800_v56  ;;  %6790 = vmatprep.subr.bf16.mxu1 %v10238_v0 }
 0x6ff   : > { %v13837_v44 = vpop.permute.xlu0 %9260  ;;  %v13839_v3 = vpop.permute.xlu1 %9235  ;;  %v10240_v11 = vpack.c.bf16 %v5674_v59, %v5673_v53 }
 0x700   : > { %v14535_v31 = vunpack.i.h.bf16 %v13839_v3  ;;  %v14534_v33 = vunpack.i.l.bf16 %v13839_v3  ;;  %v5661_v37 = vsel %vm5634_vm13, %v9242_v25, %v14532_v4  ;;  %v14868_v4 = vunpack.i.h.bf16 %v13800_v56 }
 0x701   : > { %10241 = vmatpush1.bf16.msk.msra.mxu1 %vm13874_vm15, %v10240_v11  ;;  %v14541_v13 = vunpack.i.h.bf16 %v13837_v44  ;;  %v14540_v26 = vunpack.i.l.bf16 %v13837_v44 }
 0x702   : > { %v5663_v43 = vsel %vm5634_vm13, %v9222_v49, %v14534_v33  ;;  %v5664_v55 = vsel %vm5634_vm13, %v9223_v14, %v14535_v31 }
 0x703   : > { %v13855_v35 = vpop.permute.xlu1 %9245  ;;  %v9271_v23 = vpop.permute.xlu0 %9270  ;;  %v10242_v0 = vpack.c.bf16 %v5664_v55, %v5663_v43 }
 0x704   : > { %v14533_v57 = vunpack.i.h.bf16 %v13855_v35  ;;  %v14536_v16 = vunpack.i.l.bf16 %v13855_v35 }
 0x705   : > { %6792 = vmatprep.subr.bf16.mxu1 %v10242_v0 }
 0x706   : > { %v5670_v49 = vsel %vm5634_vm13, %v14533_v57, %v9243_v1  ;;  %v5669_v14 = vsel %vm5634_vm13, %v14536_v16, %v9242_v25  ;;  %v5662_v57 = vsel %vm5634_vm13, %v9243_v1, %v14868_v4  ;;  %10246 = vmatpush1.bf16.msk.msra.mxu1 %vm13874_vm15, %v10245_v62  ;;  %v9273_v62 = vunpack.i.h.bf16 %v9271_v23 }
 0x707   : > { %v9256_v33 = vpop.permute.xlu1 %9255  ;;  %v9281_v31 = vpop.permute.xlu0 %9280  ;;  %v10248_v59 = vpack.c.bf16 %v5662_v57, %v5661_v37  ;;  %v9272_v37 = vunpack.i.l.bf16 %v9271_v23  ;;  %v10250_v57 = vpack.c.bf16 %v5670_v49, %v5669_v14  ;;  %v14871_v14 = vunpack.i.h.bf16 %v13747_v20 }
 0x708   : > { %v9258_v25 = vunpack.i.h.bf16 %v9256_v33  ;;  %v9257_v16 = vunpack.i.l.bf16 %v9256_v33  ;;  %v9283_v23 = vunpack.i.h.bf16 %v9281_v31 }
 0x709   : > { %6794 = vmatprep.subr.bf16.mxu1 %v10248_v59 }
 0x70a   : > { %v5668_v53 = vsel %vm5634_vm13, %v14541_v13, %v9258_v25  ;;  %v5667_v1 = vsel %vm5634_vm13, %v14540_v26, %v9257_v16  ;;  %10251 = vmatpush1.bf16.msk.msra.mxu1 %vm13874_vm15, %v10250_v57  ;;  %v9282_v13 = vunpack.i.l.bf16 %v9281_v31 }
 0x70b   : > { %v13896_v33 = vpop.permute.xlu1 %9265  ;;  %v13898_v4 = vpop.permute.xlu0 %9290 }
 0x70c   : > { %v14545_v10 = vunpack.i.h.bf16 %v13896_v33  ;;  %v14544_v6 = vunpack.i.l.bf16 %v13896_v33  ;;  %v9293_v12 = vunpack.i.h.bf16 %v13898_v4 }
 0x70e   : > { %v5659_v43 = vsel %vm5634_vm13, %v9257_v16, %v14544_v6  ;;  %v5660_v55 = vsel %vm5634_vm13, %v9258_v25, %v14545_v10  ;;  %v5980_v16 = vsel %vm4030_vm10, %v14869_v7, %v9273_v62  ;;  %v14870_v6 = vunpack.i.l.bf16 %v13719_v34 }
 0x70f   : > { %v13912_v11 = vpop.permute.xlu0 %9300  ;;  %v9276_v0 = vpop.permute.xlu1 %9275  ;;  %v10253_v54 = vpack.c.bf16 %v5660_v55, %v5659_v43  ;;  %v14872_v43 = vunpack.i.l.bf16 %v13747_v20  ;;  %v10255_v10 = vpack.c.bf16 %v5668_v53, %v5667_v1  ;;  %v9292_v53 = vunpack.i.l.bf16 %v13898_v4 }
 0x710   : > { %v9278_v59 = vunpack.i.h.bf16 %v9276_v0  ;;  %v9277_v26 = vunpack.i.l.bf16 %v9276_v0  ;;  %v5979_v49 = vsel %vm4030_vm10, %v14870_v6, %v9272_v37 }
 0x711   : > { %6796 = vmatprep.subr.bf16.mxu1 %v10253_v54  ;;  %v10257_v1 = vpack.c.bf16 %v5980_v16, %v5979_v49  ;;  %v9462_v49 = vld [vmem:[#allocation3 + $0x194] ss:$20 sps:$4 sm:$0xff]  }
 0x712   : > { %v5964_v25 = vsel %vm4030_vm10, %v9278_v59, %v14871_v14  ;;  %v5972_v57 = vsel %vm4030_vm10, %v9273_v62, %v9278_v59  ;;  %v5963_v55 = vsel %vm4030_vm10, %v9277_v26, %v14872_v43  ;;  %v5971_v7 = vsel %vm4030_vm10, %v9272_v37, %v9277_v26  ;;  %10256 = vmatpush1.bf16.msk.msra.mxu1 %vm13874_vm15, %v10255_v10 }
 0x713   : > { %v8416_v31 = vpack.c.bf16 %v5964_v25, %v5964_v25  ;;  %v9286_v34 = vpop.permute.xlu1 %9285  ;;  %v8413_v6 = vpack.c.bf16 %v5963_v55, %v5963_v55  ;;  %v13934_v0 = vpop.permute.xlu0 %9310  ;;  %v14873_v62 = vunpack.i.h.bf16 %v13691_v46  ;;  %v14874_v59 = vunpack.i.l.bf16 %v13691_v46 }
 0x714   : > { %v9288_v26 = vunpack.i.h.bf16 %v9286_v34  ;;  %v9287_v54 = vunpack.i.l.bf16 %v9286_v34  ;;  %v14875_v37 = vpack.c.bf16 %v13461_v52, %v13446_v45  ;;  %v10258_v10 = vpack.c.bf16 %v5972_v57, %v5971_v7 }
 0x715   : > { %v5978_v20 = vsel %vm4030_vm10, %v14873_v62, %v9283_v23  ;;  %v5977_v14 = vsel %vm4030_vm10, %v14874_v59, %v9282_v13  ;;  %6188 = vst [vmem:[#allocation3 + $0x13c] sm:$0xf] %v8416_v31  ;;  %6185 = vst [vmem:[#allocation3 + $0x128] sm:$0xf] %v8413_v6  ;;  %v14876_v25 = vunpack.i.h.bf16 %v13723_v9  ;;  %v14877_v43 = vunpack.i.l.bf16 %v13723_v9 }
 0x716   : > { %6806 = vmatprep.subr.bf16.mxu1 %v14875_v37  ;;  %v5970_v31 = vsel %vm4030_vm10, %v9283_v23, %v9288_v26  ;;  %v5969_v34 = vsel %vm4030_vm10, %v9282_v13, %v9287_v54  ;;  %6847 = vmatprep.subr.bf16.mxu0 %v10258_v10  ;;  %v14878_v62 = vpack.c.bf16 %v13452_v63, %v13443_v47  ;;  %v9303_v9 = vunpack.i.h.bf16 %v13912_v11 }
 0x717   : > { %v5962_v46 = vsel %vm4030_vm10, %v9288_v26, %v14876_v25  ;;  %v5961_v55 = vsel %vm4030_vm10, %v9287_v54, %v14877_v43  ;;  %v9296_v4 = vpop.permute.xlu1 %9295  ;;  %6848 = vmatpush1.bf16.msra.mxu0 %v10257_v1  ;;  %v9302_v23 = vunpack.i.l.bf16 %v13912_v11  ;;  %v13968_v59 = vpop.permute.xlu0 %9320  ;;  %v10259_v13 = vpack.c.bf16 %v5978_v20, %v5977_v14  ;;  %v9460_v14 = vld [vmem:[#allocation3 + $0x190] ss:$20 sps:$4 sm:$0xff]   ;;  %v9465_v43 = vld [vmem:[#allocation3 + $0x16c] ss:$20 sps:$4 sm:$0xff]  }
 0x718   : > { %v8410_v6 = vpack.c.bf16 %v5962_v46, %v5962_v46  ;;  %v8407_v16 = vpack.c.bf16 %v5961_v55, %v5961_v55  ;;  %v9298_v57 = vunpack.i.h.bf16 %v9296_v4  ;;  %v9297_v7 = vunpack.i.l.bf16 %v9296_v4  ;;  %6807 = vmatpush2.bf16.msra.mxu1 %v14878_v62 }
 0x719   : > { %6808 = vmatprep.subr.bf16.mxu1 %v9462_v49  ;;  %v10260_v26 = vpack.c.bf16 %v5970_v31, %v5969_v34  ;;  %v14879_v54 = vunpack.i.h.bf16 %v13689_v30  ;;  %v14880_v47 = vunpack.i.l.bf16 %v13689_v30  ;;  %v14881_v1 = vunpack.i.h.bf16 %v13695_v50 }
 0x71a   : > { %6182 = vst [vmem:[#allocation3 + $0x114] sm:$0xf] %v8410_v6  ;;  %6179 = vst [vmem:[#allocation3 + $0x100] sm:$0xf] %v8407_v16  ;;  %v5968_v10 = vsel %vm4030_vm10, %v9293_v12, %v9298_v57  ;;  %v14882_v46 = vunpack.i.l.bf16 %v13695_v50  ;;  %v5967_v30 = vsel %vm4030_vm10, %v9292_v53, %v9297_v7  ;;  %v14883_v34 = vunpack.i.h.bf16 %v13773_v58 }
 0x71b   : > { %v5976_v37 = vsel %vm4030_vm10, %v14879_v54, %v9293_v12  ;;  %v5975_v63 = vsel %vm4030_vm10, %v14880_v47, %v9292_v53  ;;  %v5960_v11 = vsel %vm4030_vm10, %v9298_v57, %v14881_v1  ;;  %v9306_v20 = vpop.permute.xlu1 %9305  ;;  %6849 = vmatprep.subr.bf16.mxu0 %v10260_v26  ;;  %v14884_v4 = vunpack.i.l.bf16 %v13773_v58 }
 0x71c   : > { %v8404_v25 = vpack.c.bf16 %v5960_v11, %v5960_v11  ;;  %v5959_v31 = vsel %vm4030_vm10, %v9297_v7, %v14882_v46  ;;  %6809 = vmatpush2.bf16.msra.mxu1 %v9460_v14  ;;  %6850 = vmatpush1.bf16.msra.mxu0 %v10259_v13  ;;  %v5974_v12 = vsel %vm4030_vm10, %v14883_v34, %v9303_v9  ;;  %v9308_v6 = vunpack.i.h.bf16 %v9306_v20  ;;  %v14000_v13 = vpop.permute.xlu0 %9330 }
 0x71d   : > { %v8401_v55 = vpack.c.bf16 %v5959_v31, %v5959_v31  ;;  %v5973_v50 = vsel %vm4030_vm10, %v14884_v4, %v9302_v23  ;;  %v9307_v16 = vunpack.i.l.bf16 %v9306_v20  ;;  %6810 = vmatprep.subr.bf16.mxu1 %v9465_v43  ;;  %v9313_v53 = vunpack.i.h.bf16 %v13934_v0 }
 0x71e   : > { %6176 = vst [vmem:[#allocation3 + $0xec] sm:$0xf] %v8404_v25  ;;  %v9312_v49 = vunpack.i.l.bf16 %v13934_v0  ;;  %v10261_v7 = vpack.c.bf16 %v5976_v37, %v5975_v63  ;;  %v10262_v62 = vpack.c.bf16 %v5968_v10, %v5967_v30  ;;  %v14885_v26 = vunpack.i.h.bf16 %v13743_v8  ;;  %v9463_v37 = vld [vmem:[#allocation3 + $0x168] ss:$20 sps:$4 sm:$0xff]  }
 0x71f   : > { %6173 = vst [vmem:[#allocation3 + $0xd8] sm:$0xf] %v8401_v55  ;;  %v9316_v57 = vpop.permute.xlu1 %9315  ;;  %v5966_v54 = vsel %vm4030_vm10, %v9303_v9, %v9308_v6  ;;  %v14886_v47 = vunpack.i.l.bf16 %v13743_v8  ;;  %v5965_v0 = vsel %vm4030_vm10, %v9302_v23, %v9307_v16  ;;  %v9323_v10 = vunpack.i.h.bf16 %v13968_v59 }
 0x720   : > { %v5958_v58 = vsel %vm4030_vm10, %v9308_v6, %v14885_v26  ;;  %6851 = vmatprep.subr.bf16.mxu0 %v10262_v62  ;;  %v9322_v20 = vunpack.i.l.bf16 %v13968_v59  ;;  %v9318_v14 = vunpack.i.h.bf16 %v9316_v57  ;;  %v9317_v25 = vunpack.i.l.bf16 %v9316_v57  ;;  %6811 = vmatpush2.bf16.msra.mxu1 %v9463_v37 }
 0x721   : > { %v5957_v1 = vsel %vm4030_vm10, %v9307_v16, %v14886_v47  ;;  %v8398_v63 = vpack.c.bf16 %v5958_v58, %v5958_v58  ;;  %6852 = vmatpush1.bf16.msra.mxu0 %v10261_v7  ;;  %v9333_v8 = vunpack.i.h.bf16 %v14000_v13  ;;  %v9332_v9 = vunpack.i.l.bf16 %v14000_v13  ;;  %v14041_v7 = vld [vmem:[#allocation9 + $0xc0] ss:$8 sps:$4 sm:$0xff]  }
 0x722   : > { %v8395_v11 = vpack.c.bf16 %v5957_v1, %v5957_v1  ;;  %v14887_v23 = vpack.c.bf16 %v13388_v60, %v13376_v29  ;;  %v10263_v31 = vpack.c.bf16 %v5974_v12, %v5973_v50  ;;  %v10264_v30 = vpack.c.bf16 %v5966_v54, %v5965_v0 }
 0x723   : > { %6170 = vst [vmem:[#allocation3 + $0xc4] sm:$0xf] %v8398_v63  ;;  %v9326_v46 = vpop.permute.xlu1 %9325  ;;  %v14888_v43 = vunpack.i.h.bf16 %v13767_v32  ;;  %v14889_v55 = vunpack.i.l.bf16 %v13767_v32  ;;  %v14890_v4 = vunpack.i.h.bf16 %v13802_v51  ;;  %v5650_v16 = vsel %vm5634_vm13, %v9313_v53, %v9318_v14 }
 0x724   : > { %6167 = vst [vmem:[#allocation3 + $0xb0] sm:$0xf] %v8395_v11  ;;  %6812 = vmatprep.subr.bf16.mxu1 %v14887_v23  ;;  %v14891_v50 = vunpack.i.l.bf16 %v13802_v51  ;;  %v5649_v32 = vsel %vm5634_vm13, %v9312_v49, %v9317_v25  ;;  %6853 = vmatprep.subr.bf16.mxu0 %v10264_v30  ;;  %v9328_v13 = vunpack.i.h.bf16 %v9326_v46  ;;  %v9327_v26 = vunpack.i.l.bf16 %v9326_v46  ;;  %v9469_v23 = vld [vmem:[#allocation3 + $0x128] ss:$20 sps:$4 sm:$0xff]  }
 0x725   : > { %v5658_v59 = vsel %vm5634_vm13, %v14888_v43, %v9313_v53  ;;  %v5657_v34 = vsel %vm5634_vm13, %v14889_v55, %v9312_v49  ;;  %v5642_v6 = vsel %vm5634_vm13, %v9318_v14, %v14890_v4  ;;  %v14892_v58 = vpack.c.bf16 %v13380_v22, %v13373_v48  ;;  %6854 = vmatpush1.bf16.msra.mxu0 %v10263_v31  ;;  %v14046_v53 = vld [vmem:[#allocation9 + $0xd4] ss:$8 sps:$4 sm:$0xff]  }
 0x726   : > { %v8392_v12 = vpack.c.bf16 %v5642_v6, %v5642_v6  ;;  %v5641_v57 = vsel %vm5634_vm13, %v9317_v25, %v14891_v50  ;;  %v14893_v51 = vunpack.i.h.bf16 %v13839_v3  ;;  %v14894_v49 = vunpack.i.l.bf16 %v13839_v3  ;;  %v9341_v3 = vpop.permute.xlu0 %9340 }
 0x727   : > { %v8389_v62 = vpack.c.bf16 %v5641_v57, %v5641_v57  ;;  %6813 = vmatpush2.bf16.msra.mxu1 %v14892_v58  ;;  %v14895_v1 = vunpack.i.h.bf16 %v13800_v56  ;;  %v14896_v48 = vunpack.i.l.bf16 %v13800_v56  ;;  %v9336_v37 = vpop.permute.xlu1 %9335  ;;  %v14897_v63 = vunpack.i.h.bf16 %v13771_v41 }
 0x728   : > { %v5656_v54 = vsel %vm5634_vm13, %v14893_v51, %v9323_v10  ;;  %v5655_v47 = vsel %vm5634_vm13, %v14894_v49, %v9322_v20  ;;  %5876 = vst [vmem:[#allocation3 + $0x9c] sm:$0xf] %v8392_v12  ;;  %6920 = vmatprep.subr.bf16.mxu1 %v14618_v17  ;;  %v5648_v14 = vsel %vm5634_vm13, %v9323_v10, %v9328_v13  ;;  %v14898_v56 = vunpack.i.l.bf16 %v13771_v41  ;;  %v14097_v49 = vld [vmem:[#allocation9 + $0xd0] ss:$8 sps:$4 sm:$0xff]  }
 0x729   : > { %v14060_v0 = vsel %vm5634_vm13, %v14895_v1, %v9333_v8  ;;  %v14066_v22 = vsel %vm5634_vm13, %v14896_v48, %v9332_v9  ;;  %5873 = vst [vmem:[#allocation3 + $0x88] sm:$0xf] %v8389_v62  ;;  %v5640_v11 = vsel %vm5634_vm13, %v9328_v13, %v14897_v63  ;;  %v5647_v46 = vsel %vm5634_vm13, %v9322_v20, %v9327_v26  ;;  %v9470_v13 = vld [vmem:[#allocation3 + $0x100] ss:$20 sps:$4 sm:$0xff]  }
 0x72a   : > { %v5639_v25 = vsel %vm5634_vm13, %v9327_v26, %v14898_v56  ;;  %v8386_v31 = vpack.c.bf16 %v5640_v11, %v5640_v11  ;;  %6815 = vmatmul.mubr.bf16.vlgmr.msra.gmra.mxu1 %v14041_v7  ;;  %v9338_v43 = vunpack.i.h.bf16 %v9336_v37  ;;  %v9337_v55 = vunpack.i.l.bf16 %v9336_v37  ;;  %v14110_v37 = vld [vmem:[#allocation9 + $0xe4] ss:$8 sps:$4 sm:$0xff]  }
 0x72b   : > { %v8383_v30 = vpack.c.bf16 %v5639_v25, %v5639_v25  ;;  %v10265_v4 = vpack.c.bf16 %v5658_v59, %v5657_v34  ;;  %v10266_v6 = vpack.c.bf16 %v5650_v16, %v5649_v32  ;;  %6921 = vmatpush1.bf16.msra.mxu1 %v9469_v23  ;;  %8133 = vmatprep.mubr.msk.bf16.mxu1 %vm1957_vm0, %v14046_v53  ;;  %v9343_v41 = vunpack.i.h.bf16 %v9341_v3  ;;  %v9346_v12 = vpop.permute.xlu1 %9345  ;;  %v9474_v25 = vld [vmem:[#allocation3 + $0xd8] ss:$20 sps:$4 sm:$0xff]   ;;  %v9475_v2 = vld [vmem:[#allocation3 + $0xb0] ss:$20 sps:$4 sm:$0xff]   ;;  %v9481_v23 = vld [vmem:[#allocation9 + $0xe0] ss:$8 sps:$4 sm:$0xff]  }
 0x72c   : > { %v9342_v10 = vunpack.i.l.bf16 %v9341_v3  ;;  %5870 = vst [vmem:[#allocation3 + $0x74] sm:$0xf] %v8386_v31  ;;  %v10267_v50 = vpack.c.bf16 %v5656_v54, %v5655_v47  ;;  %v10268_v20 = vpack.c.bf16 %v5648_v14, %v5647_v46  ;;  %6922 = vmatprep.subr.bf16.mxu1 %v14618_v17  ;;  %v14899_v57 = vunpack.i.h.bf16 %v13855_v35  ;;  %v9490_v31 = vld [vmem:[#allocation9 + $0xf4] ss:$8 sps:$4 sm:$0xff]  }
 0x72d   : > { %5867 = vst [vmem:[#allocation3 + $0x60] sm:$0xf] %v8383_v30  ;;  %v5646_v59 = vsel %vm5634_vm13, %v9333_v8, %v9338_v43  ;;  %v14900_v34 = vunpack.i.l.bf16 %v13855_v35  ;;  %v5645_v32 = vsel %vm5634_vm13, %v9332_v9, %v9337_v55  ;;  %6855 = vmatprep.subr.bf16.mxu0 %v10266_v6  ;;  %v9348_v51 = vunpack.i.h.bf16 %v9346_v12  ;;  %v9478_v30 = vld [vmem:[#allocation3 + $0x1c4] ss:$20 sps:$4 sm:$0xff]  }
 0x72e   : > { %v5638_v62 = vsel %vm5634_vm13, %v9338_v43, %v14899_v57  ;;  %6856 = vmatpush1.bf16.msra.mxu0 %v10265_v4  ;;  %v9347_v54 = vunpack.i.l.bf16 %v9346_v12  ;;  %v14901_v8 = vunpack.i.h.bf16 %v13896_v33  ;;  %v14902_v47 = vunpack.i.l.bf16 %v13896_v33  ;;  %v9485_v4 = vld [vmem:[#allocation3 + $0x19c] ss:$20 sps:$4 sm:$0xff]   ;;  %v9489_v12 = vld [vmem:[#allocation3 + $0x174] ss:$20 sps:$4 sm:$0xff]   ;;  %v9496_v57 = vld [vmem:[#allocation3 + $0x14c] ss:$20 sps:$4 sm:$0xff]  }
 0x72f   : > { %v5637_v16 = vsel %vm5634_vm13, %v9337_v55, %v14900_v34  ;;  %v8380_v26 = vpack.c.bf16 %v5638_v62, %v5638_v62  ;;  %6857 = vmatprep.subr.bf16.mxu0 %v10268_v20  ;;  %6923 = vmatpush1.bf16.msra.mxu1 %v9470_v13  ;;  %v10269_v1 = vpack.c.bf16 %v14060_v0, %v14066_v22  ;;  %v14903_v3 = vunpack.i.h.bf16 %v13837_v44  ;;  %v9476_v55 = vld [vmem:[#allocation3 + $0x1c0] ss:$20 sps:$4 sm:$0xff]   ;;  %v9487_v20 = vld [vmem:[#allocation3 + $0x170] ss:$20 sps:$4 sm:$0xff]   ;;  %v9498_v34 = vld [vmem:[#allocation3 + $0x1c8] ss:$20 sps:$4 sm:$0xff]  }
 0x730   : > { %v8377_v58 = vpack.c.bf16 %v5637_v16, %v5637_v16  ;;  %v5652_v35 = vsel %vm5634_vm13, %v14901_v8, %v9343_v41  ;;  %v5651_v9 = vsel %vm5634_vm13, %v14902_v47, %v9342_v10  ;;  %v10270_v48 = vpack.c.bf16 %v5646_v59, %v5645_v32  ;;  %6924 = vmatprep.subr.bf16.mxu1 %v14618_v17  ;;  %v9482_v43 = vld [vmem:[#allocation3 + $0x88] ss:$20 sps:$4 sm:$0xff]   ;;  %v9499_v16 = vld [vmem:[#allocation3 + $0x1a0] ss:$20 sps:$4 sm:$0xff]   ;;  %v9501_v32 = vld [vmem:[#allocation3 + $0x150] ss:$20 sps:$4 sm:$0xff]  }
 0x731   : > { %5864 = vst [vmem:[#allocation3 + $0x4c] sm:$0xf] %v8380_v26  ;;  %v5636_v63 = vsel %vm5634_vm13, %v9348_v51, %v14903_v3  ;;  %v5644_v33 = vsel %vm5634_vm13, %v9343_v41, %v9348_v51  ;;  %v14904_v11 = vunpack.i.l.bf16 %v13837_v44  ;;  %v5643_v0 = vsel %vm5634_vm13, %v9342_v10, %v9347_v54  ;;  %v9492_v41 = vld [vmem:[#allocation9 + $0xf0] ss:$8 sps:$4 sm:$0xff]   ;;  %v9494_v59 = vld [vmem:[#allocation3 + $0x148] ss:$20 sps:$4 sm:$0xff]  }
 0x732   : > { %5861 = vst [vmem:[#allocation3 + $0x38] sm:$0xf] %v8377_v58  ;;  %v8374_v22 = vpack.c.bf16 %v5636_v63, %v5636_v63  ;;  %6858 = vmatpush1.bf16.msra.mxu0 %v10267_v50  ;;  %6823 = vmatmul.mubr.bf16.gmra.mxu1 %v14097_v49  ;;  %v10271_v46 = vpack.c.bf16 %v5644_v33, %v5643_v0  ;;  %v9483_v10 = vld [vmem:[#allocation3 + $0x198] ss:$20 sps:$4 sm:$0xff]   ;;  %v9991_v3 = vld [vmem:[%s10680_s26] sm:$0xff] }
 0x733   : > { %v5635_v14 = vsel %vm5634_vm13, %v9347_v54, %v14904_v11  ;;  %6859 = vmatprep.subr.bf16.mxu0 %v10270_v48  ;;  %6925 = vmatpush1.bf16.msra.mxu1 %v9474_v25  ;;  %v10272_v44 = vpack.c.bf16 %v5652_v35, %v5651_v9  ;;  %v9992_v33 = vld [vmem:[%s10680_s26 + $0x20] sm:$0xff] }
 0x734   : > { %v8371_v56 = vpack.c.bf16 %v5635_v14, %v5635_v14  ;;  %5858 = vst [vmem:[#allocation3 + $0x24] sm:$0xf] %v8374_v22  ;;  %8134 = vmatprep.mubr.msk.bf16.mxu1 %vm1957_vm0, %v14110_v37  ;;  %6926 = vmatprep.subr.bf16.mxu1 %v14618_v17  ;;  %v9486_v6 = vld [vmem:[#allocation3 + $0x60] ss:$20 sps:$4 sm:$0xff]  }
 0x736   : > { %5855 = vst [vmem:[#allocation3 + $0x10] sm:$0xf] %v8371_v56  ;;  %6860 = vmatpush1.bf16.msra.mxu0 %v10269_v1 }
 0x737   : > { %6861 = vmatprep.subr.bf16.mxu0 %v10271_v46  ;;  %6927 = vmatpush1.bf16.msra.mxu1 %v9475_v2 }
 0x738   : > { %6928 = vmatprep.subr.bf16.mxu1 %v14618_v17 }
 0x739   : > { %v9493_v50 = vld [vmem:[#allocation3 + $0x38] ss:$20 sps:$4 sm:$0xff]  }
 0x73a   : > { %6862 = vmatpush1.bf16.msra.mxu0 %v10272_v44  ;;  %6831 = vmatmul.mubr.bf16.gmra.mxu1 %v9481_v23 }
 0x73b   : > { %6871 = vmatprep.subr.bf16.mxu0 %v9478_v30  ;;  %6929 = vmatpush1.bf16.msra.mxu1 %v9482_v43 }
 0x73c   : > { %8135 = vmatprep.mubr.msk.bf16.mxu1 %vm1957_vm0, %v9490_v31  ;;  %6930 = vmatprep.subr.bf16.mxu1 %v14618_v17 }
 0x73d   : > { %v9497_v62 = vld [vmem:[#allocation3 + $0x10] ss:$20 sps:$4 sm:$0xff]  }
 0x73e   : > { %6872 = vmatpush2.bf16.msra.mxu0 %v9476_v55 }
 0x73f   : > { %6873 = vmatprep.subr.bf16.mxu0 %v9485_v4  ;;  %6931 = vmatpush1.bf16.msra.mxu1 %v9486_v6 }
 0x740   : > { %6932 = vmatprep.subr.bf16.mxu1 %v14618_v17 }
 0x742   : > { %6874 = vmatpush2.bf16.msra.mxu0 %v9483_v10  ;;  %6839 = vmatmul.mubr.bf16.gmra.mxu1 %v9492_v41 }
 0x743   : > { %6875 = vmatprep.subr.bf16.mxu0 %v9489_v12  ;;  %6933 = vmatpush1.bf16.msra.mxu1 %v9493_v50 }
 0x744   : > { %8140 = vmatprep.mubr.msk.bf16.mxu1 %vm1957_vm0, %v13677_v42  ;;  %6934 = vmatprep.subr.bf16.mxu1 %v14618_v17  ;;  %v9500_v42 = vld [vmem:[#allocation3 + $0x178] ss:$20 sps:$4 sm:$0xff]  }
 0x746   : > { %6876 = vmatpush2.bf16.msra.mxu0 %v9487_v20 }
 0x747   : > { %6877 = vmatprep.subr.bf16.mxu0 %v9496_v57  ;;  %6935 = vmatpush1.bf16.msra.mxu1 %v9497_v62 }
 0x748   : > { %6944 = vmatprep.subr.bf16.mxu1 %v14618_v17 }
 0x74a   : > { %6878 = vmatpush2.bf16.msra.mxu0 %v9494_v59 }
 0x74b   : > { %6945 = vmatpush2.bf16.msra.mxu1 %v9498_v34 }
 0x74c   : > { %6946 = vmatprep.subr.bf16.mxu1 %v14618_v17 }
 0x74d   : > { %6880 = vmatmul.mubr.bf16.vlgmr.msra.gmra.mxu0 %v14041_v7 }
 0x74e   : > { %8137 = vmatprep.mubr.msk.bf16.mxu0 %vm1957_vm0, %v14046_v53 }
 0x74f   : > { %6947 = vmatpush2.bf16.msra.mxu1 %v9499_v16 }
 0x750   : > { %6948 = vmatprep.subr.bf16.mxu1 %v14618_v17 }
 0x753   : > { %6949 = vmatpush2.bf16.msra.mxu1 %v9500_v42 }
 0x754   : > { %6950 = vmatprep.subr.bf16.mxu1 %v14618_v17 }
 0x755   : > { %6890 = vmatmul.mubr.bf16.gmra.mxu0 %v14097_v49 }
 0x756   : > { %8138 = vmatprep.mubr.msk.bf16.mxu0 %vm1957_vm0, %v14110_v37 }
 0x757   : > { %6951 = vmatpush2.bf16.msra.mxu1 %v9501_v32 }
 0x75a   : > { %6953 = vmatmul.mubr.bf16.vlgmr.msra.gmra.mxu1 %v14041_v7 }
 0x75b   : > { %8141 = vmatprep.mubr.msk.bf16.mxu1 %vm1957_vm0, %v14046_v53 }
 0x75d   : > { %6900 = vmatmul.mubr.bf16.gmra.mxu0 %v9481_v23 }
 0x75e   : > { %8139 = vmatprep.mubr.msk.bf16.mxu0 %vm1957_vm0, %v9490_v31 }
 0x762   : > { %6961 = vmatmul.mubr.bf16.gmra.mxu1 %v14097_v49 }
 0x763   : > { %8142 = vmatprep.mubr.msk.bf16.mxu1 %vm1957_vm0, %v14110_v37 }
 0x765   : > { %6910 = vmatmul.mubr.bf16.gmra.mxu0 %v9492_v41 }
 0x766   : > { %7171 = vmatprep.mubr.bf16.mxu0 %v14618_v17 }
 0x76a   : > { %6969 = vmatmul.mubr.bf16.gmra.mxu1 %v9481_v23 }
 0x76b   : > { %8143 = vmatprep.mubr.msk.bf16.mxu1 %vm1957_vm0, %v9490_v31 }
 0x772   : > { %6977 = vmatmul.mubr.bf16.gmra.mxu1 %v9492_v41 }
 0x773   : > { %7214 = vmatprep.mubr.bf16.mxu1 %v14618_v17 }
 0x7ea   : > { %v6816_v7 = vpop.f32.mrf.mxu1 }
 0x7ec   : > { %v6817_v13 = vpop.f32.mrf.mxu1 }
 0x7ed   : > { %9823 = vtanh.f32 %v6817_v13 }
 0x7ee   : > { %v6819_v53 = vpop.f32.mrf.mxu1 }
 0x7f0   : > { %v6820_v26 = vpop.f32.mrf.mxu1 }
 0x7f1   : > { %9825 = vtanh.f32 %v6820_v26 }
 0x7f2   : > { %v6824_v58 = vpop.f32.mrf.mxu1 }
 0x7f4   : > { %v6825_v51 = vpop.f32.mrf.mxu1 }
 0x7f5   : > { %9827 = vtanh.f32 %v6825_v51 }
 0x7f6   : > { %v6827_v54 = vpop.f32.mrf.mxu1 }
 0x7f8   : > { %v6828_v49 = vpop.f32.mrf.mxu1 }
 0x7fa   : > { %v9824_v8 = vpop.eup %9823  ;;  %v6832_v35 = vpop.f32.mrf.mxu1 }
 0x7fb   : > { %v7017_v9 = vadd.f32 %v9824_v8, %v13376_v29 }
 0x7fc   : > { %v6833_v47 = vpop.f32.mrf.mxu1 }
 0x7fd   : > { %v14158_v63 = vadd.f32 %v9991_v3, %v7017_v9 }
 0x7fe   : > { %v9826_v1 = vpop.eup %9825  ;;  %v6835_v48 = vpop.f32.mrf.mxu1 }
 0x7ff   : > { %v7021_v17 = vadd.f32 %v9826_v1, %v13388_v60 }
 0x800   : > { %v6836_v37 = vpop.f32.mrf.mxu1 }
 0x801   : > { %v14161_v11 = vadd.f32 %v9992_v33, %v7021_v17  ;;  %9829 = vtanh.f32 %v6836_v37 }
 0x802   : > { %v6840_v14 = vpop.f32.mrf.mxu1  ;;  %v14177_v13 = vpop.eup %9827 }
 0x803   : > { %v7113_v0 = vpack.c.bf16 %v14161_v11, %v14158_v63  ;;  %v14917_v63 = vld [vmem:[#allocation35_spill] sm:$0xff] }
 0x804   : > { %v6841_v22 = vpop.f32.mrf.mxu1 }
 0x806   : > { %v6843_v56 = vpop.f32.mrf.mxu1 }
 0x808   : > { %v6844_v23 = vpop.f32.mrf.mxu1 }
 0x809   : > { %9831 = vtanh.f32 %v6844_v23 }
 0x80d   : > { %v6881_v25 = vpop.f32.mrf.mxu0 }
 0x80e   : > { %v9830_v58 = vpop.eup %9829 }
 0x80f   : > { %v14165_v46 = vpop.f32.mrf.mxu0  ;;  %v7037_v23 = vadd.f32 %v9830_v58, %v13430_v5 }
 0x811   : > { %v6885_v29 = vpop.f32.mrf.mxu0 }
 0x813   : > { %v14167_v44 = vpop.f32.mrf.mxu0 }
 0x815   : > { %v6891_v60 = vpop.f32.mrf.mxu0 }
 0x816   : > { %v9832_v51 = vpop.eup %9831 }
 0x817   : > { %v14169_v2 = vpop.f32.mrf.mxu0  ;;  %v7045_v48 = vadd.f32 %v9832_v51, %v13461_v52 }
 0x819   : > { %v6895_v31 = vpop.f32.mrf.mxu0 }
 0x81a   : > { %v14173_v43 = vpop.f32.mrf.mxu1 }
 0x81b   : > { %v14171_v30 = vpop.f32.mrf.mxu0 }
 0x81c   : > { %v6956_v4 = vpop.f32.mrf.mxu1 }
 0x81d   : > { %v6901_v55 = vpop.f32.mrf.mxu0 }
 0x81e   : > { %v14175_v41 = vpop.f32.mrf.mxu1 }
 0x81f   : > { %v6903_v6 = vpop.f32.mrf.mxu0 }
 0x820   : > { %v6959_v12 = vpop.f32.mrf.mxu1 }
 0x821   : > { %v6905_v10 = vpop.f32.mrf.mxu0 }
 0x822   : > { %v6962_v20 = vpop.f32.mrf.mxu1  ;;  %9833 = vtanh.f32 %v6905_v10  ;;  %v9996_v10 = vld [vmem:[%s10680_s26 + $0xa8] sm:$0xff] }
 0x823   : > { %v6907_v50 = vpop.f32.mrf.mxu0 }
 0x824   : > { %v6964_v62 = vpop.f32.mrf.mxu1 }
 0x825   : > { %v6911_v57 = vpop.f32.mrf.mxu0 }
 0x826   : > { %9835 = vtanh.f32 %v6911_v57  ;;  %v6965_v34 = vpop.f32.mrf.mxu1 }
 0x827   : > { %9837 = vtanh.f32 %v6841_v22  ;;  %v6913_v59 = vpop.f32.mrf.mxu0 }
 0x828   : > { %9839 = vtanh.f32 %v6901_v55  ;;  %v6967_v42 = vpop.f32.mrf.mxu1  ;;  %v9994_v55 = vld [vmem:[%s10680_s26 + $0xc8] sm:$0xff] }
 0x829   : > { %9841 = vtanh.f32 %v6895_v31  ;;  %v6915_v16 = vpop.f32.mrf.mxu0 }
 0x82a   : > { %9843 = vtanh.f32 %v6915_v16  ;;  %v6970_v32 = vpop.f32.mrf.mxu1 }
 0x82b   : > { %9845 = vtanh.f32 %v6833_v47  ;;  %v6917_v53 = vpop.f32.mrf.mxu0 }
 0x82c   : > { %9847 = vtanh.f32 %v6891_v60  ;;  %v6972_v7 = vpop.f32.mrf.mxu1  ;;  %v9993_v60 = vld [vmem:[%s10680_s26 + $0xe0] sm:$0xff] }
 0x82d   : > { %9849 = vtanh.f32 %v6828_v49 }
 0x82e   : > { %9851 = vtanh.f32 %v6885_v29  ;;  %v6973_v26 = vpop.f32.mrf.mxu1 }
 0x82f   : > { %9853 = vtanh.f32 %v6881_v25  ;;  %v9834_v8 = vpop.eup %9833 }
 0x830   : > { %9855 = vtanh.f32 %v6903_v6  ;;  %v6975_v54 = vpop.f32.mrf.mxu1  ;;  %v7038_v3 = vadd.f32 %v9834_v8, %v13568_v40  ;;  %v7109_v40 = vadd.f32 %v9993_v60, %v7045_v48  ;;  %v10004_v48 = vld [vmem:[%s10680_s26 + $0x28] sm:$0xff] }
 0x831   : > { %9857 = vtanh.f32 %v6907_v50  ;;  %v9997_v50 = vld [vmem:[%s10680_s26 + $0xc0] sm:$0xff] }
 0x832   : > { %9859 = vtanh.f32 %v6917_v53  ;;  %v6978_v47 = vpop.f32.mrf.mxu1  ;;  %v7102_v12 = vadd.f32 %v9996_v10, %v7038_v3  ;;  %v10000_v53 = vld [vmem:[%s10680_s26 + $0x68] sm:$0xff]  ;;  %v14910_v10 = vld [vmem:[#allocation26_spill] sm:$0xff] }
 0x833   : > { %v9836_v35 = vpop.eup %9835  ;;  %9861 = vtanh.f32 %v6973_v26 }
 0x834   : > { %v9838_v9 = vpop.eup %9837  ;;  %9863 = vtanh.f32 %v6978_v47  ;;  %v6980_v1 = vpop.f32.mrf.mxu1  ;;  %v7042_v37 = vadd.f32 %v9836_v35, %v13586_v15 }
 0x835   : > { %v9840_v49 = vpop.eup %9839  ;;  %9865 = vtanh.f32 %v6913_v59  ;;  %v7041_v22 = vadd.f32 %v9838_v9, %v13446_v45  ;;  %v9995_v45 = vld [vmem:[%s10680_s26 + $0xe8] sm:$0xff] }
 0x836   : > { %v9842_v17 = vpop.eup %9841  ;;  %9867 = vtanh.f32 %v6970_v32  ;;  %v6981_v14 = vpop.f32.mrf.mxu1  ;;  %v7034_v52 = vadd.f32 %v9840_v49, %v13550_v21  ;;  %v7106_v4 = vadd.f32 %v9994_v55, %v7042_v37  ;;  %v9998_v59 = vld [vmem:[%s10680_s26 + $0x88] sm:$0xff] }
 0x837   : > { %v9844_v33 = vpop.eup %9843  ;;  %9869 = vtanh.f32 %v6965_v34 }
 0x838   : > { %v9846_v56 = vpop.eup %9845  ;;  %9871 = vtanh.f32 %v6981_v14  ;;  %v7046_v25 = vadd.f32 %v9844_v33, %v13604_v39  ;;  %v6983_v15 = vpop.f32.mrf.mxu1  ;;  %v7030_v39 = vadd.f32 %v9842_v17, %v13530_v18  ;;  %v7098_v34 = vadd.f32 %v9998_v59, %v7034_v52  ;;  %v14911_v59 = vld [vmem:[#allocation41_spill] sm:$0xff] }
 0x839   : > { %v9848_v29 = vpop.eup %9847  ;;  %9873 = vtanh.f32 %v6962_v20  ;;  %v7105_v20 = vadd.f32 %v9997_v50, %v7041_v22  ;;  %v7033_v57 = vadd.f32 %v9846_v56, %v13420_v19  ;;  %v14905_v22 = vld [vmem:[#allocation31_spill] sm:$0xff]  ;;  %v14907_v15 = vld [vmem:[#allocation38_spill] sm:$0xff] }
 0x83a   : > { %v9850_v31 = vpop.eup %9849  ;;  %v7110_v6 = vadd.f32 %v9995_v45, %v7046_v25  ;;  %9875 = vtanh.f32 %v14171_v30  ;;  %v7026_v16 = vadd.f32 %v9848_v29, %v13511_v24  ;;  %v9999_v30 = vld [vmem:[%s10680_s26 + $0xa0] sm:$0xff]  ;;  %v7094_v26 = vadd.f32 %v10000_v53, %v7030_v39  ;;  %v14906_v56 = vld [vmem:[#allocation39_spill] sm:$0xff]  ;;  %v10007_v45 = vld [vmem:[%s10680_s26 + $0xf0] sm:$0xff] }
 0x83b   : > { %v9852_v21 = vpop.eup %9851  ;;  %9877 = vtanh.f32 %v14175_v41  ;;  %v7125_v18 = vpack.c.bf16 %v7109_v40, %v7105_v20  ;;  %v7101_v32 = vadd.f32 %v9999_v30, %v7037_v23  ;;  %v7029_v7 = vadd.f32 %v9850_v31, %v13406_v61  ;;  %v14908_v31 = vld [vmem:[#allocation33_spill] sm:$0xff]  ;;  %v10009_v20 = vld [vmem:[%s10680_s26 + $0xf8] sm:$0xff] }
 0x83c   : > { %v9854_v62 = vpop.eup %9853  ;;  %v7126_v5 = vpack.c.bf16 %v7110_v6, %v7106_v4  ;;  %9879 = vtanh.f32 %v14169_v2  ;;  %v7122_v41 = vpack.c.bf16 %v7102_v12, %v7098_v34  ;;  %v7022_v24 = vadd.f32 %v9852_v21, %v13505_v38  ;;  %v10001_v2 = vld [vmem:[%s10680_s26 + $0x80] sm:$0xff]  ;;  %v10008_v21 = vld [vmem:[%s10680_s26 + $0xd8] sm:$0xff] }
 0x83d   : > { %v14197_v42 = vpop.eup %9855  ;;  %9881 = vtanh.f32 %v14173_v43  ;;  %v7097_v51 = vadd.f32 %v10001_v2, %v7033_v57  ;;  %v7025_v61 = vadd.f32 %v14177_v13, %v13394_v27  ;;  %v10002_v43 = vld [vmem:[%s10680_s26 + $0x48] sm:$0xff]  ;;  %v7018_v35 = vadd.f32 %v9854_v62, %v13481_v28  ;;  %v10005_v27 = vld [vmem:[%s10680_s26 + $0x40] sm:$0xff]  ;;  %v10010_v62 = vld [vmem:[%s10680_s26 + $0xb8] sm:$0xff] }
 0x83e   : > { %v9858_v19 = vpop.eup %9857  ;;  %7147 = vmatprep.subr.bf16.mxu0 %v7126_v5  ;;  %9883 = vtanh.f32 %v14167_v44  ;;  %v7090_v8 = vadd.f32 %v10002_v43, %v7026_v16  ;;  %v10003_v44 = vld [vmem:[%s10680_s26 + $0x60] sm:$0xff]  ;;  %v7086_v17 = vadd.f32 %v10004_v48, %v7022_v24  ;;  %v10006_v28 = vld [vmem:[%s10680_s26 + $0x8] sm:$0xff]  ;;  %v14915_v43 = vld [vmem:[#allocation42_spill] sm:$0xff] }
 0x83f   : > { %v9860_v58 = vpop.eup %9859  ;;  %7148 = vmatpush1.bf16.msra.mxu0 %v7125_v18  ;;  %9885 = vtanh.f32 %v14165_v46  ;;  %v7121_v38 = vpack.c.bf16 %v7101_v32, %v7097_v51  ;;  %v7093_v9 = vadd.f32 %v10003_v44, %v7029_v7  ;;  %v7089_v13 = vadd.f32 %v10005_v27, %v7025_v61  ;;  %v10011_v18 = vld [vmem:[%s10680_s26 + $0xd0] sm:$0xff]  ;;  %v14912_v32 = vld [vmem:[#allocation40_spill] sm:$0xff] }
 0x840   : > { %v9862_v54 = vpop.eup %9861  ;;  %7149 = vmatprep.subr.bf16.mxu0 %v7122_v41  ;;  %v7118_v1 = vpack.c.bf16 %v7094_v26, %v7090_v8  ;;  %v7047_v3 = vadd.f32 %v9860_v58, %v13607_v36  ;;  %v7082_v14 = vadd.f32 %v10006_v28, %v7018_v35  ;;  %v14909_v36 = vld [vmem:[#allocation25_spill] sm:$0xff]  ;;  %v7039_v12 = vadd.f32 %v9858_v19, %v14910_v10  ;;  %v9502_v41 = vld [vmem:[%s14913_s15] sm:$0xff]   ;;  %v10012_v26 = vld [vmem:[%s10680_s26 + $0x98] sm:$0xff] }
 0x841   : > { %v9864_v47 = vpop.eup %9863  ;;  %v7040_v25 = vadd.f32 %v9862_v54, %v14906_v56  ;;  %v7117_v29 = vpack.c.bf16 %v7093_v9, %v7089_v13  ;;  %v7035_v7 = vadd.f32 %v14197_v42, %v14912_v32  ;;  %v14914_v58 = vld [vmem:[#allocation43_spill] sm:$0xff]  ;;  %v10013_v54 = vld [vmem:[%s10680_s26 + $0xb0] sm:$0xff]  ;;  %v14916_v9 = vld [vmem:[#allocation36_spill] sm:$0xff] }
 0x842   : > { %v9866_v49 = vpop.eup %9865  ;;  %v7044_v46 = vadd.f32 %v9864_v47, %v14905_v22  ;;  %v7114_v23 = vpack.c.bf16 %v7086_v17, %v7082_v14  ;;  %v7111_v6 = vadd.f32 %v10007_v45, %v7047_v3  ;;  %v7103_v42 = vadd.f32 %v10013_v54, %v7039_v12  ;;  %v10016_v17 = vld [vmem:[%s10680_s26 + $0x58] sm:$0xff]  ;;  %v14918_v27 = vld [vmem:[#allocation28_spill] sm:$0xff]  ;;  %v14919_v14 = vld [vmem:[#allocation30_spill] sm:$0xff] }
 0x843   : > { %v9868_v37 = vpop.eup %9867  ;;  %7150 = vmatpush1.bf16.msra.mxu0 %v7121_v38  ;;  %v7043_v60 = vadd.f32 %v9866_v49, %v14907_v15  ;;  %v7104_v5 = vadd.f32 %v10010_v62, %v7040_v25  ;;  %v10014_v38 = vld [vmem:[%s10680_s26 + $0x78] sm:$0xff]  ;;  %v14920_v15 = vld [vmem:[#allocation34_spill] sm:$0xff] }
 0x844   : > { %v9870_v33 = vpop.eup %9869  ;;  %7151 = vmatprep.subr.bf16.mxu0 %v7118_v1  ;;  %v7036_v4 = vadd.f32 %v9868_v37, %v14909_v36  ;;  %v7108_v50 = vadd.f32 %v10008_v21, %v7044_v46  ;;  %v10015_v1 = vld [vmem:[%s10680_s26 + $0x90] sm:$0xff]  ;;  %v10018_v56 = vld [vmem:[%s10680_s26 + $0x38] sm:$0xff] }
 0x845   : > { %v9872_v52 = vpop.eup %9871  ;;  %v7032_v34 = vadd.f32 %v9870_v33, %v14911_v59  ;;  %v7107_v30 = vadd.f32 %v10011_v18, %v7043_v60  ;;  %v7099_v48 = vadd.f32 %v10015_v1, %v7035_v7  ;;  %v10017_v33 = vld [vmem:[%s10680_s26 + $0x70] sm:$0xff]  ;;  %v7238_v59 = vpop.permute.xlu0 %7237 }
 0x846   : > { %v9874_v40 = vpop.eup %9873  ;;  %v7048_v55 = vadd.f32 %v9872_v52, %v14908_v31  ;;  %v7100_v24 = vadd.f32 %v10012_v26, %v7036_v4  ;;  %v10019_v52 = vld [vmem:[%s10680_s26 + $0x50] sm:$0xff] }
 0x847   : > { %7152 = vmatpush1.bf16.msra.mxu0 %v7117_v29  ;;  %v9876_v39 = vpop.eup %9875  ;;  %v7028_v2 = vadd.f32 %v9874_v40, %v14914_v58  ;;  %v7127_v61 = vpack.c.bf16 %v7111_v6, %v7107_v30  ;;  %v7096_v44 = vadd.f32 %v10014_v38, %v7032_v34  ;;  %v7123_v3 = vpack.c.bf16 %v7103_v42, %v7099_v48  ;;  %v10020_v40 = vld [vmem:[%s10680_s26 + $0x18] sm:$0xff]  ;;  %v10022_v45 = vld [vmem:[%s10680_s26 + $0x10] sm:$0xff] }
 0x848   : > { %7153 = vmatprep.subr.bf16.mxu0 %v7114_v23  ;;  %v7112_v57 = vadd.f32 %v10009_v20, %v7048_v55  ;;  %v9878_v16 = vpop.eup %9877  ;;  %v7031_v8 = vadd.f32 %v9876_v39, %v14915_v43  ;;  %v7124_v47 = vpack.c.bf16 %v7104_v5, %v7100_v24  ;;  %v10021_v55 = vld [vmem:[%s10680_s26 + $0x30] sm:$0xff]  ;;  %s7531_s26 = sshll.u32 %s10668_s6, 2 }
 0x849   : > { %v9880_v19 = vpop.eup %9879  ;;  %v7024_v49 = vadd.f32 %v9878_v16, %v14916_v9  ;;  %v7092_v37 = vadd.f32 %v10016_v17, %v7028_v2  ;;  %v7243_v16 = vpop.permute.xlu1 %7242  ;;  %s444_s21 = scalar_lea.vmem [#allocation10], %s7531_s26 }
 0x84a   : > { %v7128_v53 = vpack.c.bf16 %v7112_v57, %v7108_v50  ;;  %v9882_v51 = vpop.eup %9881  ;;  %v7027_v11 = vadd.f32 %v9880_v19, %v14917_v63  ;;  %v7095_v28 = vadd.f32 %v10017_v33, %v7031_v8  ;;  %s7362_s22 = sshll.u32 %s444_s21, 4  ;;  %s7363_s22 = int_to_ptr.vmem [resolvable:$true] %s7362_s22 }
 0x84b   : > { %7154 = vmatpush1.bf16.msra.mxu0 %v7113_v0  ;;  %v9884_v35 = vpop.eup %9883  ;;  %v7020_v13 = vadd.f32 %v9882_v51, %v14918_v27  ;;  %v7120_v46 = vpack.c.bf16 %v7096_v44, %v7092_v37  ;;  %v7088_v25 = vadd.f32 %v10018_v56, %v7024_v49  ;;  %s10355_s23 = scalar_lea.vmem %s7363_s22, 64 }
 0x84c   : > { %7190 = vmatprep.subr.bf16.mxu1 %v7128_v53  ;;  %v9886_v0 = vpop.eup %9885  ;;  %v7023_v22 = vadd.f32 %v9884_v35, %v14919_v14  ;;  %v7091_v29 = vadd.f32 %v10019_v52, %v7027_v11  ;;  %p10356_p3 = scmp.ne.s32.totalorder %s7363_s22, %s10355_s23 }
 0x84d   : > { %7191 = vmatpush1.bf16.msra.mxu1 %v7127_v61  ;;  %v7019_v60 = vadd.f32 %v9886_v0, %v14920_v15  ;;  %v7084_v23 = vadd.f32 %v10020_v40, %v7020_v13  ;;  %v14921_v40 = vld [vmem:[#allocation21_spill] sm:$0xff] }
 0x84e   : > { %8145 = vmatmul.mubr.msk.bf16.vlgmr.msra.gmra.mxu0 %vm1957_vm0, %v9502_v41  ;;  %7192 = vmatprep.subr.bf16.mxu1 %v7124_v47  ;;  %v7119_v31 = vpack.c.bf16 %v7095_v28, %v7091_v29  ;;  %v7087_v36 = vadd.f32 %v10021_v55, %v7023_v22  ;;  %v10475_v55 = vmov 1966171168   ;;  %p10357_p5 = pnand %p10356_p3, %p10609_p12 }
 0x84f   : > { %v7116_v4 = vpack.c.bf16 %v7088_v25, %v7084_v23  ;;  %v7083_v6 = vadd.f32 %v10022_v45, %v7019_v60  ;;  %v7285_v60 = vld [vmem:[%s10729_s13] sm:$0xf]  ;;  %v14922_v23 = vsub.s32 1, %v14921_v40  ;;  %v14923_v45 = vld [vmem:[#allocation22_spill] sm:$0xff]  ;;  %s8149_s13 = sshll.u32 %s10447_s9, 3 }
 0x850   : > { %s7358_s18 = sadd.s32 %s8149_s13, %s10718_s1  ;;  %p10358_p13 = pneg %p10357_p5 }
 0x851   : > { %7193 = vmatpush1.bf16.msra.mxu1 %v7123_v3  ;;  %v7115_v10 = vpack.c.bf16 %v7087_v36, %v7083_v6  ;;  %v7318_v36 = vunpack.c.l.s4 %v10475_v55  ;;  %v7290_v6 = vrot.slane %v7285_v60, %v14923_v45  ;;  %s8150_s27 = sshll.u32 %s7358_s18, 4  ;;  %s10476_s1 = smov [#allocation10]  }
 0x852   : > { %7194 = vmatprep.subr.bf16.mxu1 %v7120_v46  ;;  %s7360_s2 = scalar_lea.hbm %s14928_s30, %s8150_s27  ;;  %s10359_s8 = sshll.u32 %s10476_s1, 4  ;;  %s10360_s8 = int_to_ptr.vmem [resolvable:$false] %s10359_s8 }
 0x853   : > { %s10361_s7 = scalar_lea.vmem %s10360_s8, 128  ;;  %p10362_p0 = scmp.lt.s32.totalorder %s7363_s22, %s10360_s8 }
 0x854   : > { %p10363_p2 = scmp.lt.s32.totalorder %s10361_s7, %s10355_s23 }
 0x855   : > { %7195 = vmatpush1.bf16.msra.mxu1 %v7119_v31  ;;  %v7294_v31 = vrot.slane %v7285_v60, %v14922_v23 }
 0x856   : > { %7196 = vmatprep.subr.bf16.mxu1 %v7116_v4  ;;  %p10364_p6 = por %p10363_p2, %p10362_p0 }
 0x858   : > { %p10365_p7 = pnand %p10364_p6, %p10358_p13 }
 0x859   : > { %7197 = vmatpush1.bf16.msra.mxu1 %v7115_v10 }
 0x85c   : > { %8146 = vmatmul.mubr.msk.bf16.vlgmr.msra.gmra.mxu1 %vm1957_vm0, %v9502_v41 }
 0x90e   : > { %v7173_v12 = vpop.f32.mrf.mxu0 }
 0x90f   : > { %9887 = vtanh.f32 %v7173_v12  ;;  %v14924_v12 = vsub.s32 2, %v14921_v40 }
 0x910   : > { %v7175_v39 = vpop.f32.mrf.mxu0 }
 0x911   : > { %9889 = vtanh.f32 %v7175_v39  ;;  %v7298_v39 = vrot.slane %v7285_v60, %v14924_v12 }
 0x912   : > { %v7177_v21 = vpop.f32.mrf.mxu0 }
 0x913   : > { %9891 = vtanh.f32 %v7177_v21  ;;  %v14925_v21 = vsub.s32 3, %v14921_v40 }
 0x914   : > { %v7179_v50 = vpop.f32.mrf.mxu0 }
 0x915   : > { %9893 = vtanh.f32 %v7179_v50  ;;  %v7302_v50 = vrot.slane %v7285_v60, %v14925_v21 }
 0x91c   : > { %v7216_v20 = vpop.f32.mrf.mxu1  ;;  %v9888_v57 = vpop.eup %9887 }
 0x91d   : > { %9895 = vtanh.f32 %v7216_v20  ;;  %v7245_v30 = vmul.f32 %v9888_v57, %v7238_v59  ;;  %v7319_v57 = vunpack.c.0.s8 %v7318_v36 }
 0x91e   : > { %v7218_v62 = vpop.f32.mrf.mxu1  ;;  %v9890_v5 = vpop.eup %9889 }
 0x91f   : > { %9897 = vtanh.f32 %v7218_v62  ;;  %v7246_v41 = vmul.f32 %v9890_v5, %v7238_v59 }
 0x920   : > { %v9892_v34 = vpop.eup %9891  ;;  %v7220_v18 = vpop.f32.mrf.mxu1 }
 0x921   : > { %v7249_v32 = vmul.f32 %v9892_v34, %v7243_v16  ;;  %9899 = vtanh.f32 %v7220_v18 }
 0x922   : > { %v9894_v7 = vpop.eup %9893  ;;  %v7222_v19 = vpop.f32.mrf.mxu1 }
 0x923   : > { %v7253_v53 = vadd.f32 %v7249_v32, %v7245_v30  ;;  %v7250_v26 = vmul.f32 %v9894_v7, %v7243_v16  ;;  %9901 = vtanh.f32 %v7222_v19  ;;  %v7322_v30 = vsub.s32 %v7319_v57, %v14921_v40 }
 0x925   : > { %v7254_v24 = vrot.slane %v7253_v53, 4  ;;  %v7260_v58 = vadd.f32 %v7250_v26, %v7246_v41 }
 0x927   : > { %v7261_v2 = vrot.slane %v7260_v58, 4  ;;  %v7255_v51 = vadd.f32 %v7254_v24, %v7253_v53  ;;  %v14927_v53 = vlaneseq }
 0x929   : > { %v7262_v61 = vadd.f32 %v7261_v2, %v7260_v58  ;;  %v7256_v8 = vrot.slane %v7255_v51, 2  ;;  %vm7342_vm0 = vcmp.lt.s32.totalorder %v14927_v53, 512 }
 0x92a   : > { %v9896_v42 = vpop.eup %9895 }
 0x92b   : > { %v7263_v54 = vrot.slane %v7262_v61, 2  ;;  %v7247_v38 = vmul.f32 %v9896_v42, %v7238_v59  ;;  %v7257_v49 = vadd.f32 %v7256_v8, %v7255_v51 }
 0x92c   : > { %v9898_v43 = vpop.eup %9897 }
 0x92d   : > { %v7264_v47 = vadd.f32 %v7263_v54, %v7262_v61  ;;  %v7248_v1 = vmul.f32 %v9898_v43, %v7238_v59  ;;  %v7258_v37 = vrot.slane %v7257_v49, 1 }
 0x92e   : > { %v9900_v35 = vpop.eup %9899 }
 0x92f   : > { %v7251_v44 = vmul.f32 %v9900_v35, %v7243_v16  ;;  %v7265_v11 = vrot.slane %v7264_v47, 1  ;;  %v7259_v14 = vadd.f32 %v7258_v37, %v7257_v49 }
 0x930   : > { %v9902_v9 = vpop.eup %9901 }
 0x931   : > { %v7267_v48 = vadd.f32 %v7251_v44, %v7247_v38  ;;  %v7252_v63 = vmul.f32 %v9902_v9, %v7243_v16  ;;  %v7266_v3 = vadd.f32 %v7265_v11, %v7264_v47 }
 0x933   : > { %v7268_v0 = vrot.slane %v7267_v48, 4  ;;  %v7274_v17 = vadd.f32 %v7252_v63, %v7248_v1  ;;  %9903 = vtanh.f32 %v7266_v3 }
 0x934   : > { %9905 = vtanh.f32 %v7259_v14 }
 0x935   : > { %v7269_v27 = vadd.f32 %v7268_v0, %v7267_v48  ;;  %v7275_v13 = vrot.slane %v7274_v17, 4 }
 0x937   : > { %v7270_v33 = vrot.slane %v7269_v27, 2  ;;  %v7276_v28 = vadd.f32 %v7275_v13, %v7274_v17 }
 0x939   : > { %v7271_v22 = vadd.f32 %v7270_v33, %v7269_v27  ;;  %v7277_v46 = vrot.slane %v7276_v28, 2 }
 0x93b   : > { %v7272_v56 = vrot.slane %v7271_v22, 1  ;;  %v7278_v25 = vadd.f32 %v7277_v46, %v7276_v28 }
 0x93d   : > { %v7273_v52 = vadd.f32 %v7272_v56, %v7271_v22  ;;  %v7279_v29 = vrot.slane %v7278_v25, 1 }
 0x93f   : > { %9907 = vtanh.f32 %v7273_v52  ;;  %v7280_v15 = vadd.f32 %v7279_v29, %v7278_v25 }
 0x940   : > { %v9904_v4 = vpop.eup %9903 }
 0x941   : > { %9909 = vtanh.f32 %v7280_v15  ;;  %v9906_v10 = vpop.eup %9905  ;;  %v7308_v20 = vadd.f32 %v9904_v4, %v7294_v31 }
 0x942   : > { %v7307_v5 = vadd.f32 %v9906_v10, %v7290_v6 }
 0x944   : > { %v7315_v18 = vcombine.low %v7307_v5, %v7308_v20 }
 0x946   : > { %v7323_v7 = vrot.slane %v7315_v18, %v7322_v30 }
 0x94c   : > { %v9908_v62 = vpop.eup %9907 }
 0x94d   : > { %v7309_v34 = vadd.f32 %v9908_v62, %v7298_v39 }
 0x94e   : > { %v9910_v59 = vpop.eup %9909 }
 0x94f   : > { %v7310_v16 = vadd.f32 %v9910_v59, %v7302_v50 }
 0x951   : > { %v7316_v32 = vcombine.low %v7309_v34, %v7310_v16 }
 0x953   : > { %v7330_v19 = vrot.slane %v7316_v32, %v7322_v30 }
 0x955   : > { %v7331_v41 = vcombine.low %v7323_v7, %v7330_v19 }
 0x957   : > { %v7338_v26 = vrot.slane %v7331_v41, %v7322_v30 }
 0x959   : > { %7344 = vst.msk [vmem:[%s444_s21] sm:$0xf] %vm7342_vm0, %v7338_v26 }
 0x95a   : > { %10368 = shalt.err (!%p10365_p7)
}
 0x95b   : > { %s10369_s20 = scalar_lea.hbm %s7360_s2, 64  ;;  %s10373_s16 = scalar_lea.hbm %s14929_s0, 256 }
 0x95c   : > { %p10370_p9 = scmp.ne.s32.totalorder %s7360_s2, %s10369_s20  ;;  %p10374_p1 = scmp.lt.s32.totalorder %s7360_s2, %s14929_s0 }
 0x95d   : > { %p10375_p4 = scmp.lt.s32.totalorder %s10373_s16, %s10369_s20 }
 0x95e   : > { %p10371_p11 = pnand %p10370_p9, %p10609_p12 }
 0x95f   : > { %p10376_p8 = por %p10375_p4, %p10374_p1 }
 0x960   : > { %p10372_p10 = pneg %p10371_p11 }
 0x962   : > { %p10377_p3 = pnand %p10376_p8, %p10372_p10 }
 0x964   : > { %10380 = shalt.err (!%p10377_p3)
}
 0x965   : > { %8449 = dma.vmem_to_hbm [thread:$0]  (%p10609_p12), %s7363_s22, 64, %s7360_s2, %s7346_s19  }
 0x966 PF: > { %s14930_s26 = sld [smem:[#allocation15_spill]]  ;;  %p8469_p5 = scmp.ge.s32.totalorder %s10459_s12, 2 }
 0x967   : > { %s14931_s13 = sld [smem:[#allocation16_spill]] }
 0x96c   : > { %s7374_s18 = sand.u32 1, %s14930_s26  }
 0x96d   : > { %p14932_p13 = scmp.ne.s32.totalorder %s14931_s13, 0  ;;  %s7375_s27 = scalar_lea.sflag [#allocation6], %s7374_s18 }
 0x96f   : > { %p8463_p0 = pnand %p8469_p5, %p14932_p13 }
 0x971   : > { %p8464_p2 = pneg %p8463_p0 }
 0x973   : > { %10426 = dma.done.wait (%p8464_p2), %s7375_s27, 64  }
 0x974   : > { %10428 = vsyncadd (%p8464_p2), %s7375_s27, 4294967232  ;;  %s27_s12 = sadd.s32 1, %s10459_s12   ;;  %s14933_s21 = sld [smem:[#allocation20_spill]] }
 0x975   : > { %p24_p6 = scmp.ge.s32.totalorder %s27_s12, 6   ;;  %s14934_s14 = sld [smem:[#allocation17_spill]] }
 0x976   : > { %s14935_s22 = sld [smem:[#allocation19_spill]]  ;;  %s14936_s27 = smov %s10435_s28 }
 0x977   : > { %s14937_s28 = smov %s10439_s29  ;;  %s14939_s30 = smov %s10451_s10 }
 0x978   : > { %s14940_s9 = smov %s10455_s11  ;;  %26 = sbr.rel (!%p24_p6) target bundleno = 17 (0x11), region = 123 }
 0x97a   : > { %s14938_s29 = smov %s14933_s21 }
 0x97b   : > { %s14941_s10 = smov %s14934_s14 }
 0x97c   : > { %s14942_s11 = smov %s14935_s22 }
 0x97d   :  { %7380 = vsyncpa [#allocation5], 1 }
 0x97e   :  { %7382 = vsyncpa [#allocation5 + $0x1], 1 }
 0x97f   :  { %7383 = vsyncpa [#allocation8], 1 }
 0x980   :  { %7385 = vsyncpa [#allocation8 + $0x1], 1 }
 0x981   :  { %7386 = vsyncpa [#allocation6], 1 }
 0x982   :  { %7388 = vsyncpa [#allocation6 + $0x1], 1 }

</bundles_post_ra>
